<compile_context>
chip_gen: v7x
topology: tpu7x:2x2x1
jax: 0.10.0
libtpu: 0.0.40
codegen_flags: <defaults>
</compile_context>

<pallas_src>
import functools

import jax
import jax.numpy as jnp
from jax.experimental import pallas as pl
from jax.experimental.pallas import tpu as pltpu


def _fused_encoder_kernel(x_ref, w1_ref, b1_ref, w2_ref, b2_ref, w3_ref, b3_ref,
                          o_ref, h1_ref, h2_ref, *, K):
    # Channels-first everywhere (matches PyTorch NCL):
    #   x_ref : (1, C0, L0)     wN_ref: (K, C_out, C_in)   bN_ref: (C_out, 1)
    #   o_ref : (1, C3, L3)     h1_ref: (C1, L1) VMEM      h2_ref: (C2, L2) VMEM
    # L always sits on the lane axis -> lane-dense loads/stores.
    L0 = x_ref.shape[2]
    L1 = L0 - (K - 1)
    L2 = L1 - (K - 1)
    L3 = L2 - (K - 1)

    # ---- layer 1: C0 -> C1 (dominant FLOPs; bf16 MXU operands, f32 acc) ----
    # Taps are ref-sliced so the lane offset folds into the load (no shifted
    # full-operand copies); k=0 tap initializes the accumulator.
    cdt = w1_ref.dtype
    acc = jnp.dot(w1_ref[0], x_ref[0, :, pl.ds(0, L1)].astype(cdt),
                  preferred_element_type=jnp.float32)
    for k in range(1, K):                      # K is static (5) -> unrolled
        acc = acc + jnp.dot(w1_ref[k], x_ref[0, :, pl.ds(k, L1)].astype(cdt),
                            preferred_element_type=jnp.float32)
    h1_ref[...] = jnp.maximum(acc + b1_ref[...], 0.0)   # bias (C1,1) broadcasts

    # ---- layer 2: C1 -> C2 (<5% of FLOPs, f32) ----
    acc = jnp.dot(w2_ref[0], h1_ref[:, pl.ds(0, L2)],
                  preferred_element_type=jnp.float32)
    for k in range(1, K):
        acc = acc + jnp.dot(w2_ref[k], h1_ref[:, pl.ds(k, L2)],
                            preferred_element_type=jnp.float32)
    h2_ref[...] = jnp.maximum(acc + b2_ref[...], 0.0)

    # ---- layer 3: C2 -> C3 (f32), store lane-dense NCL output ----
    acc = jnp.dot(w3_ref[0], h2_ref[:, pl.ds(0, L3)],
                  preferred_element_type=jnp.float32)
    for k in range(1, K):
        acc = acc + jnp.dot(w3_ref[k], h2_ref[:, pl.ds(k, L3)],
                            preferred_element_type=jnp.float32)
    o_ref[0] = jnp.maximum(acc + b3_ref[...], 0.0).astype(o_ref.dtype)


def encoder_forward(mel_ncl, prepared_params, kernel_size=5):
    """mel_ncl: (B, C=encoder_dim, L) PyTorch NCL -> (B, 16, L-12) NCL.
    No wrapper transposes: the kernel reads and writes NCL directly."""
    B, C0, L0 = mel_ncl.shape
    (w1, b1), (w2, b2), (w3, b3) = prepared_params
    K = kernel_size
    C1, C2, C3 = w1.shape[1], w2.shape[1], w3.shape[1]
    L1 = L0 - (K - 1)
    L2 = L1 - (K - 1)
    L3 = L2 - (K - 1)

    kernel = functools.partial(_fused_encoder_kernel, K=K)
    return pl.pallas_call(
        kernel,
        out_shape=jax.ShapeDtypeStruct((B, C3, L3), mel_ncl.dtype),
        grid=(B,),
        in_specs=[
            pl.BlockSpec((1, C0, L0), lambda i: (i, 0, 0)),   # per-batch input
            pl.BlockSpec((K, C1, C0), lambda i: (0, 0, 0)),   # w1 (bf16)
            pl.BlockSpec((C1, 1), lambda i: (0, 0)),          # b1
            pl.BlockSpec((K, C2, C1), lambda i: (0, 0, 0)),   # w2
            pl.BlockSpec((C2, 1), lambda i: (0, 0)),          # b2
            pl.BlockSpec((K, C3, C2), lambda i: (0, 0, 0)),   # w3
            pl.BlockSpec((C3, 1), lambda i: (0, 0)),          # b3
        ],
        out_specs=pl.BlockSpec((1, C3, L3), lambda i: (i, 0, 0)),
        scratch_shapes=[pltpu.VMEM((C1, L1), jnp.float32),    # layer-1 act
                        pltpu.VMEM((C2, L2), jnp.float32)],   # layer-2 act
        compiler_params=pltpu.CompilerParams(
            dimension_semantics=("parallel",),                # 2 TCs on v7x
            vmem_limit_bytes=48 * 1024 * 1024),               # v5e default is 16 MiB
    )(mel_ncl, w1, b1, w2, b2, w3, b3)


def prepare_params(torch_params,
                   compute_dtypes=(jnp.bfloat16, jnp.float32, jnp.float32)):
    """One-time layout/dtype prep (call once, outside forward):
    torch (w (C_out,C_in,K), b (C_out,)) -> kernel (w (K,C_out,C_in) in the
    layer's MXU compute dtype, b (C_out,1) f32)."""
    out = []
    for (w, b), dt in zip(torch_params, compute_dtypes):
        out.append((jnp.transpose(w, (2, 0, 1)).astype(dt),
                    b.reshape(-1, 1).astype(jnp.float32)))
    return out


def init_params(key, encoder_dim=430, h1=256, h2=64, h3=16, kernel=5):
    """Deterministic, PyTorch-Conv1d-shaped params: w (C_out,C_in,K), b (C_out,)."""
    dims = [(h1, encoder_dim), (h2, h1), (h3, h2)]
    params = []
    for i, (co, ci) in enumerate(dims):
        kw, kb = jax.random.split(jax.random.fold_in(key, i))
        bound = 1.0 / (ci * kernel) ** 0.5        # torch default fan-in scale
        w = jax.random.uniform(kw, (co, ci, kernel), jnp.float32, -bound, bound)
        b = jax.random.uniform(kb, (co,), jnp.float32, -bound, bound)
        params.append((w, b))
    return params


def _reference(mel_ncl, torch_params, compute_dtypes=None):
    """XLA reference with exact torch semantics (compute_dtypes=None) or with
    the kernel's per-layer operand quantization (f32 accumulation)."""
    x = mel_ncl
    for i, (w, b) in enumerate(torch_params):
        if compute_dtypes is None:
            x = jax.lax.conv_general_dilated(
                x, w, window_strides=(1,), padding="VALID",
                dimension_numbers=("NCH", "OIH", "NCH"))
        else:
            dt = compute_dtypes[i]
            x = jax.lax.conv_general_dilated(
                x.astype(dt), w.astype(dt), window_strides=(1,), padding="VALID",
                dimension_numbers=("NCH", "OIH", "NCH"),
                preferred_element_type=jnp.float32)
        x = jax.nn.relu(x + b[None, :, None])
    return x


if __name__ == "__main__":
    key = jax.random.PRNGKey(0)
    encoder_dim, kernel = 430, 5
    B, L = 2, 20                                   # 3 valid convs -> L_out = 8

    torch_params = init_params(jax.random.fold_in(key, 1),
                               encoder_dim=encoder_dim, kernel=kernel)
    mel = jax.random.normal(jax.random.fold_in(key, 2),
                            (B, encoder_dim, L), jnp.float32)

    fwd = jax.jit(functools.partial(encoder_forward, kernel_size=kernel))

    # --- default mixed-precision path (bf16 MXU operands on layer 1) ---
    mixed_dtypes = (jnp.bfloat16, jnp.float32, jnp.float32)
    prepared_bf16 = prepare_params(torch_params, compute_dtypes=mixed_dtypes)
    out = jax.block_until_ready(fwd(mel, prepared_bf16))
    assert out.shape == (B, 16, L - 3 * (kernel - 1)), out.shape

    ref_matched = _reference(mel, torch_params, compute_dtypes=mixed_dtypes)
    ref_f32 = _reference(mel, torch_params)
    assert jnp.allclose(out, ref_matched, atol=1e-4, rtol=1e-4), \
        "mismatch vs matched-precision reference"
    assert jnp.allclose(out, ref_f32, atol=3e-2, rtol=3e-2), \
        "bf16 path drifted too far from f32 reference"

    # --- pure f32 path (bit-for-bit module semantics, 1e-4 tolerance) ---
    prepared_f32 = prepare_params(torch_params,
                                  compute_dtypes=(jnp.float32,) * 3)
    out_f32 = jax.block_until_ready(fwd(mel, prepared_f32))
    assert jnp.allclose(out_f32, ref_f32, atol=1e-4, rtol=1e-4), \
        "f32 path mismatch vs reference"

    print("KERNEL_OK")
</pallas_src>

<mosaic_0001>
module attributes {stable_mosaic.version = 11 : i64} {
  func.func @_fused_encoder_kernel(%arg0: i32, %arg1: memref<1x430x20xf32, #tpu.memory_space<vmem>>, %arg2: memref<5x256x430xbf16, #tpu.memory_space<vmem>>, %arg3: memref<256x1xf32, #tpu.memory_space<vmem>>, %arg4: memref<5x64x256xf32, #tpu.memory_space<vmem>>, %arg5: memref<64x1xf32, #tpu.memory_space<vmem>>, %arg6: memref<5x16x64xf32, #tpu.memory_space<vmem>>, %arg7: memref<16x1xf32, #tpu.memory_space<vmem>>, %arg8: memref<1x16x8xf32, #tpu.memory_space<vmem>>, %arg9: memref<256x16xf32, #tpu.memory_space<vmem>>, %arg10: memref<64x12xf32, #tpu.memory_space<vmem>>) attributes {dimension_semantics = [#tpu.dimension_semantics<parallel>], iteration_bounds = array<i64: 2>, scalar_prefetch = 0 : i64, scratch_operands = 2 : i64, tpu.core_type = #tpu.core_type<tc>, window_params = [{transform_indices = @transform_0, window_bounds = array<i64: 1, 430, 20>}, {pipeline_mode = #tpu.pipeline_mode<synchronous>, transform_indices = @transform_1, window_bounds = array<i64: 5, 256, 430>}, {pipeline_mode = #tpu.pipeline_mode<synchronous>, transform_indices = @transform_2, window_bounds = array<i64: 256, 1>}, {pipeline_mode = #tpu.pipeline_mode<synchronous>, transform_indices = @transform_3, window_bounds = array<i64: 5, 64, 256>}, {pipeline_mode = #tpu.pipeline_mode<synchronous>, transform_indices = @transform_4, window_bounds = array<i64: 64, 1>}, {pipeline_mode = #tpu.pipeline_mode<synchronous>, transform_indices = @transform_5, window_bounds = array<i64: 5, 16, 64>}, {pipeline_mode = #tpu.pipeline_mode<synchronous>, transform_indices = @transform_6, window_bounds = array<i64: 16, 1>}, {transform_indices = @transform_7, window_bounds = array<i64: 1, 16, 8>}]} {
    %c0 = arith.constant 0 : index
    %c0_0 = arith.constant 0 : index
    %c0_1 = arith.constant 0 : index
    %0 = vector.load %arg2[%c0, %c0_0, %c0_1] : memref<5x256x430xbf16, #tpu.memory_space<vmem>>, vector<1x256x430xbf16>
    %1 = vector.shape_cast %0 : vector<1x256x430xbf16> to vector<256x430xbf16>
    %c0_2 = arith.constant 0 : index
    %c0_3 = arith.constant 0 : index
    %c0_4 = arith.constant 0 : index
    %2 = vector.load %arg1[%c0_2, %c0_3, %c0_4] : memref<1x430x20xf32, #tpu.memory_space<vmem>>, vector<1x430x16xf32>
    %3 = vector.shape_cast %2 : vector<1x430x16xf32> to vector<430x16xf32>
    %4 = arith.truncf %3 : vector<430x16xf32> to vector<430x16xbf16>
    %cst = arith.constant dense<0.000000e+00> : vector<256x16xf32>
    %5 = tpu.matmul %1, %4, %cst {dimension_numbers = #tpu.dot_dimension_numbers<[1], [0], [0], [1], [0, 0, 1, 1], [], []>} : vector<256x430xbf16>, vector<430x16xbf16>, vector<256x16xf32> -> vector<256x16xf32>
    %c1 = arith.constant 1 : index
    %c0_5 = arith.constant 0 : index
    %c0_6 = arith.constant 0 : index
    %6 = vector.load %arg2[%c1, %c0_5, %c0_6] : memref<5x256x430xbf16, #tpu.memory_space<vmem>>, vector<1x256x430xbf16>
    %7 = vector.shape_cast %6 : vector<1x256x430xbf16> to vector<256x430xbf16>
    %c0_7 = arith.constant 0 : index
    %c0_8 = arith.constant 0 : index
    %c1_9 = arith.constant 1 : index
    %8 = vector.load %arg1[%c0_7, %c0_8, %c1_9] : memref<1x430x20xf32, #tpu.memory_space<vmem>>, vector<1x430x16xf32>
    %9 = vector.shape_cast %8 : vector<1x430x16xf32> to vector<430x16xf32>
    %10 = arith.truncf %9 : vector<430x16xf32> to vector<430x16xbf16>
    %cst_10 = arith.constant dense<0.000000e+00> : vector<256x16xf32>
    %11 = tpu.matmul %7, %10, %cst_10 {dimension_numbers = #tpu.dot_dimension_numbers<[1], [0], [0], [1], [0, 0, 1, 1], [], []>} : vector<256x430xbf16>, vector<430x16xbf16>, vector<256x16xf32> -> vector<256x16xf32>
    %12 = arith.addf %5, %11 : vector<256x16xf32>
    %c2 = arith.constant 2 : index
    %c0_11 = arith.constant 0 : index
    %c0_12 = arith.constant 0 : index
    %13 = vector.load %arg2[%c2, %c0_11, %c0_12] : memref<5x256x430xbf16, #tpu.memory_space<vmem>>, vector<1x256x430xbf16>
    %14 = vector.shape_cast %13 : vector<1x256x430xbf16> to vector<256x430xbf16>
    %c0_13 = arith.constant 0 : index
    %c0_14 = arith.constant 0 : index
    %c2_15 = arith.constant 2 : index
    %15 = vector.load %arg1[%c0_13, %c0_14, %c2_15] : memref<1x430x20xf32, #tpu.memory_space<vmem>>, vector<1x430x16xf32>
    %16 = vector.shape_cast %15 : vector<1x430x16xf32> to vector<430x16xf32>
    %17 = arith.truncf %16 : vector<430x16xf32> to vector<430x16xbf16>
    %cst_16 = arith.constant dense<0.000000e+00> : vector<256x16xf32>
    %18 = tpu.matmul %14, %17, %cst_16 {dimension_numbers = #tpu.dot_dimension_numbers<[1], [0], [0], [1], [0, 0, 1, 1], [], []>} : vector<256x430xbf16>, vector<430x16xbf16>, vector<256x16xf32> -> vector<256x16xf32>
    %19 = arith.addf %12, %18 : vector<256x16xf32>
    %c3 = arith.constant 3 : index
    %c0_17 = arith.constant 0 : index
    %c0_18 = arith.constant 0 : index
    %20 = vector.load %arg2[%c3, %c0_17, %c0_18] : memref<5x256x430xbf16, #tpu.memory_space<vmem>>, vector<1x256x430xbf16>
    %21 = vector.shape_cast %20 : vector<1x256x430xbf16> to vector<256x430xbf16>
    %c0_19 = arith.constant 0 : index
    %c0_20 = arith.constant 0 : index
    %c3_21 = arith.constant 3 : index
    %22 = vector.load %arg1[%c0_19, %c0_20, %c3_21] : memref<1x430x20xf32, #tpu.memory_space<vmem>>, vector<1x430x16xf32>
    %23 = vector.shape_cast %22 : vector<1x430x16xf32> to vector<430x16xf32>
    %24 = arith.truncf %23 : vector<430x16xf32> to vector<430x16xbf16>
    %cst_22 = arith.constant dense<0.000000e+00> : vector<256x16xf32>
    %25 = tpu.matmul %21, %24, %cst_22 {dimension_numbers = #tpu.dot_dimension_numbers<[1], [0], [0], [1], [0, 0, 1, 1], [], []>} : vector<256x430xbf16>, vector<430x16xbf16>, vector<256x16xf32> -> vector<256x16xf32>
    %26 = arith.addf %19, %25 : vector<256x16xf32>
    %c4 = arith.constant 4 : index
    %c0_23 = arith.constant 0 : index
    %c0_24 = arith.constant 0 : index
    %27 = vector.load %arg2[%c4, %c0_23, %c0_24] : memref<5x256x430xbf16, #tpu.memory_space<vmem>>, vector<1x256x430xbf16>
    %28 = vector.shape_cast %27 : vector<1x256x430xbf16> to vector<256x430xbf16>
    %c0_25 = arith.constant 0 : index
    %c0_26 = arith.constant 0 : index
    %c4_27 = arith.constant 4 : index
    %29 = vector.load %arg1[%c0_25, %c0_26, %c4_27] : memref<1x430x20xf32, #tpu.memory_space<vmem>>, vector<1x430x16xf32>
    %30 = vector.shape_cast %29 : vector<1x430x16xf32> to vector<430x16xf32>
    %31 = arith.truncf %30 : vector<430x16xf32> to vector<430x16xbf16>
    %cst_28 = arith.constant dense<0.000000e+00> : vector<256x16xf32>
    %32 = tpu.matmul %28, %31, %cst_28 {dimension_numbers = #tpu.dot_dimension_numbers<[1], [0], [0], [1], [0, 0, 1, 1], [], []>} : vector<256x430xbf16>, vector<430x16xbf16>, vector<256x16xf32> -> vector<256x16xf32>
    %33 = arith.addf %26, %32 : vector<256x16xf32>
    %c0_29 = arith.constant 0 : index
    %c0_30 = arith.constant 0 : index
    %34 = vector.load %arg3[%c0_29, %c0_30] : memref<256x1xf32, #tpu.memory_space<vmem>>, vector<256x1xf32>
    %35 = vector.broadcast %34 : vector<256x1xf32> to vector<256x16xf32>
    %36 = arith.addf %33, %35 : vector<256x16xf32>
    %cst_31 = arith.constant 0.000000e+00 : f32
    %37 = vector.broadcast %cst_31 : f32 to vector<256x16xf32>
    %38 = arith.maximumf %36, %37 : vector<256x16xf32>
    %c0_32 = arith.constant 0 : index
    %c0_33 = arith.constant 0 : index
    %39 = vector.load %arg9[%c0_32, %c0_33] : memref<256x16xf32, #tpu.memory_space<vmem>>, vector<256x16xf32>
    tpu.vector_store %arg9[%c0_32, %c0_33], %38 {strides = array<i32>} : memref<256x16xf32, #tpu.memory_space<vmem>>, vector<256x16xf32>,
    %c0_34 = arith.constant 0 : index
    %c0_35 = arith.constant 0 : index
    %c0_36 = arith.constant 0 : index
    %40 = vector.load %arg4[%c0_34, %c0_35, %c0_36] : memref<5x64x256xf32, #tpu.memory_space<vmem>>, vector<1x64x256xf32>
    %41 = vector.shape_cast %40 : vector<1x64x256xf32> to vector<64x256xf32>
    %c0_37 = arith.constant 0 : index
    %c0_38 = arith.constant 0 : index
    %42 = vector.load %arg9[%c0_37, %c0_38] : memref<256x16xf32, #tpu.memory_space<vmem>>, vector<256x12xf32>
    %cst_39 = arith.constant dense<0.000000e+00> : vector<64x12xf32>
    %43 = tpu.matmul %41, %42, %cst_39 {dimension_numbers = #tpu.dot_dimension_numbers<[1], [0], [0], [1], [0, 0, 1, 1], [], []>} : vector<64x256xf32>, vector<256x12xf32>, vector<64x12xf32> -> vector<64x12xf32>
    %c1_40 = arith.constant 1 : index
    %c0_41 = arith.constant 0 : index
    %c0_42 = arith.constant 0 : index
    %44 = vector.load %arg4[%c1_40, %c0_41, %c0_42] : memref<5x64x256xf32, #tpu.memory_space<vmem>>, vector<1x64x256xf32>
    %45 = vector.shape_cast %44 : vector<1x64x256xf32> to vector<64x256xf32>
    %c0_43 = arith.constant 0 : index
    %c1_44 = arith.constant 1 : index
    %46 = vector.load %arg9[%c0_43, %c1_44] : memref<256x16xf32, #tpu.memory_space<vmem>>, vector<256x12xf32>
    %cst_45 = arith.constant dense<0.000000e+00> : vector<64x12xf32>
    %47 = tpu.matmul %45, %46, %cst_45 {dimension_numbers = #tpu.dot_dimension_numbers<[1], [0], [0], [1], [0, 0, 1, 1], [], []>} : vector<64x256xf32>, vector<256x12xf32>, vector<64x12xf32> -> vector<64x12xf32>
    %48 = arith.addf %43, %47 : vector<64x12xf32>
    %c2_46 = arith.constant 2 : index
    %c0_47 = arith.constant 0 : index
    %c0_48 = arith.constant 0 : index
    %49 = vector.load %arg4[%c2_46, %c0_47, %c0_48] : memref<5x64x256xf32, #tpu.memory_space<vmem>>, vector<1x64x256xf32>
    %50 = vector.shape_cast %49 : vector<1x64x256xf32> to vector<64x256xf32>
    %c0_49 = arith.constant 0 : index
    %c2_50 = arith.constant 2 : index
    %51 = vector.load %arg9[%c0_49, %c2_50] : memref<256x16xf32, #tpu.memory_space<vmem>>, vector<256x12xf32>
    %cst_51 = arith.constant dense<0.000000e+00> : vector<64x12xf32>
    %52 = tpu.matmul %50, %51, %cst_51 {dimension_numbers = #tpu.dot_dimension_numbers<[1], [0], [0], [1], [0, 0, 1, 1], [], []>} : vector<64x256xf32>, vector<256x12xf32>, vector<64x12xf32> -> vector<64x12xf32>
    %53 = arith.addf %48, %52 : vector<64x12xf32>
    %c3_52 = arith.constant 3 : index
    %c0_53 = arith.constant 0 : index
    %c0_54 = arith.constant 0 : index
    %54 = vector.load %arg4[%c3_52, %c0_53, %c0_54] : memref<5x64x256xf32, #tpu.memory_space<vmem>>, vector<1x64x256xf32>
    %55 = vector.shape_cast %54 : vector<1x64x256xf32> to vector<64x256xf32>
    %c0_55 = arith.constant 0 : index
    %c3_56 = arith.constant 3 : index
    %56 = vector.load %arg9[%c0_55, %c3_56] : memref<256x16xf32, #tpu.memory_space<vmem>>, vector<256x12xf32>
    %cst_57 = arith.constant dense<0.000000e+00> : vector<64x12xf32>
    %57 = tpu.matmul %55, %56, %cst_57 {dimension_numbers = #tpu.dot_dimension_numbers<[1], [0], [0], [1], [0, 0, 1, 1], [], []>} : vector<64x256xf32>, vector<256x12xf32>, vector<64x12xf32> -> vector<64x12xf32>
    %58 = arith.addf %53, %57 : vector<64x12xf32>
    %c4_58 = arith.constant 4 : index
    %c0_59 = arith.constant 0 : index
    %c0_60 = arith.constant 0 : index
    %59 = vector.load %arg4[%c4_58, %c0_59, %c0_60] : memref<5x64x256xf32, #tpu.memory_space<vmem>>, vector<1x64x256xf32>
    %60 = vector.shape_cast %59 : vector<1x64x256xf32> to vector<64x256xf32>
    %c0_61 = arith.constant 0 : index
    %c4_62 = arith.constant 4 : index
    %61 = vector.load %arg9[%c0_61, %c4_62] : memref<256x16xf32, #tpu.memory_space<vmem>>, vector<256x12xf32>
    %cst_63 = arith.constant dense<0.000000e+00> : vector<64x12xf32>
    %62 = tpu.matmul %60, %61, %cst_63 {dimension_numbers = #tpu.dot_dimension_numbers<[1], [0], [0], [1], [0, 0, 1, 1], [], []>} : vector<64x256xf32>, vector<256x12xf32>, vector<64x12xf32> -> vector<64x12xf32>
    %63 = arith.addf %58, %62 : vector<64x12xf32>
    %c0_64 = arith.constant 0 : index
    %c0_65 = arith.constant 0 : index
    %64 = vector.load %arg5[%c0_64, %c0_65] : memref<64x1xf32, #tpu.memory_space<vmem>>, vector<64x1xf32>
    %65 = vector.broadcast %64 : vector<64x1xf32> to vector<64x12xf32>
    %66 = arith.addf %63, %65 : vector<64x12xf32>
    %cst_66 = arith.constant 0.000000e+00 : f32
    %67 = vector.broadcast %cst_66 : f32 to vector<64x12xf32>
    %68 = arith.maximumf %66, %67 : vector<64x12xf32>
    %c0_67 = arith.constant 0 : index
    %c0_68 = arith.constant 0 : index
    %69 = vector.load %arg10[%c0_67, %c0_68] : memref<64x12xf32, #tpu.memory_space<vmem>>, vector<64x12xf32>
    tpu.vector_store %arg10[%c0_67, %c0_68], %68 {strides = array<i32>} : memref<64x12xf32, #tpu.memory_space<vmem>>, vector<64x12xf32>,
    %c0_69 = arith.constant 0 : index
    %c0_70 = arith.constant 0 : index
    %c0_71 = arith.constant 0 : index
    %70 = vector.load %arg6[%c0_69, %c0_70, %c0_71] : memref<5x16x64xf32, #tpu.memory_space<vmem>>, vector<1x16x64xf32>
    %71 = vector.shape_cast %70 : vector<1x16x64xf32> to vector<16x64xf32>
    %c0_72 = arith.constant 0 : index
    %c0_73 = arith.constant 0 : index
    %72 = vector.load %arg10[%c0_72, %c0_73] : memref<64x12xf32, #tpu.memory_space<vmem>>, vector<64x8xf32>
    %cst_74 = arith.constant dense<0.000000e+00> : vector<16x8xf32>
    %73 = tpu.matmul %71, %72, %cst_74 {dimension_numbers = #tpu.dot_dimension_numbers<[1], [0], [0], [1], [0, 0, 1, 1], [], []>} : vector<16x64xf32>, vector<64x8xf32>, vector<16x8xf32> -> vector<16x8xf32>
    %c1_75 = arith.constant 1 : index
    %c0_76 = arith.constant 0 : index
    %c0_77 = arith.constant 0 : index
    %74 = vector.load %arg6[%c1_75, %c0_76, %c0_77] : memref<5x16x64xf32, #tpu.memory_space<vmem>>, vector<1x16x64xf32>
    %75 = vector.shape_cast %74 : vector<1x16x64xf32> to vector<16x64xf32>
    %c0_78 = arith.constant 0 : index
    %c1_79 = arith.constant 1 : index
    %76 = vector.load %arg10[%c0_78, %c1_79] : memref<64x12xf32, #tpu.memory_space<vmem>>, vector<64x8xf32>
    %cst_80 = arith.constant dense<0.000000e+00> : vector<16x8xf32>
    %77 = tpu.matmul %75, %76, %cst_80 {dimension_numbers = #tpu.dot_dimension_numbers<[1], [0], [0], [1], [0, 0, 1, 1], [], []>} : vector<16x64xf32>, vector<64x8xf32>, vector<16x8xf32> -> vector<16x8xf32>
    %78 = arith.addf %73, %77 : vector<16x8xf32>
    %c2_81 = arith.constant 2 : index
    %c0_82 = arith.constant 0 : index
    %c0_83 = arith.constant 0 : index
    %79 = vector.load %arg6[%c2_81, %c0_82, %c0_83] : memref<5x16x64xf32, #tpu.memory_space<vmem>>, vector<1x16x64xf32>
    %80 = vector.shape_cast %79 : vector<1x16x64xf32> to vector<16x64xf32>
    %c0_84 = arith.constant 0 : index
    %c2_85 = arith.constant 2 : index
    %81 = vector.load %arg10[%c0_84, %c2_85] : memref<64x12xf32, #tpu.memory_space<vmem>>, vector<64x8xf32>
    %cst_86 = arith.constant dense<0.000000e+00> : vector<16x8xf32>
    %82 = tpu.matmul %80, %81, %cst_86 {dimension_numbers = #tpu.dot_dimension_numbers<[1], [0], [0], [1], [0, 0, 1, 1], [], []>} : vector<16x64xf32>, vector<64x8xf32>, vector<16x8xf32> -> vector<16x8xf32>
    %83 = arith.addf %78, %82 : vector<16x8xf32>
    %c3_87 = arith.constant 3 : index
    %c0_88 = arith.constant 0 : index
    %c0_89 = arith.constant 0 : index
    %84 = vector.load %arg6[%c3_87, %c0_88, %c0_89] : memref<5x16x64xf32, #tpu.memory_space<vmem>>, vector<1x16x64xf32>
    %85 = vector.shape_cast %84 : vector<1x16x64xf32> to vector<16x64xf32>
    %c0_90 = arith.constant 0 : index
    %c3_91 = arith.constant 3 : index
    %86 = vector.load %arg10[%c0_90, %c3_91] : memref<64x12xf32, #tpu.memory_space<vmem>>, vector<64x8xf32>
    %cst_92 = arith.constant dense<0.000000e+00> : vector<16x8xf32>
    %87 = tpu.matmul %85, %86, %cst_92 {dimension_numbers = #tpu.dot_dimension_numbers<[1], [0], [0], [1], [0, 0, 1, 1], [], []>} : vector<16x64xf32>, vector<64x8xf32>, vector<16x8xf32> -> vector<16x8xf32>
    %88 = arith.addf %83, %87 : vector<16x8xf32>
    %c4_93 = arith.constant 4 : index
    %c0_94 = arith.constant 0 : index
    %c0_95 = arith.constant 0 : index
    %89 = vector.load %arg6[%c4_93, %c0_94, %c0_95] : memref<5x16x64xf32, #tpu.memory_space<vmem>>, vector<1x16x64xf32>
    %90 = vector.shape_cast %89 : vector<1x16x64xf32> to vector<16x64xf32>
    %c0_96 = arith.constant 0 : index
    %c4_97 = arith.constant 4 : index
    %91 = vector.load %arg10[%c0_96, %c4_97] : memref<64x12xf32, #tpu.memory_space<vmem>>, vector<64x8xf32>
    %cst_98 = arith.constant dense<0.000000e+00> : vector<16x8xf32>
    %92 = tpu.matmul %90, %91, %cst_98 {dimension_numbers = #tpu.dot_dimension_numbers<[1], [0], [0], [1], [0, 0, 1, 1], [], []>} : vector<16x64xf32>, vector<64x8xf32>, vector<16x8xf32> -> vector<16x8xf32>
    %93 = arith.addf %88, %92 : vector<16x8xf32>
    %c0_99 = arith.constant 0 : index
    %c0_100 = arith.constant 0 : index
    %94 = vector.load %arg7[%c0_99, %c0_100] : memref<16x1xf32, #tpu.memory_space<vmem>>, vector<16x1xf32>
    %95 = vector.broadcast %94 : vector<16x1xf32> to vector<16x8xf32>
    %96 = arith.addf %93, %95 : vector<16x8xf32>
    %cst_101 = arith.constant 0.000000e+00 : f32
    %97 = vector.broadcast %cst_101 : f32 to vector<16x8xf32>
    %98 = arith.maximumf %96, %97 : vector<16x8xf32>
    %c0_102 = arith.constant 0 : index
    %c0_103 = arith.constant 0 : index
    %c0_104 = arith.constant 0 : index
    %99 = vector.load %arg8[%c0_102, %c0_103, %c0_104] : memref<1x16x8xf32, #tpu.memory_space<vmem>>, vector<1x16x8xf32>
    %100 = vector.shape_cast %99 : vector<1x16x8xf32> to vector<16x8xf32>
    %101 = vector.shape_cast %98 : vector<16x8xf32> to vector<1x16x8xf32>
    tpu.vector_store %arg8[%c0_102, %c0_103, %c0_104], %101 {strides = array<i32>} : memref<1x16x8xf32, #tpu.memory_space<vmem>>, vector<1x16x8xf32>,
    return
  }
  func.func @transform_0(%arg0: i32) -> (i32, i32, i32) {
    %c0_i32 = arith.constant 0 : i32
    %c0_i32_0 = arith.constant 0 : i32
    %c0_i32_1 = arith.constant 0 : i32
    return %arg0, %c0_i32, %c0_i32_0 : i32, i32, i32
  }
  func.func @transform_1(%arg0: i32) -> (i32, i32, i32) {
    %c0_i32 = arith.constant 0 : i32
    %c0_i32_0 = arith.constant 0 : i32
    %c0_i32_1 = arith.constant 0 : i32
    %c0_i32_2 = arith.constant 0 : i32
    return %c0_i32, %c0_i32_0, %c0_i32_1 : i32, i32, i32
  }
  func.func @transform_2(%arg0: i32) -> (i32, i32) {
    %c0_i32 = arith.constant 0 : i32
    %c0_i32_0 = arith.constant 0 : i32
    %c0_i32_1 = arith.constant 0 : i32
    return %c0_i32, %c0_i32_0 : i32, i32
  }
  func.func @transform_3(%arg0: i32) -> (i32, i32, i32) {
    %c0_i32 = arith.constant 0 : i32
    %c0_i32_0 = arith.constant 0 : i32
    %c0_i32_1 = arith.constant 0 : i32
    %c0_i32_2 = arith.constant 0 : i32
    return %c0_i32, %c0_i32_0, %c0_i32_1 : i32, i32, i32
  }
  func.func @transform_4(%arg0: i32) -> (i32, i32) {
    %c0_i32 = arith.constant 0 : i32
    %c0_i32_0 = arith.constant 0 : i32
    %c0_i32_1 = arith.constant 0 : i32
    return %c0_i32, %c0_i32_0 : i32, i32
  }
  func.func @transform_5(%arg0: i32) -> (i32, i32, i32) {
    %c0_i32 = arith.constant 0 : i32
    %c0_i32_0 = arith.constant 0 : i32
    %c0_i32_1 = arith.constant 0 : i32
    %c0_i32_2 = arith.constant 0 : i32
    return %c0_i32, %c0_i32_0, %c0_i32_1 : i32, i32, i32
  }
  func.func @transform_6(%arg0: i32) -> (i32, i32) {
    %c0_i32 = arith.constant 0 : i32
    %c0_i32_0 = arith.constant 0 : i32
    %c0_i32_1 = arith.constant 0 : i32
    return %c0_i32, %c0_i32_0 : i32, i32
  }
  func.func @transform_7(%arg0: i32) -> (i32, i32, i32) {
    %c0_i32 = arith.constant 0 : i32
    %c0_i32_0 = arith.constant 0 : i32
    %c0_i32_1 = arith.constant 0 : i32
    return %arg0, %c0_i32, %c0_i32_0 : i32, i32, i32
  }
}

</mosaic_0001>

<bundles_post_ra>
// kernel: encoder_forward.1
= control target key start
LH: loop header
LB: loop body
LE: loop exit
PB: predicated region body
PF: predicated region fallthrough
CT: control target
= control target key end

     0   :  { %s9501_s24 = smov 0   ;;  %s12508_s0 = inlined_call_operand.vmem [shape: f32[2,430,20], index: 0, kind: input, shape index: {}]   ;;  %s12509_s1 = inlined_call_operand.vmem [shape: bf16[5,256,430], index: 1, kind: input, shape index: {}]   ;;  %s12510_s2 = inlined_call_operand.vmem [shape: f32[256,1], index: 2, kind: input, shape index: {}]   ;;  %s12511_s3 = inlined_call_operand.vmem [shape: f32[5,64,256], index: 3, kind: input, shape index: {}]   ;;  %s12512_s4 = inlined_call_operand.vmem [shape: f32[64,1], index: 4, kind: input, shape index: {}]   ;;  %s12513_s5 = inlined_call_operand.vmem [shape: f32[5,16,64], index: 5, kind: input, shape index: {}]   ;;  %s12514_s6 = inlined_call_operand.vmem [shape: f32[16,1], index: 6, kind: input, shape index: {}]   ;;  %s12515_s7 = inlined_call_operand.vmem [shape: f32[2,16,8], index: 7, kind: output, shape index: {}]  }
   0x1 LB: > { %s6570_s25 = sadd.s32 4294967295, %s9454_s24   ;;  %p6574_p0 = scmp.ge.s32.totalorder %s9454_s24, 1  ;;  %s9454_s24 = sphi %s9501_s24, %s17_s24  }
   0x2   : > { %p237_p1 = scmp.lt.s32.totalorder %s9454_s24, 3 }
   0x4   : > { %p238_p2 = pnand %p6574_p0, %p237_p1 }
   0x6   : > { %241 = sbr.rel (%p238_p2) target bundleno = 1941 (0x795), region = 48 }
   0xd   : > { %p269_p3 = scmp.lt.s32.totalorder %s6570_s25, 1  ;;  %v9456_v0 = vmov 0   ;;  %s9457_s30 = smov 127   ;;  %vm901_vm0 = vcmask 375808   ;;  %vm950_vm1 = vcmask 1046528   ;;  %vm4771_vm2 = vcmask 130048  }
   0xe   : > { %1115 = vmatprep.subr.bf16.mxu1 %v9456_v0  ;;  %8567 = vset.pattern.permute.xlu1 %v9456_v0  ;;  %s9458_s12 = smov 126   ;;  %s9459_s17 = smov 125   ;;  %vm5949_vm3 = vcmask 97280   ;;  %vm6003_vm4 = vcmask 523264   ;;  %vm6512_vm5 = vcmask 64512  }
   0xf   : > { %s12541_s25 = smov (!%p269_p3, %s6570_s25), 1  ;;  %8566 = vset.pattern.permute.xlu0 %v9456_v0  ;;  %s9460_s22 = smov 124  }
  0x10   : > { %s8552_s26 = smul.u32 432, %s12541_s25 }
  0x12   : > { %s9518_s29 = scalar_lea.vmem %s12508_s0, %s8552_s26 }
  0x13   : > { %v376_v1 = vld [vmem:[%s9518_s29 + $0x100] sm:$0xff]  ;;  %v377_v2 = vld [vmem:[%s9518_s29 + $0x108] sm:$0xff]  ;;  %v378_v6 = vld [vmem:[%s9518_s29 + $0x110] sm:$0xff] }
  0x14   : > { %v360_v3 = vld [vmem:[%s9518_s29 + $0x80] sm:$0xff]  ;;  %v9523_v4 = vpack.c.bf16 %v377_v2, %v376_v1  ;;  %v361_v5 = vld [vmem:[%s9518_s29 + $0x88] sm:$0xff]  ;;  %v379_v7 = vld [vmem:[%s9518_s29 + $0x118] sm:$0xff] }
  0x15   : > { %v9528_v8 = vpack.c.bf16 %v361_v5, %v360_v3  ;;  %v380_v9 = vld [vmem:[%s9518_s29 + $0x120] sm:$0xff]  ;;  %v381_v10 = vld [vmem:[%s9518_s29 + $0x128] sm:$0xff]  ;;  %v9534_v11 = vpack.c.bf16 %v379_v7, %v378_v6  ;;  %v362_v15 = vld [vmem:[%s9518_s29 + $0x90] sm:$0xff] }
  0x16   : > { %853 = vrot.lane.b32.xlu0 %v9523_v4, %s9457_s30  ;;  %v9538_v12 = vpack.c.bf16 %v381_v10, %v380_v9  ;;  %v344_v13 = vld [vmem:[%s9518_s29] sm:$0xff]  ;;  %v345_v14 = vld [vmem:[%s9518_s29 + $0x8] sm:$0xff]  ;;  %v363_v16 = vld [vmem:[%s9518_s29 + $0x98] sm:$0xff] }
  0x17   : > { %837 = vrot.lane.b32.xlu1 %v9528_v8, %s9457_s30  ;;  %v9546_v17 = vpack.c.bf16 %v345_v14, %v344_v13  ;;  %v9550_v18 = vpack.c.bf16 %v363_v16, %v362_v15  ;;  %v382_v19 = vld [vmem:[%s9518_s29 + $0x130] sm:$0xff]  ;;  %v383_v20 = vld [vmem:[%s9518_s29 + $0x138] sm:$0xff]  ;;  %v364_v25 = vld [vmem:[%s9518_s29 + $0xa0] sm:$0xff] }
  0x18   : > { %v346_v21 = vld [vmem:[%s9518_s29 + $0x10] sm:$0xff]  ;;  %v347_v22 = vld [vmem:[%s9518_s29 + $0x18] sm:$0xff]  ;;  %v9558_v23 = vpack.c.bf16 %v383_v20, %v382_v19  ;;  %v365_v26 = vld [vmem:[%s9518_s29 + $0xa8] sm:$0xff] }
  0x19   : > { %v9562_v24 = vpack.c.bf16 %v347_v22, %v346_v21  ;;  %v384_v27 = vld [vmem:[%s9518_s29 + $0x140] sm:$0xff]  ;;  %v385_v28 = vld [vmem:[%s9518_s29 + $0x148] sm:$0xff]  ;;  %v9570_v29 = vpack.c.bf16 %v365_v26, %v364_v25  ;;  %v366_v33 = vld [vmem:[%s9518_s29 + $0xb0] sm:$0xff] }
  0x1a   : > { %855 = vrot.lane.b32.xlu0 %v9534_v11, %s9457_s30  ;;  %v9574_v30 = vpack.c.bf16 %v385_v28, %v384_v27  ;;  %v348_v31 = vld [vmem:[%s9518_s29 + $0x20] sm:$0xff]  ;;  %v349_v32 = vld [vmem:[%s9518_s29 + $0x28] sm:$0xff]  ;;  %v367_v34 = vld [vmem:[%s9518_s29 + $0xb8] sm:$0xff] }
  0x1b   : > { %857 = vrot.lane.b32.xlu1 %v9538_v12, %s9457_s30  ;;  %v386_v35 = vld [vmem:[%s9518_s29 + $0x150] sm:$0xff]  ;;  %v387_v36 = vld [vmem:[%s9518_s29 + $0x158] sm:$0xff]  ;;  %v9584_v37 = vpack.c.bf16 %v349_v32, %v348_v31  ;;  %v9590_v40 = vpack.c.bf16 %v367_v34, %v366_v33  ;;  %v368_v41 = vld [vmem:[%s9518_s29 + $0xc0] sm:$0xff] }
  0x1c   : > { %v350_v38 = vld [vmem:[%s9518_s29 + $0x30] sm:$0xff]  ;;  %v351_v39 = vld [vmem:[%s9518_s29 + $0x38] sm:$0xff]  ;;  %v369_v42 = vld [vmem:[%s9518_s29 + $0xc8] sm:$0xff]  ;;  %v9596_v43 = vpack.c.bf16 %v387_v36, %v386_v35 }
  0x1d   : > { %v388_v44 = vld [vmem:[%s9518_s29 + $0x160] sm:$0xff]  ;;  %v389_v45 = vld [vmem:[%s9518_s29 + $0x168] sm:$0xff]  ;;  %v9602_v46 = vpack.c.bf16 %v351_v39, %v350_v38  ;;  %v9608_v49 = vpack.c.bf16 %v369_v42, %v368_v41  ;;  %v370_v50 = vld [vmem:[%s9518_s29 + $0xd0] sm:$0xff] }
  0x1e   : > { %821 = vrot.lane.b32.xlu0 %v9546_v17, %s9457_s30  ;;  %v352_v47 = vld [vmem:[%s9518_s29 + $0x40] sm:$0xff]  ;;  %v353_v48 = vld [vmem:[%s9518_s29 + $0x48] sm:$0xff]  ;;  %v371_v51 = vld [vmem:[%s9518_s29 + $0xd8] sm:$0xff]  ;;  %v9614_v52 = vpack.c.bf16 %v389_v45, %v388_v44 }
  0x1f   : > { %839 = vrot.lane.b32.xlu1 %v9550_v18, %s9457_s30  ;;  %v390_v53 = vld [vmem:[%s9518_s29 + $0x170] sm:$0xff]  ;;  %v391_v54 = vld [vmem:[%s9518_s29 + $0x178] sm:$0xff]  ;;  %v9620_v55 = vpack.c.bf16 %v353_v48, %v352_v47  ;;  %v9626_v58 = vpack.c.bf16 %v371_v51, %v370_v50  ;;  %v372_v59 = vld [vmem:[%s9518_s29 + $0xe0] sm:$0xff] }
  0x20   : > { %v354_v56 = vld [vmem:[%s9518_s29 + $0x50] sm:$0xff]  ;;  %v355_v57 = vld [vmem:[%s9518_s29 + $0x58] sm:$0xff]  ;;  %v373_v60 = vld [vmem:[%s9518_s29 + $0xe8] sm:$0xff]  ;;  %v9632_v61 = vpack.c.bf16 %v391_v54, %v390_v53 }
  0x21   : > { %v392_v62 = vld [vmem:[%s9518_s29 + $0x180] sm:$0xff]  ;;  %v393_v63 = vld [vmem:[%s9518_s29 + $0x188] sm:$0xff]  ;;  %v9638_v1 = vpack.c.bf16 %v355_v57, %v354_v56  ;;  %v9643_v3 = vpack.c.bf16 %v373_v60, %v372_v59  ;;  %v374_v5 = vld [vmem:[%s9518_s29 + $0xf0] sm:$0xff] }
  0x22   : > { %859 = vrot.lane.b32.xlu0 %v9558_v23, %s9457_s30  ;;  %v356_v2 = vld [vmem:[%s9518_s29 + $0x60] sm:$0xff]  ;;  %v375_v6 = vld [vmem:[%s9518_s29 + $0xf8] sm:$0xff]  ;;  %v357_v7 = vld [vmem:[%s9518_s29 + $0x68] sm:$0xff]  ;;  %v9653_v10 = vpack.c.bf16 %v393_v63, %v392_v62 }
  0x23   : > { %823 = vrot.lane.b32.xlu1 %v9562_v24, %s9457_s30  ;;  %v8970_v9 = vld [vmem:[%s12509_s1 + $0x204] ss:$16 sps:$4 sm:$0xff]   ;;  %v9658_v14 = vpack.c.bf16 %v357_v7, %v356_v2  ;;  %v359_v16 = vld [vmem:[%s9518_s29 + $0x78] sm:$0xff]  ;;  %v9668_v21 = vpack.c.bf16 %v375_v6, %v374_v5  ;;  %v397_v25 = vld [vmem:[%s9518_s29 + $0x1a8] sm:$0x3f] }
  0x24   : > { %986 = vmatprep.mubr.bf16.mxu0 %v8970_v9  ;;  %v394_v13 = vld [vmem:[%s9518_s29 + $0x190] sm:$0xff]  ;;  %v395_v19 = vld [vmem:[%s9518_s29 + $0x198] sm:$0xff]  ;;  %v396_v22 = vld [vmem:[%s9518_s29 + $0x1a0] sm:$0xff] }
  0x25   : > { %v358_v15 = vld [vmem:[%s9518_s29 + $0x70] sm:$0xff]  ;;  %v8973_v20 = vld [vmem:[%s12509_s1 + $0x20c] ss:$16 sps:$4 sm:$0xff]   ;;  %v9675_v26 = vpack.c.bf16 %v395_v19, %v394_v13  ;;  %v9683_v28 = vpack.c.bf16 %v397_v25, %v396_v22  ;;  %v8979_v22 = vld [vmem:[%s12509_s1 + $0x228] ss:$16 sps:$4 sm:$0xff]  }
  0x26   : > { %841 = vrot.lane.b32.xlu0 %v9570_v29, %s9457_s30  ;;  %6706 = vmatprep.mubr.msk.bf16.mxu1 %vm901_vm0, %v8973_v20  ;;  %v9679_v27 = vpack.c.bf16 %v359_v16, %v358_v15  ;;  %v8968_v6 = vld [vmem:[%s12509_s1 + $0x200] ss:$16 sps:$4 sm:$0xff]   ;;  %v8974_v7 = vld [vmem:[%s12509_s1 + $0x224] ss:$16 sps:$4 sm:$0xff]   ;;  %v8971_v15 = vld [vmem:[%s12509_s1 + $0x208] ss:$16 sps:$4 sm:$0xff]  }
  0x27   : > { %861 = vrot.lane.b32.xlu1 %v9574_v30, %s9457_s30  ;;  %v8977_v16 = vld [vmem:[%s12509_s1 + $0x22c] ss:$16 sps:$4 sm:$0xff]   ;;  %v8976_v19 = vld [vmem:[%s12509_s1 + $0x220] ss:$16 sps:$4 sm:$0xff]   ;;  %v8980_v20 = vld [vmem:[%s12509_s1 + $0x244] ss:$16 sps:$4 sm:$0xff]  }
  0x28   : > { %v8983_v25 = vld [vmem:[%s12509_s1 + $0x24c] ss:$16 sps:$4 sm:$0xff]  }
  0x2a   : > { %825 = vrot.lane.b32.xlu0 %v9584_v37, %s9457_s30 }
  0x2b   : > { %843 = vrot.lane.b32.xlu1 %v9590_v40, %s9457_s30 }
  0x2e   : > { %863 = vrot.lane.b32.xlu0 %v9596_v43, %s9457_s30 }
  0x2f   : > { %827 = vrot.lane.b32.xlu1 %v9602_v46, %s9457_s30 }
  0x32   : > { %845 = vrot.lane.b32.xlu0 %v9608_v49, %s9457_s30 }
  0x33   : > { %865 = vrot.lane.b32.xlu1 %v9614_v52, %s9457_s30 }
  0x36   : > { %829 = vrot.lane.b32.xlu0 %v9620_v55, %s9457_s30 }
  0x37   : > { %847 = vrot.lane.b32.xlu1 %v9626_v58, %s9457_s30 }
  0x3a   : > { %867 = vrot.lane.b32.xlu0 %v9632_v61, %s9457_s30 }
  0x3b   : > { %831 = vrot.lane.b32.xlu1 %v9638_v1, %s9457_s30 }
  0x3e   : > { %849 = vrot.lane.b32.xlu0 %v9643_v3, %s9457_s30 }
  0x3f   : > { %869 = vrot.lane.b32.xlu1 %v9653_v10, %s9457_s30 }
  0x42   : > { %833 = vrot.lane.b32.xlu0 %v9658_v14, %s9457_s30 }
  0x43   : > { %851 = vrot.lane.b32.xlu1 %v9668_v21, %s9457_s30 }
  0x46   : > { %871 = vrot.lane.b32.xlu0 %v9675_v26, %s9457_s30 }
  0x47   : > { %835 = vrot.lane.b32.xlu1 %v9679_v27, %s9457_s30 }
  0x4a   : > { %873 = vrot.lane.b32.xlu0 %v9683_v28, %s9457_s30 }
  0x4b   : > { %2354 = vrot.lane.b32.xlu1 %v9523_v4, %s9458_s12 }
  0x4e   : > { %2356 = vrot.lane.b32.xlu0 %v9534_v11, %s9458_s12 }
  0x4f   : > { %2338 = vrot.lane.b32.xlu1 %v9528_v8, %s9458_s12 }
  0x52   : > { %2358 = vrot.lane.b32.xlu0 %v9538_v12, %s9458_s12 }
  0x53   : > { %2322 = vrot.lane.b32.xlu1 %v9546_v17, %s9458_s12 }
  0x56   : > { %2340 = vrot.lane.b32.xlu0 %v9550_v18, %s9458_s12 }
  0x57   : > { %2360 = vrot.lane.b32.xlu1 %v9558_v23, %s9458_s12 }
  0x5a   : > { %2324 = vrot.lane.b32.xlu0 %v9562_v24, %s9458_s12 }
  0x5b   : > { %2342 = vrot.lane.b32.xlu1 %v9570_v29, %s9458_s12 }
  0x5e   : > { %2362 = vrot.lane.b32.xlu0 %v9574_v30, %s9458_s12 }
  0x5f   : > { %2326 = vrot.lane.b32.xlu1 %v9584_v37, %s9458_s12 }
  0x62   : > { %2344 = vrot.lane.b32.xlu0 %v9590_v40, %s9458_s12 }
  0x63   : > { %2364 = vrot.lane.b32.xlu1 %v9596_v43, %s9458_s12 }
  0x66   : > { %2328 = vrot.lane.b32.xlu0 %v9602_v46, %s9458_s12 }
  0x67   : > { %2346 = vrot.lane.b32.xlu1 %v9608_v49, %s9458_s12 }
  0x6a   : > { %2366 = vrot.lane.b32.xlu0 %v9614_v52, %s9458_s12 }
  0x6b   : > { %2330 = vrot.lane.b32.xlu1 %v9620_v55, %s9458_s12 }
  0x6e   : > { %2348 = vrot.lane.b32.xlu0 %v9626_v58, %s9458_s12 }
  0x6f   : > { %2368 = vrot.lane.b32.xlu1 %v9632_v61, %s9458_s12 }
  0x72   : > { %2332 = vrot.lane.b32.xlu0 %v9638_v1, %s9458_s12 }
  0x73   : > { %2350 = vrot.lane.b32.xlu1 %v9643_v3, %s9458_s12 }
  0x76   : > { %2370 = vrot.lane.b32.xlu0 %v9653_v10, %s9458_s12 }
  0x77   : > { %2334 = vrot.lane.b32.xlu1 %v9658_v14, %s9458_s12 }
  0x7a   : > { %2352 = vrot.lane.b32.xlu0 %v9668_v21, %s9458_s12 }
  0x7b   : > { %2372 = vrot.lane.b32.xlu1 %v9675_v26, %s9458_s12 }
  0x7e   : > { %2336 = vrot.lane.b32.xlu0 %v9679_v27, %s9458_s12 }
  0x7f   : > { %2374 = vrot.lane.b32.xlu1 %v9683_v28, %s9458_s12 }
  0x82   : > { %3208 = vrot.lane.b32.xlu0 %v9523_v4, %s9459_s17 }
  0x83   : > { %3210 = vrot.lane.b32.xlu1 %v9534_v11, %s9459_s17 }
  0x86   : > { %3192 = vrot.lane.b32.xlu0 %v9528_v8, %s9459_s17 }
  0x87   : > { %3212 = vrot.lane.b32.xlu1 %v9538_v12, %s9459_s17 }
  0x88   : > { %v854_v31 = vpop.permute.xlu0 %853 }
  0x89   : > { %v838_v32 = vpop.permute.xlu1 %837  ;;  %1116 = vmatpush1.bf16.msra.mxu1 %v854_v31  ;;  %v8982_v31 = vld [vmem:[%s12509_s1 + $0x240] ss:$16 sps:$4 sm:$0xff]  }
  0x8a   : > { %7319 = vmatprep.subr.bf16.mxu0 %v838_v32  ;;  %1117 = vmatprep.subr.bf16.mxu1 %v9456_v0  ;;  %v8986_v32 = vld [vmem:[%s12509_s1 + $0x264] ss:$16 sps:$4 sm:$0xff]  }
  0x8b   : > { %3176 = vrot.lane.b32.xlu0 %v9546_v17, %s9459_s17  ;;  %3194 = vrot.lane.b32.xlu1 %v9550_v18, %s9459_s17 }
  0x8c   : > { %v856_v33 = vpop.permute.xlu0 %855 }
  0x8d   : > { %v858_v34 = vpop.permute.xlu1 %857  ;;  %1118 = vmatpush1.bf16.msra.mxu1 %v856_v33  ;;  %v8985_v33 = vld [vmem:[%s12509_s1 + $0x248] ss:$16 sps:$4 sm:$0xff]  }
  0x8e   : > { %1119 = vmatprep.subr.bf16.mxu1 %v9456_v0 }
  0x8f   : > { %3214 = vrot.lane.b32.xlu0 %v9558_v23, %s9459_s17  ;;  %3178 = vrot.lane.b32.xlu1 %v9562_v24, %s9459_s17 }
  0x90   : > { %v822_v35 = vpop.permute.xlu0 %821 }
  0x91   : > { %v840_v36 = vpop.permute.xlu1 %839  ;;  %7320 = vmatpush3.bf16.msra.mxu0 %v822_v35  ;;  %1120 = vmatpush1.bf16.msra.mxu1 %v858_v34  ;;  %v8989_v34 = vld [vmem:[%s12509_s1 + $0x26c] ss:$16 sps:$4 sm:$0xff]   ;;  %v8988_v35 = vld [vmem:[%s12509_s1 + $0x260] ss:$16 sps:$4 sm:$0xff]  }
  0x92   : > { %7321 = vmatprep.subr.bf16.mxu0 %v840_v36  ;;  %1121 = vmatprep.subr.bf16.mxu1 %v9456_v0  ;;  %v8992_v36 = vld [vmem:[%s12509_s1 + $0x284] ss:$16 sps:$4 sm:$0xff]  }
  0x93   : > { %3196 = vrot.lane.b32.xlu0 %v9570_v29, %s9459_s17  ;;  %3216 = vrot.lane.b32.xlu1 %v9574_v30, %s9459_s17 }
  0x94   : > { %v860_v38 = vpop.permute.xlu0 %859 }
  0x95   : > { %v824_v39 = vpop.permute.xlu1 %823  ;;  %1122 = vmatpush1.bf16.msra.mxu1 %v860_v38  ;;  %v8991_v38 = vld [vmem:[%s12509_s1 + $0x268] ss:$16 sps:$4 sm:$0xff]  }
  0x96   : > { %7322 = vmatpush3.bf16.msra.mxu0 %v824_v39  ;;  %1123 = vmatprep.subr.bf16.mxu1 %v9456_v0  ;;  %v8995_v39 = vld [vmem:[%s12509_s1 + $0x28c] ss:$16 sps:$4 sm:$0xff]  }
  0x97   : > { %3180 = vrot.lane.b32.xlu0 %v9584_v37, %s9459_s17  ;;  %3198 = vrot.lane.b32.xlu1 %v9590_v40, %s9459_s17 }
  0x98   : > { %v842_v41 = vpop.permute.xlu0 %841 }
  0x99   : > { %v862_v42 = vpop.permute.xlu1 %861  ;;  %7323 = vmatprep.subr.bf16.mxu0 %v842_v41  ;;  %v8994_v41 = vld [vmem:[%s12509_s1 + $0x280] ss:$16 sps:$4 sm:$0xff]  }
  0x9a   : > { %1124 = vmatpush1.bf16.msra.mxu1 %v862_v42  ;;  %v8998_v42 = vld [vmem:[%s12509_s1 + $0x2a4] ss:$16 sps:$4 sm:$0xff]  }
  0x9b   : > { %1125 = vmatprep.subr.bf16.mxu1 %v9456_v0  ;;  %3218 = vrot.lane.b32.xlu0 %v9596_v43, %s9459_s17 }
  0x9c   : > { %v826_v44 = vpop.permute.xlu0 %825  ;;  %3182 = vrot.lane.b32.xlu1 %v9602_v46, %s9459_s17 }
  0x9d   : > { %v844_v45 = vpop.permute.xlu1 %843  ;;  %7324 = vmatpush3.bf16.msra.mxu0 %v826_v44  ;;  %v8997_v44 = vld [vmem:[%s12509_s1 + $0x288] ss:$16 sps:$4 sm:$0xff]  }
  0x9e   : > { %7325 = vmatprep.subr.bf16.mxu0 %v844_v45  ;;  %v9001_v45 = vld [vmem:[%s12509_s1 + $0x2ac] ss:$16 sps:$4 sm:$0xff]  }
  0x9f   : > { %3200 = vrot.lane.b32.xlu0 %v9608_v49, %s9459_s17 }
  0xa0   : > { %v864_v47 = vpop.permute.xlu0 %863  ;;  %3220 = vrot.lane.b32.xlu1 %v9614_v52, %s9459_s17 }
  0xa1   : > { %v828_v48 = vpop.permute.xlu1 %827  ;;  %1126 = vmatpush1.bf16.msra.mxu1 %v864_v47  ;;  %v9000_v47 = vld [vmem:[%s12509_s1 + $0x2a0] ss:$16 sps:$4 sm:$0xff]  }
  0xa2   : > { %7326 = vmatpush3.bf16.msra.mxu0 %v828_v48  ;;  %1127 = vmatprep.subr.bf16.mxu1 %v9456_v0  ;;  %v9004_v48 = vld [vmem:[%s12509_s1 + $0x2c4] ss:$16 sps:$4 sm:$0xff]  }
  0xa3   : > { %3184 = vrot.lane.b32.xlu0 %v9620_v55, %s9459_s17 }
  0xa4   : > { %v846_v50 = vpop.permute.xlu0 %845  ;;  %3202 = vrot.lane.b32.xlu1 %v9626_v58, %s9459_s17 }
  0xa5   : > { %v866_v51 = vpop.permute.xlu1 %865  ;;  %7327 = vmatprep.subr.bf16.mxu0 %v846_v50  ;;  %v9003_v50 = vld [vmem:[%s12509_s1 + $0x2a8] ss:$16 sps:$4 sm:$0xff]  }
  0xa6   : > { %1128 = vmatpush1.bf16.msra.mxu1 %v866_v51  ;;  %v9007_v51 = vld [vmem:[%s12509_s1 + $0x2cc] ss:$16 sps:$4 sm:$0xff]  }
  0xa7   : > { %1129 = vmatprep.subr.bf16.mxu1 %v9456_v0  ;;  %3222 = vrot.lane.b32.xlu0 %v9632_v61, %s9459_s17 }
  0xa8   : > { %v830_v53 = vpop.permute.xlu0 %829  ;;  %3186 = vrot.lane.b32.xlu1 %v9638_v1, %s9459_s17 }
  0xa9   : > { %v848_v54 = vpop.permute.xlu1 %847  ;;  %7328 = vmatpush3.bf16.msra.mxu0 %v830_v53  ;;  %v1629_v53 = vsel %vm950_vm1, %v9683_v28, 0 }
  0xaa   : > { %7329 = vmatprep.subr.bf16.mxu0 %v848_v54  ;;  %v9006_v54 = vld [vmem:[%s12509_s1 + $0x2c0] ss:$16 sps:$4 sm:$0xff]  }
  0xab   : > { %3204 = vrot.lane.b32.xlu0 %v9643_v3, %s9459_s17 }
  0xac   : > { %v868_v56 = vpop.permute.xlu0 %867  ;;  %3224 = vrot.lane.b32.xlu1 %v9653_v10, %s9459_s17 }
  0xad   : > { %v832_v57 = vpop.permute.xlu1 %831  ;;  %1130 = vmatpush1.bf16.msra.mxu1 %v868_v56  ;;  %v9010_v56 = vld [vmem:[%s12509_s1 + $0x2e4] ss:$16 sps:$4 sm:$0xff]  }
  0xae   : > { %7330 = vmatpush3.bf16.msra.mxu0 %v832_v57  ;;  %1131 = vmatprep.subr.bf16.mxu1 %v9456_v0  ;;  %v9009_v57 = vld [vmem:[%s12509_s1 + $0x2c8] ss:$16 sps:$4 sm:$0xff]  }
  0xaf   : > { %3188 = vrot.lane.b32.xlu0 %v9658_v14, %s9459_s17 }
  0xb0   : > { %v850_v59 = vpop.permute.xlu0 %849  ;;  %3206 = vrot.lane.b32.xlu1 %v9668_v21, %s9459_s17 }
  0xb1   : > { %v870_v60 = vpop.permute.xlu1 %869  ;;  %7331 = vmatprep.subr.bf16.mxu0 %v850_v59  ;;  %v9013_v59 = vld [vmem:[%s12509_s1 + $0x2ec] ss:$16 sps:$4 sm:$0xff]  }
  0xb2   : > { %1132 = vmatpush1.bf16.msra.mxu1 %v870_v60  ;;  %v9012_v60 = vld [vmem:[%s12509_s1 + $0x2e0] ss:$16 sps:$4 sm:$0xff]  }
  0xb3   : > { %1133 = vmatprep.subr.bf16.mxu1 %v9456_v0  ;;  %3226 = vrot.lane.b32.xlu0 %v9675_v26, %s9459_s17 }
  0xb4   : > { %v834_v62 = vpop.permute.xlu0 %833  ;;  %3190 = vrot.lane.b32.xlu1 %v9679_v27, %s9459_s17 }
  0xb5   : > { %v852_v63 = vpop.permute.xlu1 %851  ;;  %7332 = vmatpush3.bf16.msra.mxu0 %v834_v62  ;;  %v9016_v62 = vld [vmem:[%s12509_s1 + $0x304] ss:$16 sps:$4 sm:$0xff]  }
  0xb6   : > { %7333 = vmatprep.subr.bf16.mxu0 %v852_v63  ;;  %v9015_v63 = vld [vmem:[%s12509_s1 + $0x2e8] ss:$16 sps:$4 sm:$0xff]  }
  0xb7   : > { %3228 = vrot.lane.b32.xlu0 %v9683_v28, %s9459_s17 }
  0xb8   : > { %v872_v2 = vpop.permute.xlu0 %871  ;;  %4062 = vrot.lane.b32.xlu1 %v9523_v4, %s9460_s22 }
  0xb9   : > { %v836_v5 = vpop.permute.xlu1 %835  ;;  %1134 = vmatpush1.bf16.msra.mxu1 %v872_v2  ;;  %v9019_v2 = vld [vmem:[%s12509_s1 + $0x30c] ss:$16 sps:$4 sm:$0xff]  }
  0xba   : > { %7334 = vmatpush3.bf16.msra.mxu0 %v836_v5  ;;  %1135 = vmatprep.subr.bf16.mxu1 %v9456_v0  ;;  %v9018_v5 = vld [vmem:[%s12509_s1 + $0x300] ss:$16 sps:$4 sm:$0xff]  }
  0xbb   : > { %7431 = vmatprep.subr.bf16.mxu0 %v9528_v8  ;;  %4064 = vrot.lane.b32.xlu0 %v9534_v11, %s9460_s22 }
  0xbc   : > { %v874_v9 = vpop.permute.xlu0 %873  ;;  %4046 = vrot.lane.b32.xlu1 %v9528_v8, %s9460_s22 }
  0xbd   : > { %987 = vmatmul.mubr.bf16.vlgmr.msra.gmra.mrb[0].mxu0 %v8968_v6  ;;  %v952_v13 = vsel %vm950_vm1, %v874_v9, 0  ;;  %v9900_v6 = vpop.permute.xlu1 %2354  ;;  %v9021_v9 = vld [vmem:[%s12509_s1 + $0x308] ss:$16 sps:$4 sm:$0xff]  }
  0xbe   : > { %1136 = vmatpush1.bf16.msra.mxu1 %v952_v13  ;;  %994 = vmatprep.mubr.bf16.mxu0 %v8974_v7  ;;  %v9022_v7 = vld [vmem:[%s12509_s1 + $0x324] ss:$16 sps:$4 sm:$0xff]  }
  0xbf   : > { %7432 = vmatpush3.bf16.msra.mxu0 %v9546_v17  ;;  %1792 = vmatprep.subr.bf16.mxu1 %v9456_v0 }
  0xc0   : > { %7433 = vmatprep.subr.bf16.mxu0 %v9550_v18  ;;  %4066 = vrot.lane.b32.xlu0 %v9538_v12, %s9460_s22 }
  0xc1   : > { %1148 = vmatmul.mubr.bf16.vlgmr.msra.gmra.mrb[0].mxu1 %v8971_v15  ;;  %v2339_v13 = vpop.permute.xlu1 %2338  ;;  %v9025_v15 = vld [vmem:[%s12509_s1 + $0x32c] ss:$16 sps:$4 sm:$0xff]   ;;  %4030 = vrot.lane.b32.xlu1 %v9546_v17, %s9460_s22  ;;  %v9135_v17 = vld [vmem:[%s12509_s1 + $0x168] ss:$16 sps:$4 sm:$0xff]  }
  0xc2   : > { %6707 = vmatprep.mubr.msk.bf16.mxu1 %vm901_vm0, %v8977_v16  ;;  %1793 = vmatpush1.bf16.msra.mxu1 %v9523_v4  ;;  %v9024_v16 = vld [vmem:[%s12509_s1 + $0x320] ss:$16 sps:$4 sm:$0xff]   ;;  %v9133_v4 = vld [vmem:[%s12509_s1 + $0x16c] ss:$16 sps:$4 sm:$0xff]  }
  0xc3   : > { %1794 = vmatprep.subr.bf16.mxu1 %v9456_v0  ;;  %7434 = vmatpush3.bf16.msra.mxu0 %v9562_v24 }
  0xc4   : > { %7435 = vmatprep.subr.bf16.mxu0 %v9570_v29  ;;  %4048 = vrot.lane.b32.xlu0 %v9550_v18, %s9460_s22  ;;  %v9139_v18 = vld [vmem:[%s12509_s1 + $0x18c] ss:$16 sps:$4 sm:$0xff]  }
  0xc5   : > { %995 = vmatmul.mubr.bf16.gmra.mrb[4].mxu0 %v8976_v19  ;;  %v9028_v19 = vld [vmem:[%s12509_s1 + $0x344] ss:$16 sps:$4 sm:$0xff]   ;;  %4068 = vrot.lane.b32.xlu1 %v9558_v23, %s9460_s22 }
  0xc6   : > { %1002 = vmatprep.mubr.bf16.mxu0 %v8980_v20  ;;  %1795 = vmatpush1.bf16.msra.mxu1 %v9534_v11  ;;  %v9027_v20 = vld [vmem:[%s12509_s1 + $0x328] ss:$16 sps:$4 sm:$0xff]  }
  0xc7   : > { %1796 = vmatprep.subr.bf16.mxu1 %v9456_v0  ;;  %7436 = vmatpush3.bf16.msra.mxu0 %v9584_v37 }
  0xc8   : > { %7437 = vmatprep.subr.bf16.mxu0 %v9590_v40  ;;  %4032 = vrot.lane.b32.xlu0 %v9562_v24, %s9460_s22  ;;  %v9142_v24 = vld [vmem:[%s12509_s1 + $0x1a4] ss:$16 sps:$4 sm:$0xff]  }
  0xc9   : > { %1156 = vmatmul.mubr.bf16.gmra.mrb[4].mxu1 %v8979_v22  ;;  %v9031_v22 = vld [vmem:[%s12509_s1 + $0x34c] ss:$16 sps:$4 sm:$0xff]   ;;  %4050 = vrot.lane.b32.xlu1 %v9570_v29, %s9460_s22 }
  0xca   : > { %6708 = vmatprep.mubr.msk.bf16.mxu1 %vm901_vm0, %v8983_v25  ;;  %1797 = vmatpush1.bf16.msra.mxu1 %v9538_v12  ;;  %v9030_v25 = vld [vmem:[%s12509_s1 + $0x340] ss:$16 sps:$4 sm:$0xff]   ;;  %v9136_v12 = vld [vmem:[%s12509_s1 + $0x184] ss:$16 sps:$4 sm:$0xff]  }
  0xcb   : > { %1798 = vmatprep.subr.bf16.mxu1 %v9456_v0  ;;  %7438 = vmatpush3.bf16.msra.mxu0 %v9602_v46 }
  0xcc   : > { %7439 = vmatprep.subr.bf16.mxu0 %v9608_v49  ;;  %4070 = vrot.lane.b32.xlu0 %v9574_v30, %s9460_s22 }
  0xcd   : > { %1003 = vmatmul.mubr.bf16.gmra.mrb[8].mxu0 %v8982_v31  ;;  %v9034_v31 = vld [vmem:[%s12509_s1 + $0x364] ss:$16 sps:$4 sm:$0xff]   ;;  %4034 = vrot.lane.b32.xlu1 %v9584_v37, %s9460_s22  ;;  %v9144_v37 = vld [vmem:[%s12509_s1 + $0x1a0] ss:$16 sps:$4 sm:$0xff]  }
  0xce   : > { %1010 = vmatprep.mubr.bf16.mxu0 %v8986_v32  ;;  %1799 = vmatpush1.bf16.msra.mxu1 %v9558_v23  ;;  %v9033_v32 = vld [vmem:[%s12509_s1 + $0x348] ss:$16 sps:$4 sm:$0xff]   ;;  %v9138_v23 = vld [vmem:[%s12509_s1 + $0x180] ss:$16 sps:$4 sm:$0xff]  }
  0xcf   : > { %1800 = vmatprep.subr.bf16.mxu1 %v9456_v0  ;;  %7440 = vmatpush3.bf16.msra.mxu0 %v9620_v55 }
  0xd0   : > { %7441 = vmatprep.subr.bf16.mxu0 %v9626_v58  ;;  %4052 = vrot.lane.b32.xlu0 %v9590_v40, %s9460_s22  ;;  %v9148_v40 = vld [vmem:[%s12509_s1 + $0x1c4] ss:$16 sps:$4 sm:$0xff]  }
  0xd1   : > { %1164 = vmatmul.mubr.bf16.gmra.mrb[8].mxu1 %v8985_v33  ;;  %v9037_v33 = vld [vmem:[%s12509_s1 + $0x36c] ss:$16 sps:$4 sm:$0xff]   ;;  %4072 = vrot.lane.b32.xlu1 %v9596_v43, %s9460_s22 }
  0xd2   : > { %6709 = vmatprep.mubr.msk.bf16.mxu1 %vm901_vm0, %v8989_v34  ;;  %1801 = vmatpush1.bf16.msra.mxu1 %v9574_v30  ;;  %v9950_v34 = vpop.permute.xlu0 %2356  ;;  %v9145_v30 = vld [vmem:[%s12509_s1 + $0x1ac] ss:$16 sps:$4 sm:$0xff]  }
  0xd3   : > { %1802 = vmatprep.subr.bf16.mxu1 %v9456_v0  ;;  %7442 = vmatpush3.bf16.msra.mxu0 %v9638_v1 }
  0xd4   : > { %7443 = vmatprep.subr.bf16.mxu0 %v9643_v3  ;;  %4036 = vrot.lane.b32.xlu0 %v9602_v46, %s9460_s22  ;;  %v9151_v46 = vld [vmem:[%s12509_s1 + $0x1cc] ss:$16 sps:$4 sm:$0xff]  }
  0xd5   : > { %1011 = vmatmul.mubr.bf16.gmra.mrb[12].mxu0 %v8988_v35  ;;  %v9036_v35 = vld [vmem:[%s12509_s1 + $0x360] ss:$16 sps:$4 sm:$0xff]   ;;  %4054 = vrot.lane.b32.xlu1 %v9608_v49, %s9460_s22 }
  0xd6   : > { %1018 = vmatprep.mubr.bf16.mxu0 %v8992_v36  ;;  %1803 = vmatpush1.bf16.msra.mxu1 %v9596_v43  ;;  %v9040_v36 = vld [vmem:[%s12509_s1 + $0x384] ss:$16 sps:$4 sm:$0xff]   ;;  %v9150_v49 = vld [vmem:[%s12509_s1 + $0x1c0] ss:$16 sps:$4 sm:$0xff]  }
  0xd7   : > { %1804 = vmatprep.subr.bf16.mxu1 %v9456_v0  ;;  %7444 = vmatpush3.bf16.msra.mxu0 %v9658_v14 }
  0xd8   : > { %7445 = vmatprep.subr.bf16.mxu0 %v9668_v21  ;;  %4074 = vrot.lane.b32.xlu0 %v9614_v52, %s9460_s22 }
  0xd9   : > { %1172 = vmatmul.mubr.bf16.gmra.mrb[12].mxu1 %v8991_v38  ;;  %v9039_v38 = vld [vmem:[%s12509_s1 + $0x368] ss:$16 sps:$4 sm:$0xff]   ;;  %4038 = vrot.lane.b32.xlu1 %v9620_v55, %s9460_s22 }
  0xda   : > { %6710 = vmatprep.mubr.msk.bf16.mxu1 %vm901_vm0, %v8995_v39  ;;  %1805 = vmatpush1.bf16.msra.mxu1 %v9614_v52  ;;  %v9043_v39 = vld [vmem:[%s12509_s1 + $0x38c] ss:$16 sps:$4 sm:$0xff]   ;;  %v9154_v52 = vld [vmem:[%s12509_s1 + $0x1e4] ss:$16 sps:$4 sm:$0xff]  }
  0xdb   : > { %1806 = vmatprep.subr.bf16.mxu1 %v9456_v0  ;;  %7446 = vmatpush3.bf16.msra.mxu0 %v9679_v27 }
  0xdc   : > { %7543 = vmatprep.subr.bf16.mxu0 %v2339_v13  ;;  %4056 = vrot.lane.b32.xlu0 %v9626_v58, %s9460_s22  ;;  %v9157_v58 = vld [vmem:[%s12509_s1 + $0x1ec] ss:$16 sps:$4 sm:$0xff]  }
  0xdd   : > { %1019 = vmatmul.mubr.bf16.gmra.mrb[16].mxu0 %v8994_v41  ;;  %v9969_v41 = vpop.permute.xlu0 %2358  ;;  %4076 = vrot.lane.b32.xlu1 %v9632_v61, %s9460_s22 }
  0xde   : > { %1026 = vmatprep.mubr.bf16.mxu0 %v8998_v42  ;;  %1807 = vmatpush1.bf16.msra.mxu1 %v9632_v61  ;;  %v9042_v42 = vld [vmem:[%s12509_s1 + $0x380] ss:$16 sps:$4 sm:$0xff]  }
  0xdf   : > { %1808 = vmatprep.subr.bf16.mxu1 %v9456_v0  ;;  %v9156_v61 = vld [vmem:[%s12509_s1 + $0x1e0] ss:$16 sps:$4 sm:$0xff]  }
  0xe0   : > { %4040 = vrot.lane.b32.xlu0 %v9638_v1, %s9460_s22  ;;  %v9162_v1 = vld [vmem:[%s12509_s1 + $0x404] ss:$16 sps:$4 sm:$0xff]  }
  0xe1   : > { %1180 = vmatmul.mubr.bf16.gmra.mrb[16].mxu1 %v8997_v44  ;;  %v9046_v44 = vld [vmem:[%s12509_s1 + $0x3a4] ss:$16 sps:$4 sm:$0xff]   ;;  %4058 = vrot.lane.b32.xlu1 %v9643_v3, %s9460_s22 }
  0xe2   : > { %6711 = vmatprep.mubr.msk.bf16.mxu1 %vm901_vm0, %v9001_v45  ;;  %1809 = vmatpush1.bf16.msra.mxu1 %v9653_v10  ;;  %v9986_v45 = vpop.permute.xlu0 %2340 }
  0xe3   : > { %1810 = vmatprep.subr.bf16.mxu1 %v9456_v0 }
  0xe4   : > { %4078 = vrot.lane.b32.xlu0 %v9653_v10, %s9460_s22  ;;  %v9165_v10 = vld [vmem:[%s12509_s1 + $0x40c] ss:$16 sps:$4 sm:$0xff]  }
  0xe5   : > { %1027 = vmatmul.mubr.bf16.gmra.mrb[20].mxu0 %v9000_v47  ;;  %v9045_v47 = vld [vmem:[%s12509_s1 + $0x388] ss:$16 sps:$4 sm:$0xff]   ;;  %4042 = vrot.lane.b32.xlu1 %v9658_v14, %s9460_s22  ;;  %v9160_v14 = vld [vmem:[%s12509_s1 + $0x400] ss:$16 sps:$4 sm:$0xff]  }
  0xe6   : > { %1034 = vmatprep.mubr.bf16.mxu0 %v9004_v48  ;;  %1811 = vmatpush1.bf16.msra.mxu1 %v9675_v26  ;;  %v9049_v48 = vld [vmem:[%s12509_s1 + $0x3ac] ss:$16 sps:$4 sm:$0xff]  }
  0xe7   : > { %1812 = vmatprep.subr.bf16.mxu1 %v9456_v0 }
  0xe8   : > { %4060 = vrot.lane.b32.xlu0 %v9668_v21, %s9460_s22  ;;  %v9166_v21 = vld [vmem:[%s12509_s1 + $0x424] ss:$16 sps:$4 sm:$0xff]  }
  0xe9   : > { %1188 = vmatmul.mubr.bf16.gmra.mrb[20].mxu1 %v9003_v50  ;;  %v2323_v50 = vpop.permute.xlu1 %2322  ;;  %4080 = vrot.lane.b32.xlu1 %v9675_v26, %s9460_s22 }
  0xea   : > { %6712 = vmatprep.mubr.msk.bf16.mxu1 %vm901_vm0, %v9007_v51  ;;  %1813 = vmatpush1.bf16.msra.mxu1 %v1629_v53  ;;  %v9048_v51 = vld [vmem:[%s12509_s1 + $0x3a0] ss:$16 sps:$4 sm:$0xff]   ;;  %v9052_v53 = vld [vmem:[%s12509_s1 + $0x3c4] ss:$16 sps:$4 sm:$0xff]  }
  0xeb   : > { %2614 = vmatprep.subr.bf16.mxu1 %v9456_v0 }
  0xec   : > { %4044 = vrot.lane.b32.xlu0 %v9679_v27, %s9460_s22  ;;  %v9169_v27 = vld [vmem:[%s12509_s1 + $0x42c] ss:$16 sps:$4 sm:$0xff]  }
  0xed   : > { %1035 = vmatmul.mubr.bf16.gmra.mrb[24].mxu0 %v9006_v54  ;;  %v2325_v54 = vpop.permute.xlu0 %2324  ;;  %4082 = vrot.lane.b32.xlu1 %v9683_v28, %s9460_s22  ;;  %v9168_v28 = vld [vmem:[%s12509_s1 + $0x420] ss:$16 sps:$4 sm:$0xff]  }
  0xee   : > { %1042 = vmatprep.mubr.bf16.mxu0 %v9010_v56  ;;  %v10009_v56 = vpop.permute.xlu1 %2360 }
  0xf1   : > { %1196 = vmatmul.mubr.bf16.gmra.mrb[24].mxu1 %v9009_v57  ;;  %v9051_v57 = vld [vmem:[%s12509_s1 + $0x3a8] ss:$16 sps:$4 sm:$0xff]  }
  0xf2   : > { %6713 = vmatprep.mubr.msk.bf16.mxu1 %vm901_vm0, %v9013_v59  ;;  %v9055_v59 = vld [vmem:[%s12509_s1 + $0x3cc] ss:$16 sps:$4 sm:$0xff]  }
  0xf5   : > { %1043 = vmatmul.mubr.bf16.gmra.mrb[28].mxu0 %v9012_v60  ;;  %v10021_v60 = vpop.permute.xlu0 %2362 }
  0xf6   : > { %1050 = vmatprep.mubr.bf16.mxu0 %v9016_v62  ;;  %v9054_v62 = vld [vmem:[%s12509_s1 + $0x3c0] ss:$16 sps:$4 sm:$0xff]  }
  0xf9   : > { %1204 = vmatmul.mubr.bf16.gmra.mrb[28].mxu1 %v9015_v63  ;;  %v9058_v63 = vld [vmem:[%s12509_s1 + $0x3e4] ss:$16 sps:$4 sm:$0xff]  }
  0xfa   : > { %6714 = vmatprep.mubr.msk.bf16.mxu1 %vm901_vm0, %v9019_v2  ;;  %v2343_v2 = vpop.permute.xlu1 %2342 }
  0xfd   : > { %1051 = vmatmul.mubr.bf16.gmra.mrb[32].mxu0 %v9018_v5  ;;  %v9057_v5 = vld [vmem:[%s12509_s1 + $0x3c8] ss:$16 sps:$4 sm:$0xff]  }
  0xfe   : > { %1058 = vmatprep.mubr.bf16.mxu0 %v9022_v7  ;;  %v9061_v7 = vld [vmem:[%s12509_s1 + $0x3ec] ss:$16 sps:$4 sm:$0xff]   ;;  %v2327_v13 = vpop.permute.xlu1 %2326 }
 0x101   : > { %1212 = vmatmul.mubr.bf16.gmra.mrb[32].mxu1 %v9021_v9  ;;  %v2345_v9 = vpop.permute.xlu0 %2344 }
 0x102   : > { %6715 = vmatprep.mubr.msk.bf16.mxu1 %vm901_vm0, %v9025_v15  ;;  %v9060_v15 = vld [vmem:[%s12509_s1 + $0x3e0] ss:$16 sps:$4 sm:$0xff]  }
 0x105   : > { %1059 = vmatmul.mubr.bf16.gmra.mrb[36].mxu0 %v9024_v16  ;;  %v9066_v16 = vld [vmem:[%s12509_s1 + $0x4] ss:$16 sps:$4 sm:$0xff]  }
 0x106   : > { %1066 = vmatprep.mubr.bf16.mxu0 %v9028_v19  ;;  %v2329_v19 = vpop.permute.xlu0 %2328 }
 0x109   : > { %1220 = vmatmul.mubr.bf16.gmra.mrb[36].mxu1 %v9027_v20  ;;  %v9063_v20 = vld [vmem:[%s12509_s1 + $0x3e8] ss:$16 sps:$4 sm:$0xff]  }
 0x10a   : > { %6716 = vmatprep.mubr.msk.bf16.mxu1 %vm901_vm0, %v9031_v22  ;;  %v9069_v22 = vld [vmem:[%s12509_s1 + $0xc] ss:$16 sps:$4 sm:$0xff]  }
 0x10d   : > { %1067 = vmatmul.mubr.bf16.gmra.mrb[40].mxu0 %v9030_v25  ;;  %v10061_v25 = vpop.permute.xlu1 %2364 }
 0x10e   : > { %1074 = vmatprep.mubr.bf16.mxu0 %v9034_v31  ;;  %v9064_v31 = vld [vmem:[%s12509_s1] ss:$16 sps:$4 sm:$0xff]  }
 0x111   : > { %1228 = vmatmul.mubr.bf16.gmra.mrb[40].mxu1 %v9033_v32  ;;  %v9070_v32 = vld [vmem:[%s12509_s1 + $0x24] ss:$16 sps:$4 sm:$0xff]  }
 0x112   : > { %6717 = vmatprep.mubr.msk.bf16.mxu1 %vm901_vm0, %v9037_v33  ;;  %v10074_v33 = vpop.permute.xlu0 %2366 }
 0x115   : > { %1075 = vmatmul.mubr.bf16.gmra.mrb[44].mxu0 %v9036_v35  ;;  %v2347_v35 = vpop.permute.xlu1 %2346 }
 0x116   : > { %1082 = vmatprep.mubr.bf16.mxu0 %v9040_v36  ;;  %v9067_v36 = vld [vmem:[%s12509_s1 + $0x8] ss:$16 sps:$4 sm:$0xff]  }
 0x119   : > { %1236 = vmatmul.mubr.bf16.gmra.mrb[44].mxu1 %v9039_v38  ;;  %v9073_v38 = vld [vmem:[%s12509_s1 + $0x2c] ss:$16 sps:$4 sm:$0xff]  }
 0x11a   : > { %6718 = vmatprep.mubr.msk.bf16.mxu1 %vm901_vm0, %v9043_v39  ;;  %v2349_v39 = vpop.permute.xlu0 %2348 }
 0x11d   : > { %1083 = vmatmul.mubr.bf16.gmra.mrb[48].mxu0 %v9042_v42  ;;  %v9072_v42 = vld [vmem:[%s12509_s1 + $0x20] ss:$16 sps:$4 sm:$0xff]  }
 0x11e   : > { %1090 = vmatprep.mubr.bf16.mxu0 %v9046_v44  ;;  %v9076_v44 = vld [vmem:[%s12509_s1 + $0x44] ss:$16 sps:$4 sm:$0xff]  }
 0x121   : > { %1244 = vmatmul.mubr.bf16.gmra.mrb[48].mxu1 %v9045_v47  ;;  %v2331_v47 = vpop.permute.xlu1 %2330 }
 0x122   : > { %6719 = vmatprep.mubr.msk.bf16.mxu1 %vm901_vm0, %v9049_v48  ;;  %v9079_v48 = vld [vmem:[%s12509_s1 + $0x4c] ss:$16 sps:$4 sm:$0xff]  }
 0x125   : > { %1091 = vmatmul.mubr.bf16.gmra.mrb[52].mxu0 %v9048_v51  ;;  %v9078_v51 = vld [vmem:[%s12509_s1 + $0x40] ss:$16 sps:$4 sm:$0xff]  }
 0x126   : > { %1098 = vmatprep.mubr.bf16.mxu0 %v9052_v53  ;;  %v9082_v53 = vld [vmem:[%s12509_s1 + $0x64] ss:$16 sps:$4 sm:$0xff]  }
 0x129   : > { %1252 = vmatmul.mubr.bf16.gmra.mrb[52].mxu1 %v9051_v57  ;;  %v9085_v57 = vld [vmem:[%s12509_s1 + $0x6c] ss:$16 sps:$4 sm:$0xff]  }
 0x12a   : > { %6720 = vmatprep.mubr.msk.bf16.mxu1 %vm901_vm0, %v9055_v59 }
 0x12d   : > { %1099 = vmatmul.mubr.bf16.gmra.mrb[56].mxu0 %v9054_v62  ;;  %v9088_v62 = vld [vmem:[%s12509_s1 + $0x84] ss:$16 sps:$4 sm:$0xff]  }
 0x12e   : > { %1106 = vmatprep.mubr.bf16.mxu0 %v9058_v63 }
 0x131   : > { %1260 = vmatmul.mubr.bf16.gmra.mrb[56].mxu1 %v9057_v5  ;;  %v9091_v5 = vld [vmem:[%s12509_s1 + $0x8c] ss:$16 sps:$4 sm:$0xff]  }
 0x132   : > { %6721 = vmatprep.mubr.msk.bf16.mxu1 %vm901_vm0, %v9061_v7  ;;  %v9090_v7 = vld [vmem:[%s12509_s1 + $0x80] ss:$16 sps:$4 sm:$0xff]  }
 0x135   : > { %1107 = vmatmul.mubr.bf16.gmra.mrb[60].mxu0 %v9060_v15  ;;  %v9097_v15 = vld [vmem:[%s12509_s1 + $0xac] ss:$16 sps:$4 sm:$0xff]  }
 0x136   : > { %1663 = vmatprep.mubr.bf16.mxu0 %v9066_v16 }
 0x139   : > { %1268 = vmatmul.mubr.bf16.gmra.mrb[60].mxu1 %v9063_v20  ;;  %v9100_v20 = vld [vmem:[%s12509_s1 + $0xc4] ss:$16 sps:$4 sm:$0xff]  }
 0x13a   : > { %6786 = vmatprep.mubr.msk.bf16.mxu1 %vm901_vm0, %v9069_v22 }
 0x13d   : > { %1664 = vmatmul.mubr.bf16.vlgmr.msra.gmra.mrb[64].mxu0 %v9064_v31  ;;  %v9103_v31 = vld [vmem:[%s12509_s1 + $0xcc] ss:$16 sps:$4 sm:$0xff]  }
 0x13e   : > { %1671 = vmatprep.mubr.bf16.mxu0 %v9070_v32  ;;  %7544 = vmatpush3.bf16.msra.mxu0 %v2323_v50  ;;  %v2333_v50 = vpop.permute.xlu0 %2332 }
 0x13f   : > { %7545 = vmatprep.subr.bf16.mxu0 %v9986_v45  ;;  %v9075_v45 = vld [vmem:[%s12509_s1 + $0x28] ss:$16 sps:$4 sm:$0xff]  }
 0x141   : > { %1825 = vmatmul.mubr.bf16.vlgmr.msra.gmra.mrb[64].mxu1 %v9067_v36  ;;  %v9105_v36 = vld [vmem:[%s12509_s1 + $0xc8] ss:$16 sps:$4 sm:$0xff]  }
 0x142   : > { %6787 = vmatprep.mubr.msk.bf16.mxu1 %vm901_vm0, %v9073_v38  ;;  %2615 = vmatpush1.bf16.msra.mxu1 %v9900_v6  ;;  %v2369_v6 = vpop.permute.xlu1 %2368  ;;  %v9109_v38 = vld [vmem:[%s12509_s1 + $0xec] ss:$16 sps:$4 sm:$0xff]  }
 0x143   : > { %2616 = vmatprep.subr.bf16.mxu1 %v9456_v0  ;;  %7546 = vmatpush3.bf16.msra.mxu0 %v2325_v54  ;;  %v9081_v54 = vld [vmem:[%s12509_s1 + $0x48] ss:$16 sps:$4 sm:$0xff]  }
 0x144   : > { %7547 = vmatprep.subr.bf16.mxu0 %v2343_v2  ;;  %v9087_v2 = vld [vmem:[%s12509_s1 + $0x68] ss:$16 sps:$4 sm:$0xff]  }
 0x145   : > { %1672 = vmatmul.mubr.bf16.gmra.mrb[68].mxu0 %v9072_v42  ;;  %v9112_v42 = vld [vmem:[%s12509_s1 + $0x104] ss:$16 sps:$4 sm:$0xff]  }
 0x146   : > { %1679 = vmatprep.mubr.bf16.mxu0 %v9076_v44  ;;  %2617 = vmatpush1.bf16.msra.mxu1 %v9950_v34  ;;  %v2371_v34 = vpop.permute.xlu0 %2370  ;;  %v2351_v59 = vpop.permute.xlu1 %2350  ;;  %v9111_v44 = vld [vmem:[%s12509_s1 + $0xe8] ss:$16 sps:$4 sm:$0xff]  }
 0x147   : > { %2618 = vmatprep.subr.bf16.mxu1 %v9456_v0  ;;  %7548 = vmatpush3.bf16.msra.mxu0 %v2327_v13  ;;  %v9093_v13 = vld [vmem:[%s12509_s1 + $0x88] ss:$16 sps:$4 sm:$0xff]  }
 0x148   : > { %7549 = vmatprep.subr.bf16.mxu0 %v2345_v9  ;;  %v9094_v9 = vld [vmem:[%s12509_s1 + $0xa4] ss:$16 sps:$4 sm:$0xff]  }
 0x149   : > { %1833 = vmatmul.mubr.bf16.gmra.mrb[68].mxu1 %v9075_v45  ;;  %v9114_v45 = vld [vmem:[%s12509_s1 + $0x100] ss:$16 sps:$4 sm:$0xff]  }
 0x14a   : > { %6788 = vmatprep.mubr.msk.bf16.mxu1 %vm901_vm0, %v9079_v48  ;;  %2619 = vmatpush1.bf16.msra.mxu1 %v9969_v41  ;;  %v9084_v41 = vld [vmem:[%s12509_s1 + $0x60] ss:$16 sps:$4 sm:$0xff]   ;;  %v2353_v63 = vpop.permute.xlu0 %2352  ;;  %v9118_v48 = vld [vmem:[%s12509_s1 + $0x124] ss:$16 sps:$4 sm:$0xff]  }
 0x14b   : > { %2620 = vmatprep.subr.bf16.mxu1 %v9456_v0  ;;  %7550 = vmatpush3.bf16.msra.mxu0 %v2329_v19  ;;  %v9096_v19 = vld [vmem:[%s12509_s1 + $0xa0] ss:$16 sps:$4 sm:$0xff]  }
 0x14c   : > { %7551 = vmatprep.subr.bf16.mxu0 %v2347_v35  ;;  %v9106_v35 = vld [vmem:[%s12509_s1 + $0xe4] ss:$16 sps:$4 sm:$0xff]  }
 0x14d   : > { %1680 = vmatmul.mubr.bf16.gmra.mrb[72].mxu0 %v9078_v51  ;;  %v9121_v51 = vld [vmem:[%s12509_s1 + $0x12c] ss:$16 sps:$4 sm:$0xff]  }
 0x14e   : > { %1687 = vmatprep.mubr.bf16.mxu0 %v9082_v53  ;;  %2621 = vmatpush1.bf16.msra.mxu1 %v10009_v56  ;;  %v2335_v56 = vpop.permute.xlu1 %2334 }
 0x14f   : > { %2622 = vmatprep.subr.bf16.mxu1 %v9456_v0  ;;  %7552 = vmatpush3.bf16.msra.mxu0 %v2331_v47  ;;  %v9115_v47 = vld [vmem:[%s12509_s1 + $0x10c] ss:$16 sps:$4 sm:$0xff]  }
 0x150   : > { %7553 = vmatprep.subr.bf16.mxu0 %v2349_v39  ;;  %v9108_v39 = vld [vmem:[%s12509_s1 + $0xe0] ss:$16 sps:$4 sm:$0xff]  }
 0x151   : > { %1841 = vmatmul.mubr.bf16.gmra.mrb[72].mxu1 %v9081_v54  ;;  %v9124_v54 = vld [vmem:[%s12509_s1 + $0x144] ss:$16 sps:$4 sm:$0xff]  }
 0x152   : > { %6789 = vmatprep.mubr.msk.bf16.mxu1 %vm901_vm0, %v9085_v57  ;;  %2623 = vmatpush1.bf16.msra.mxu1 %v10021_v60  ;;  %v2337_v60 = vpop.permute.xlu0 %2336  ;;  %v2373_v16 = vpop.permute.xlu1 %2372  ;;  %v9123_v57 = vld [vmem:[%s12509_s1 + $0x128] ss:$16 sps:$4 sm:$0xff]  }
 0x153   : > { %2624 = vmatprep.subr.bf16.mxu1 %v9456_v0  ;;  %7554 = vmatpush3.bf16.msra.mxu0 %v2333_v50 }
 0x154   : > { %7555 = vmatprep.subr.bf16.mxu0 %v2351_v59  ;;  %v9127_v59 = vld [vmem:[%s12509_s1 + $0x14c] ss:$16 sps:$4 sm:$0xff]  }
 0x155   : > { %1688 = vmatmul.mubr.bf16.gmra.mrb[76].mxu0 %v9084_v41  ;;  %v9126_v41 = vld [vmem:[%s12509_s1 + $0x140] ss:$16 sps:$4 sm:$0xff]  }
 0x156   : > { %1695 = vmatprep.mubr.bf16.mxu0 %v9088_v62  ;;  %2625 = vmatpush1.bf16.msra.mxu1 %v10061_v25  ;;  %v2375_v22 = vpop.permute.xlu1 %2374  ;;  %v9099_v25 = vld [vmem:[%s12509_s1 + $0xa8] ss:$16 sps:$4 sm:$0xff]   ;;  %v10202_v50 = vpop.permute.xlu0 %3208  ;;  %v9130_v62 = vld [vmem:[%s12509_s1 + $0x164] ss:$16 sps:$4 sm:$0xff]  }
 0x157   : > { %2626 = vmatprep.subr.bf16.mxu1 %v9456_v0  ;;  %7556 = vmatpush3.bf16.msra.mxu0 %v2335_v56  ;;  %v2451_v32 = vsel %vm950_vm1, %v2375_v22, 0 }
 0x158   : > { %7557 = vmatprep.subr.bf16.mxu0 %v2353_v63  ;;  %v9129_v63 = vld [vmem:[%s12509_s1 + $0x148] ss:$16 sps:$4 sm:$0xff]  }
 0x159   : > { %1849 = vmatmul.mubr.bf16.gmra.mrb[76].mxu1 %v9087_v2 }
 0x15a   : > { %6790 = vmatprep.mubr.msk.bf16.mxu1 %vm901_vm0, %v9091_v5  ;;  %2627 = vmatpush1.bf16.msra.mxu1 %v10074_v33  ;;  %v9102_v33 = vld [vmem:[%s12509_s1 + $0xc0] ss:$16 sps:$4 sm:$0xff]   ;;  %v3193_v53 = vpop.permute.xlu0 %3192  ;;  %v10244_v2 = vpop.permute.xlu1 %3210 }
 0x15b   : > { %2628 = vmatprep.subr.bf16.mxu1 %v9456_v0  ;;  %7558 = vmatpush3.bf16.msra.mxu0 %v2337_v60  ;;  %v9132_v5 = vld [vmem:[%s12509_s1 + $0x160] ss:$16 sps:$4 sm:$0xff]  }
 0x15c   : > { %7655 = vmatprep.subr.bf16.mxu0 %v3193_v53 }
 0x15d   : > { %1696 = vmatmul.mubr.bf16.gmra.mrb[80].mxu0 %v9090_v7 }
 0x15e   : > { %1703 = vmatprep.mubr.bf16.mxu0 %v9094_v9  ;;  %2629 = vmatpush1.bf16.msra.mxu1 %v2369_v6  ;;  %v9117_v6 = vld [vmem:[%s12509_s1 + $0x108] ss:$16 sps:$4 sm:$0xff]  }
 0x15f   : > { %2630 = vmatprep.subr.bf16.mxu1 %v9456_v0 }
 0x161   : > { %1857 = vmatmul.mubr.bf16.gmra.mrb[80].mxu1 %v9093_v13 }
 0x162   : > { %6791 = vmatprep.mubr.msk.bf16.mxu1 %vm901_vm0, %v9097_v15  ;;  %2631 = vmatpush1.bf16.msra.mxu1 %v2371_v34  ;;  %v9120_v34 = vld [vmem:[%s12509_s1 + $0x120] ss:$16 sps:$4 sm:$0xff]  }
 0x163   : > { %2632 = vmatprep.subr.bf16.mxu1 %v9456_v0 }
 0x165   : > { %1704 = vmatmul.mubr.bf16.gmra.mrb[84].mxu0 %v9096_v19 }
 0x166   : > { %1711 = vmatprep.mubr.bf16.mxu0 %v9100_v20  ;;  %2633 = vmatpush1.bf16.msra.mxu1 %v2373_v16  ;;  %v10267_v20 = vpop.permute.xlu1 %3212 }
 0x167   : > { %2634 = vmatprep.subr.bf16.mxu1 %v9456_v0 }
 0x169   : > { %1865 = vmatmul.mubr.bf16.gmra.mrb[84].mxu1 %v9099_v25 }
 0x16a   : > { %6792 = vmatprep.mubr.msk.bf16.mxu1 %vm901_vm0, %v9103_v31  ;;  %2635 = vmatpush1.bf16.msra.mxu1 %v2451_v32 }
 0x16b   : > { %3468 = vmatprep.subr.bf16.mxu1 %v9456_v0 }
 0x16d   : > { %1712 = vmatmul.mubr.bf16.gmra.mrb[88].mxu0 %v9102_v33 }
 0x16e   : > { %1719 = vmatprep.mubr.bf16.mxu0 %v9106_v35 }
 0x171   : > { %1873 = vmatmul.mubr.bf16.gmra.mrb[88].mxu1 %v9105_v36 }
 0x172   : > { %6793 = vmatprep.mubr.msk.bf16.mxu1 %vm901_vm0, %v9109_v38 }
 0x175   : > { %1720 = vmatmul.mubr.bf16.gmra.mrb[92].mxu0 %v9108_v39 }
 0x176   : > { %1727 = vmatprep.mubr.bf16.mxu0 %v9112_v42  ;;  %v10284_v42 = vpop.permute.xlu1 %3194 }
 0x179   : > { %1881 = vmatmul.mubr.bf16.gmra.mrb[92].mxu1 %v9111_v44 }
 0x17a   : > { %6794 = vmatprep.mubr.msk.bf16.mxu1 %vm901_vm0, %v9115_v47  ;;  %v9141_v47 = vld [vmem:[%s12509_s1 + $0x188] ss:$16 sps:$4 sm:$0xff]  }
 0x17d   : > { %1728 = vmatmul.mubr.bf16.gmra.mrb[96].mxu0 %v9114_v45 }
 0x17e   : > { %1735 = vmatprep.mubr.bf16.mxu0 %v9118_v48  ;;  %v10296_v48 = vpop.permute.xlu0 %3176 }
 0x181   : > { %1889 = vmatmul.mubr.bf16.gmra.mrb[96].mxu1 %v9117_v6 }
 0x182   : > { %6795 = vmatprep.mubr.msk.bf16.mxu1 %vm901_vm0, %v9121_v51 }
 0x185   : > { %1736 = vmatmul.mubr.bf16.gmra.mrb[100].mxu0 %v9120_v34 }
 0x186   : > { %1743 = vmatprep.mubr.bf16.mxu0 %v9124_v54 }
 0x189   : > { %1897 = vmatmul.mubr.bf16.gmra.mrb[100].mxu1 %v9123_v57 }
 0x18a   : > { %6796 = vmatprep.mubr.msk.bf16.mxu1 %vm901_vm0, %v9127_v59  ;;  %v10311_v59 = vpop.permute.xlu1 %3178 }
 0x18d   : > { %1744 = vmatmul.mubr.bf16.gmra.mrb[104].mxu0 %v9126_v41 }
 0x18e   : > { %1751 = vmatprep.mubr.bf16.mxu0 %v9130_v62 }
 0x190   : > { %v7335_v56 = vpop.f32.mrb[0].mxu0 }
 0x191   : > { %v7336_v11 = vpop.f32.mrb[1].mxu0  ;;  %1905 = vmatmul.mubr.bf16.gmra.mrb[104].mxu1 %v9129_v63 }
 0x192   : > { %v7337_v8 = vadd.f32 %v7336_v11, %v7335_v56  ;;  %v7338_v60 = vpop.f32.mrb[2].mxu0  ;;  %6797 = vmatprep.mubr.msk.bf16.mxu1 %vm901_vm0, %v9133_v4  ;;  %v10315_v4 = vpop.permute.xlu0 %3214  ;;  %v9147_v11 = vld [vmem:[%s12509_s1 + $0x1a8] ss:$16 sps:$4 sm:$0xff]  }
 0x193   : > { %v7339_v7 = vpop.f32.mrb[3].mxu0 }
 0x194   : > { %v7340_v9 = vadd.f32 %v7339_v7, %v7338_v60  ;;  %v1149_v13 = vpop.f32.mrb[0].mxu1  ;;  %v10331_v7 = vpop.permute.xlu1 %3216 }
 0x195   : > { %v10257_v15 = vadd.f32 %v7337_v8, %v1149_v13  ;;  %1752 = vmatmul.mubr.bf16.gmra.mrb[108].mxu0 %v9132_v5  ;;  %v1151_v16 = vpop.f32.mrb[1].mxu1 }
 0x196   : > { %v1152_v19 = vpop.f32.mrb[2].mxu1  ;;  %1759 = vmatprep.mubr.bf16.mxu0 %v9136_v12 }
 0x197   : > { %v10271_v22 = vadd.f32 %v7340_v9, %v1152_v19  ;;  %v1154_v25 = vpop.f32.mrb[3].mxu1 }
 0x198   : > { %v7341_v31 = vpop.f32.mrb[4].mxu0 }
 0x199   : > { %v7342_v32 = vpop.f32.mrb[5].mxu0  ;;  %1913 = vmatmul.mubr.bf16.gmra.mrb[108].mxu1 %v9135_v17  ;;  %v10342_v17 = vpop.permute.xlu0 %3196 }
 0x19a   : > { %v7343_v33 = vadd.f32 %v7342_v32, %v7341_v31  ;;  %v7344_v35 = vpop.f32.mrb[6].mxu0  ;;  %6798 = vmatprep.mubr.msk.bf16.mxu1 %vm901_vm0, %v9139_v18  ;;  %v9153_v32 = vld [vmem:[%s12509_s1 + $0x1c8] ss:$16 sps:$4 sm:$0xff]  }
 0x19b   : > { %v7345_v36 = vpop.f32.mrb[7].mxu0 }
 0x19c   : > { %v7346_v38 = vadd.f32 %v7345_v36, %v7344_v35  ;;  %v1157_v39 = vpop.f32.mrb[4].mxu1 }
 0x19d   : > { %v10286_v44 = vadd.f32 %v7343_v33, %v1157_v39  ;;  %1760 = vmatmul.mubr.bf16.gmra.mrb[112].mxu0 %v9138_v23  ;;  %v1159_v29 = vpop.f32.mrb[5].mxu1  ;;  %v10356_v33 = vpop.permute.xlu1 %3198 }
 0x19e   : > { %v1160_v45 = vpop.f32.mrb[6].mxu1  ;;  %1767 = vmatprep.mubr.bf16.mxu0 %v9142_v24 }
 0x19f   : > { %v10300_v6 = vadd.f32 %v7346_v38, %v1160_v45  ;;  %v1162_v51 = vpop.f32.mrb[7].mxu1  ;;  %v10362_v38 = vpop.permute.xlu0 %3180 }
 0x1a0   : > { %v7347_v53 = vpop.f32.mrb[8].mxu0 }
 0x1a1   : > { %v7348_v34 = vpop.f32.mrb[9].mxu0  ;;  %1921 = vmatmul.mubr.bf16.gmra.mrb[112].mxu1 %v9141_v47 }
 0x1a2   : > { %v7349_v54 = vadd.f32 %v7348_v34, %v7347_v53  ;;  %v7350_v57 = vpop.f32.mrb[10].mxu0  ;;  %6799 = vmatprep.mubr.msk.bf16.mxu1 %vm901_vm0, %v9145_v30  ;;  %v10375_v53 = vpop.permute.xlu1 %3182 }
 0x1a3   : > { %v7351_v41 = vpop.f32.mrb[11].mxu0 }
 0x1a4   : > { %v7352_v62 = vadd.f32 %v7351_v41, %v7350_v57  ;;  %v1165_v63 = vpop.f32.mrb[8].mxu1  ;;  %v10387_v57 = vpop.permute.xlu0 %3218 }
 0x1a5   : > { %v10317_v56 = vadd.f32 %v7349_v54, %v1165_v63  ;;  %1768 = vmatmul.mubr.bf16.gmra.mrb[116].mxu0 %v9144_v37  ;;  %v1167_v43 = vpop.f32.mrb[9].mxu1  ;;  %v9159_v37 = vld [vmem:[%s12509_s1 + $0x1e8] ss:$16 sps:$4 sm:$0xff]  }
 0x1a6   : > { %v1168_v5 = vpop.f32.mrb[10].mxu1  ;;  %1775 = vmatprep.mubr.bf16.mxu0 %v9148_v40 }
 0x1a7   : > { %v10329_v8 = vadd.f32 %v7352_v62, %v1168_v5  ;;  %v1170_v60 = vpop.f32.mrb[11].mxu1  ;;  %v10402_v5 = vpop.permute.xlu1 %3220 }
 0x1a8   : > { %v7353_v12 = vpop.f32.mrb[12].mxu0 }
 0x1a9   : > { %v7354_v9 = vpop.f32.mrb[13].mxu0  ;;  %1929 = vmatmul.mubr.bf16.gmra.mrb[116].mxu1 %v9147_v11 }
 0x1aa   : > { %v7355_v13 = vadd.f32 %v7354_v9, %v7353_v12  ;;  %v7356_v16 = vpop.f32.mrb[14].mxu0  ;;  %6800 = vmatprep.mubr.msk.bf16.mxu1 %vm901_vm0, %v9151_v46  ;;  %v3201_v9 = vpop.permute.xlu0 %3200 }
 0x1ab   : > { %v7357_v19 = vpop.f32.mrb[15].mxu0 }
 0x1ac   : > { %v7358_v18 = vadd.f32 %v7357_v19, %v7356_v16  ;;  %v1173_v25 = vpop.f32.mrb[12].mxu1 }
 0x1ad   : > { %v10346_v31 = vadd.f32 %v7355_v13, %v1173_v25  ;;  %1776 = vmatmul.mubr.bf16.gmra.mrb[120].mxu0 %v9150_v49  ;;  %v1175_v55 = vpop.f32.mrb[13].mxu1  ;;  %v9163_v13 = vld [vmem:[%s12509_s1 + $0x408] ss:$16 sps:$4 sm:$0xff]   ;;  %v3203_v25 = vpop.permute.xlu1 %3202 }
 0x1ae   : > { %v1176_v23 = vpop.f32.mrb[14].mxu1  ;;  %1783 = vmatprep.mubr.bf16.mxu0 %v9154_v52 }
 0x1af   : > { %v10360_v35 = vadd.f32 %v7358_v18, %v1176_v23  ;;  %v1178_v24 = vpop.f32.mrb[15].mxu1 }
 0x1b0   : > { %v7359_v36 = vpop.f32.mrb[16].mxu0 }
 0x1b1   : > { %v7360_v39 = vpop.f32.mrb[17].mxu0  ;;  %1937 = vmatmul.mubr.bf16.gmra.mrb[120].mxu1 %v9153_v32 }
 0x1b2   : > { %v7361_v29 = vadd.f32 %v7360_v39, %v7359_v36  ;;  %v7362_v47 = vpop.f32.mrb[18].mxu0  ;;  %6801 = vmatprep.mubr.msk.bf16.mxu1 %vm901_vm0, %v9157_v58  ;;  %v3185_v58 = vpop.permute.xlu0 %3184 }
 0x1b3   : > { %v7363_v45 = vpop.f32.mrb[19].mxu0 }
 0x1b4   : > { %v7364_v30 = vadd.f32 %v7363_v45, %v7362_v47  ;;  %v1181_v51 = vpop.f32.mrb[16].mxu1 }
 0x1b5   : > { %v10377_v34 = vadd.f32 %v7361_v29, %v1181_v51  ;;  %1784 = vmatmul.mubr.bf16.gmra.mrb[124].mxu0 %v9156_v61  ;;  %v1183_v3 = vpop.f32.mrb[17].mxu1  ;;  %v9171_v29 = vld [vmem:[%s12509_s1 + $0x428] ss:$16 sps:$4 sm:$0xff]  }
 0x1b6   : > { %v1184_v54 = vpop.f32.mrb[18].mxu1  ;;  %2485 = vmatprep.mubr.bf16.mxu0 %v9162_v1  ;;  %v9174_v3 = vld [vmem:[%s12509_s1 + $0x440] ss:$16 sps:$4 sm:$0xff]  }
 0x1b7   : > { %v10391_v40 = vadd.f32 %v7364_v30, %v1184_v54  ;;  %v1186_v41 = vpop.f32.mrb[19].mxu1  ;;  %v10445_v30 = vpop.permute.xlu0 %3222  ;;  %v9178_v54 = vld [vmem:[%s12509_s1 + $0x464] ss:$16 sps:$4 sm:$0xff]  }
 0x1b8   : > { %v7365_v62 = vpop.f32.mrb[20].mxu0 }
 0x1b9   : > { %v7366_v63 = vpop.f32.mrb[21].mxu0  ;;  %1945 = vmatmul.mubr.bf16.gmra.mrb[124].mxu1 %v9159_v37 }
 0x1ba   : > { %v7367_v43 = vadd.f32 %v7366_v63, %v7365_v62  ;;  %v7368_v11 = vpop.f32.mrb[22].mxu0  ;;  %6930 = vmatprep.mubr.msk.bf16.mxu1 %vm901_vm0, %v9165_v10 }
 0x1bb   : > { %v7369_v46 = vpop.f32.mrb[23].mxu0 }
 0x1bc   : > { %v7370_v60 = vadd.f32 %v7369_v46, %v7368_v11  ;;  %v1189_v12 = vpop.f32.mrb[20].mxu1 }
 0x1bd   : > { %v10406_v49 = vadd.f32 %v7367_v43, %v1189_v12  ;;  %2486 = vmatmul.mubr.bf16.vlgmr.msra.gmra.mrb[128].mxu0 %v9160_v14  ;;  %v1191_v26 = vpop.f32.mrb[21].mxu1  ;;  %v9177_v14 = vld [vmem:[%s12509_s1 + $0x448] ss:$16 sps:$4 sm:$0xff]   ;;  %v9180_v12 = vld [vmem:[%s12509_s1 + $0x460] ss:$16 sps:$4 sm:$0xff]  }
 0x1be   : > { %v1192_v16 = vpop.f32.mrb[22].mxu1  ;;  %2493 = vmatprep.mubr.bf16.mxu0 %v9166_v21  ;;  %7656 = vmatpush3.bf16.msra.mxu0 %v10296_v48  ;;  %v9172_v48 = vld [vmem:[%s12509_s1 + $0x444] ss:$16 sps:$4 sm:$0xff]  }
 0x1bf   : > { %v10417_v52 = vadd.f32 %v7370_v60, %v1192_v16  ;;  %v1194_v19 = vpop.f32.mrb[23].mxu1  ;;  %7657 = vmatprep.subr.bf16.mxu0 %v10284_v42 }
 0x1c0   : > { %v7371_v18 = vpop.f32.mrb[24].mxu0 }
 0x1c1   : > { %v7372_v55 = vpop.f32.mrb[25].mxu0  ;;  %2647 = vmatmul.mubr.bf16.vlgmr.msra.gmra.mrb[128].mxu1 %v9163_v13 }
 0x1c2   : > { %v7373_v32 = vadd.f32 %v7372_v55, %v7371_v18  ;;  %v7374_v23 = vpop.f32.mrb[26].mxu0  ;;  %6931 = vmatprep.mubr.msk.bf16.mxu1 %vm901_vm0, %v9169_v27  ;;  %3469 = vmatpush1.bf16.msra.mxu1 %v10202_v50  ;;  %v9175_v50 = vld [vmem:[%s12509_s1 + $0x44c] ss:$16 sps:$4 sm:$0xff]  }
 0x1c3   : > { %v7375_v42 = vpop.f32.mrb[27].mxu0  ;;  %3470 = vmatprep.subr.bf16.mxu1 %v9456_v0  ;;  %7658 = vmatpush3.bf16.msra.mxu0 %v10311_v59  ;;  %v3187_v59 = vpop.permute.xlu1 %3186 }
 0x1c4   : > { %v7376_v24 = vadd.f32 %v7375_v42, %v7374_v23  ;;  %v1197_v36 = vpop.f32.mrb[24].mxu1  ;;  %7659 = vmatprep.subr.bf16.mxu0 %v10342_v17 }
 0x1c5   : > { %v10431_v39 = vadd.f32 %v7373_v32, %v1197_v36  ;;  %2494 = vmatmul.mubr.bf16.gmra.mrb[132].mxu0 %v9168_v28  ;;  %v1199_v61 = vpop.f32.mrb[25].mxu1  ;;  %v9183_v28 = vld [vmem:[%s12509_s1 + $0x468] ss:$16 sps:$4 sm:$0xff]   ;;  %v9186_v36 = vld [vmem:[%s12509_s1 + $0x480] ss:$16 sps:$4 sm:$0xff]  }
 0x1c6   : > { %v1200_v47 = vpop.f32.mrb[26].mxu1  ;;  %2501 = vmatprep.mubr.bf16.mxu0 %v9172_v48  ;;  %3471 = vmatpush1.bf16.msra.mxu1 %v10244_v2 }
 0x1c7   : > { %v10440_v1 = vadd.f32 %v7376_v24, %v1200_v47  ;;  %v1202_v17 = vpop.f32.mrb[27].mxu1  ;;  %3472 = vmatprep.subr.bf16.mxu1 %v9456_v0  ;;  %7660 = vmatpush3.bf16.msra.mxu0 %v10362_v38  ;;  %v10457_v41 = vpop.permute.xlu1 %3224 }
 0x1c8   : > { %v7377_v45 = vpop.f32.mrb[28].mxu0  ;;  %7661 = vmatprep.subr.bf16.mxu0 %v10356_v33 }
 0x1c9   : > { %v7378_v51 = vpop.f32.mrb[29].mxu0  ;;  %2655 = vmatmul.mubr.bf16.gmra.mrb[132].mxu1 %v9171_v29 }
 0x1ca   : > { %v7379_v2 = vadd.f32 %v7378_v51, %v7377_v45  ;;  %v7380_v37 = vpop.f32.mrb[30].mxu0  ;;  %6932 = vmatprep.mubr.msk.bf16.mxu1 %vm901_vm0, %v9175_v50  ;;  %3473 = vmatpush1.bf16.msra.mxu1 %v10267_v20  ;;  %v9181_v20 = vld [vmem:[%s12509_s1 + $0x46c] ss:$16 sps:$4 sm:$0xff]   ;;  %v9189_v51 = vld [vmem:[%s12509_s1 + $0x488] ss:$16 sps:$4 sm:$0xff]  }
 0x1cb   : > { %v7381_v38 = vpop.f32.mrb[31].mxu0  ;;  %3474 = vmatprep.subr.bf16.mxu1 %v9456_v0  ;;  %7662 = vmatpush3.bf16.msra.mxu0 %v10375_v53  ;;  %v3205_v53 = vpop.permute.xlu0 %3204 }
 0x1cc   : > { %v7382_v33 = vadd.f32 %v7381_v38, %v7380_v37  ;;  %v1205_v10 = vpop.f32.mrb[28].mxu1  ;;  %7663 = vmatprep.subr.bf16.mxu0 %v3201_v9  ;;  %v3207_v13 = vpop.permute.xlu1 %3206 }
 0x1cd   : > { %v10459_v62 = vadd.f32 %v7379_v2, %v1205_v10  ;;  %2502 = vmatmul.mubr.bf16.gmra.mrb[136].mxu0 %v9174_v3  ;;  %v1207_v63 = vpop.f32.mrb[29].mxu1  ;;  %v9192_v10 = vld [vmem:[%s12509_s1 + $0x4a0] ss:$16 sps:$4 sm:$0xff]  }
 0x1ce   : > { %v1208_v43 = vpop.f32.mrb[30].mxu1  ;;  %2509 = vmatprep.mubr.bf16.mxu0 %v9178_v54  ;;  %3475 = vmatpush1.bf16.msra.mxu1 %v10315_v4  ;;  %v9184_v4 = vld [vmem:[%s12509_s1 + $0x484] ss:$16 sps:$4 sm:$0xff]  }
 0x1cf   : > { %v10468_v11 = vadd.f32 %v7382_v33, %v1208_v43  ;;  %v1210_v21 = vpop.f32.mrb[31].mxu1  ;;  %3476 = vmatprep.subr.bf16.mxu1 %v9456_v0  ;;  %7664 = vmatpush3.bf16.msra.mxu0 %v3185_v58  ;;  %v3189_v18 = vpop.permute.xlu0 %3188 }
 0x1d0   : > { %v7383_v46 = vpop.f32.mrb[32].mxu0  ;;  %7665 = vmatprep.subr.bf16.mxu0 %v3203_v25  ;;  %v3191_v42 = vpop.permute.xlu1 %3190 }
 0x1d1   : > { %v7384_v60 = vpop.f32.mrb[33].mxu0  ;;  %2663 = vmatmul.mubr.bf16.gmra.mrb[136].mxu1 %v9177_v14 }
 0x1d2   : > { %v7385_v9 = vadd.f32 %v7384_v60, %v7383_v46  ;;  %v7386_v26 = vpop.f32.mrb[34].mxu0  ;;  %6933 = vmatprep.mubr.msk.bf16.mxu1 %vm901_vm0, %v9181_v20  ;;  %3477 = vmatpush1.bf16.msra.mxu1 %v10331_v7  ;;  %v9187_v7 = vld [vmem:[%s12509_s1 + $0x48c] ss:$16 sps:$4 sm:$0xff]  }
 0x1d3   : > { %v7387_v16 = vpop.f32.mrb[35].mxu0  ;;  %3478 = vmatprep.subr.bf16.mxu1 %v9456_v0  ;;  %7666 = vmatpush3.bf16.msra.mxu0 %v3187_v59  ;;  %v3227_v2 = vpop.permute.xlu0 %3226 }
 0x1d4   : > { %v7388_v27 = vadd.f32 %v7387_v16, %v7386_v26  ;;  %v1213_v19 = vpop.f32.mrb[32].mxu1  ;;  %7667 = vmatprep.subr.bf16.mxu0 %v3205_v53 }
 0x1d5   : > { %v10480_v25 = vadd.f32 %v7385_v9, %v1213_v19  ;;  %2510 = vmatmul.mubr.bf16.gmra.mrb[140].mxu0 %v9180_v12  ;;  %v1215_v55 = vpop.f32.mrb[33].mxu1  ;;  %v9195_v12 = vld [vmem:[%s12509_s1 + $0x4a8] ss:$16 sps:$4 sm:$0xff]   ;;  %v9198_v19 = vld [vmem:[%s12509_s1 + $0x4c0] ss:$16 sps:$4 sm:$0xff]  }
 0x1d6   : > { %v1216_v32 = vpop.f32.mrb[34].mxu1  ;;  %2517 = vmatprep.mubr.bf16.mxu0 %v9184_v4  ;;  %3479 = vmatpush1.bf16.msra.mxu1 %v10387_v57  ;;  %v9190_v57 = vld [vmem:[%s12509_s1 + $0x4a4] ss:$16 sps:$4 sm:$0xff]  }
 0x1d7   : > { %v10489_v23 = vadd.f32 %v7388_v27, %v1216_v32  ;;  %v1218_v48 = vpop.f32.mrb[35].mxu1  ;;  %3480 = vmatprep.subr.bf16.mxu1 %v9456_v0  ;;  %7668 = vmatpush3.bf16.msra.mxu0 %v3189_v18  ;;  %v3229_v21 = vpop.permute.xlu0 %3228 }
 0x1d8   : > { %v7389_v58 = vpop.f32.mrb[36].mxu0  ;;  %7669 = vmatprep.subr.bf16.mxu0 %v3207_v13  ;;  %v3305_v13 = vsel %vm950_vm1, %v3229_v21, 0  ;;  %v9210_v21 = vld [vmem:[%s12509_s1 + $0x500] ss:$16 sps:$4 sm:$0xff]  }
 0x1d9   : > { %v7390_v24 = vpop.f32.mrb[37].mxu0  ;;  %2671 = vmatmul.mubr.bf16.gmra.mrb[140].mxu1 %v9183_v28  ;;  %v9202_v28 = vld [vmem:[%s12509_s1 + $0x4e4] ss:$16 sps:$4 sm:$0xff]  }
 0x1da   : > { %v7391_v61 = vadd.f32 %v7390_v24, %v7389_v58  ;;  %v7392_v29 = vpop.f32.mrb[38].mxu0  ;;  %6934 = vmatprep.mubr.msk.bf16.mxu1 %vm901_vm0, %v9187_v7  ;;  %3481 = vmatpush1.bf16.msra.mxu1 %v10402_v5  ;;  %v9193_v5 = vld [vmem:[%s12509_s1 + $0x4ac] ss:$16 sps:$4 sm:$0xff]   ;;  %v9201_v24 = vld [vmem:[%s12509_s1 + $0x4c8] ss:$16 sps:$4 sm:$0xff]  }
 0x1db   : > { %v7393_v47 = vpop.f32.mrb[39].mxu0  ;;  %3482 = vmatprep.subr.bf16.mxu1 %v9456_v0  ;;  %7670 = vmatpush3.bf16.msra.mxu0 %v3191_v42 }
 0x1dc   : > { %v7394_v50 = vadd.f32 %v7393_v47, %v7392_v29  ;;  %v1221_v59 = vpop.f32.mrb[36].mxu1 }
 0x1dd   : > { %v10501_v17 = vadd.f32 %v7391_v61, %v1221_v59  ;;  %2518 = vmatmul.mubr.bf16.gmra.mrb[144].mxu0 %v9186_v36  ;;  %v1223_v45 = vpop.f32.mrb[37].mxu1  ;;  %v9205_v61 = vld [vmem:[%s12509_s1 + $0x4ec] ss:$16 sps:$4 sm:$0xff]   ;;  %v9204_v59 = vld [vmem:[%s12509_s1 + $0x4e0] ss:$16 sps:$4 sm:$0xff]  }
 0x1de   : > { %v1224_v3 = vpop.f32.mrb[38].mxu1  ;;  %2525 = vmatprep.mubr.bf16.mxu0 %v9190_v57  ;;  %3483 = vmatpush1.bf16.msra.mxu1 %v10445_v30  ;;  %v9196_v30 = vld [vmem:[%s12509_s1 + $0x4c4] ss:$16 sps:$4 sm:$0xff]  }
 0x1df   : > { %v10510_v37 = vadd.f32 %v7394_v50, %v1224_v3  ;;  %v1226_v54 = vpop.f32.mrb[39].mxu1  ;;  %3484 = vmatprep.subr.bf16.mxu1 %v9456_v0  ;;  %v9208_v3 = vld [vmem:[%s12509_s1 + $0x504] ss:$16 sps:$4 sm:$0xff]  }
 0x1e0   : > { %v7395_v38 = vpop.f32.mrb[40].mxu0 }
 0x1e1   : > { %v7396_v33 = vpop.f32.mrb[41].mxu0  ;;  %2679 = vmatmul.mubr.bf16.gmra.mrb[144].mxu1 %v9189_v51 }
 0x1e2   : > { %v7397_v63 = vadd.f32 %v7396_v33, %v7395_v38  ;;  %v7398_v14 = vpop.f32.mrb[42].mxu0  ;;  %6935 = vmatprep.mubr.msk.bf16.mxu1 %vm901_vm0, %v9193_v5  ;;  %3485 = vmatpush1.bf16.msra.mxu1 %v10457_v41  ;;  %v9199_v41 = vld [vmem:[%s12509_s1 + $0x4cc] ss:$16 sps:$4 sm:$0xff]  }
 0x1e3   : > { %v7399_v43 = vpop.f32.mrb[43].mxu0  ;;  %3486 = vmatprep.subr.bf16.mxu1 %v9456_v0 }
 0x1e4   : > { %v7400_v20 = vadd.f32 %v7399_v43, %v7398_v14  ;;  %v1229_v53 = vpop.f32.mrb[40].mxu1  ;;  %v9211_v14 = vld [vmem:[%s12509_s1 + $0x50c] ss:$16 sps:$4 sm:$0xff]  }
 0x1e5   : > { %v10522_v46 = vadd.f32 %v7397_v63, %v1229_v53  ;;  %2526 = vmatmul.mubr.bf16.gmra.mrb[148].mxu0 %v9192_v10  ;;  %v1231_v60 = vpop.f32.mrb[41].mxu1  ;;  %v9207_v10 = vld [vmem:[%s12509_s1 + $0x4e8] ss:$16 sps:$4 sm:$0xff]  }
 0x1e6   : > { %v1232_v9 = vpop.f32.mrb[42].mxu1  ;;  %2533 = vmatprep.mubr.bf16.mxu0 %v9196_v30  ;;  %3487 = vmatpush1.bf16.msra.mxu1 %v3227_v2 }
 0x1e7   : > { %v10530_v26 = vadd.f32 %v7400_v20, %v1232_v9  ;;  %v1234_v4 = vpop.f32.mrb[43].mxu1  ;;  %3488 = vmatprep.subr.bf16.mxu1 %v9456_v0  ;;  %v9214_v9 = vld [vmem:[%s12509_s1 + $0x524] ss:$16 sps:$4 sm:$0xff]  }
 0x1e8   : > { %v7401_v16 = vpop.f32.mrb[44].mxu0  ;;  %v10576_v4 = vpop.permute.xlu1 %4062 }
 0x1e9   : > { %v7402_v27 = vpop.f32.mrb[45].mxu0  ;;  %2687 = vmatmul.mubr.bf16.gmra.mrb[148].mxu1 %v9195_v12 }
 0x1ea   : > { %v7403_v18 = vadd.f32 %v7402_v27, %v7401_v16  ;;  %v7404_v55 = vpop.f32.mrb[46].mxu0  ;;  %6936 = vmatprep.mubr.msk.bf16.mxu1 %vm901_vm0, %v9199_v41  ;;  %3489 = vmatpush1.bf16.msra.mxu1 %v3305_v13 }
 0x1eb   : > { %v7405_v32 = vpop.f32.mrb[47].mxu0  ;;  %4322 = vmatprep.subr.bf16.mxu1 %v9456_v0 }
 0x1ec   : > { %v7406_v7 = vadd.f32 %v7405_v32, %v7404_v55  ;;  %v1237_v48 = vpop.f32.mrb[44].mxu1 }
 0x1ed   : > { %v10542_v58 = vadd.f32 %v7403_v18, %v1237_v48  ;;  %2534 = vmatmul.mubr.bf16.gmra.mrb[152].mxu0 %v9198_v19  ;;  %v1239_v42 = vpop.f32.mrb[45].mxu1  ;;  %v9213_v18 = vld [vmem:[%s12509_s1 + $0x508] ss:$16 sps:$4 sm:$0xff]   ;;  %v4047_v48 = vpop.permute.xlu1 %4046 }
 0x1ee   : > { %v1240_v36 = vpop.f32.mrb[46].mxu1  ;;  %2541 = vmatprep.mubr.bf16.mxu0 %v9202_v28  ;;  %v9217_v28 = vld [vmem:[%s12509_s1 + $0x52c] ss:$16 sps:$4 sm:$0xff]   ;;  %7767 = vmatprep.subr.bf16.mxu0 %v4047_v48  ;;  %v10622_v48 = vpop.permute.xlu0 %4064 }
 0x1ef   : > { %v10550_v29 = vadd.f32 %v7406_v7, %v1240_v36  ;;  %v1242_v57 = vpop.f32.mrb[47].mxu1  ;;  %v9216_v36 = vld [vmem:[%s12509_s1 + $0x520] ss:$16 sps:$4 sm:$0xff]  }
 0x1f0   : > { %v7407_v47 = vpop.f32.mrb[48].mxu0 }
 0x1f1   : > { %v7408_v50 = vpop.f32.mrb[49].mxu0  ;;  %2695 = vmatmul.mubr.bf16.gmra.mrb[152].mxu1 %v9201_v24 }
 0x1f2   : > { %v7409_v45 = vadd.f32 %v7408_v50, %v7407_v47  ;;  %v7410_v51 = vpop.f32.mrb[50].mxu0  ;;  %6937 = vmatprep.mubr.msk.bf16.mxu1 %vm901_vm0, %v9205_v61  ;;  %v9220_v47 = vld [vmem:[%s12509_s1 + $0x544] ss:$16 sps:$4 sm:$0xff]  }
 0x1f3   : > { %v7411_v5 = vpop.f32.mrb[51].mxu0 }
 0x1f4   : > { %v7412_v2 = vadd.f32 %v7411_v5, %v7410_v51  ;;  %v1245_v54 = vpop.f32.mrb[48].mxu1  ;;  %v9219_v5 = vld [vmem:[%s12509_s1 + $0x528] ss:$16 sps:$4 sm:$0xff]  }
 0x1f5   : > { %v10559_v38 = vadd.f32 %v7409_v45, %v1245_v54  ;;  %2542 = vmatmul.mubr.bf16.gmra.mrb[156].mxu0 %v9204_v59  ;;  %v1247_v33 = vpop.f32.mrb[49].mxu1  ;;  %v9223_v54 = vld [vmem:[%s12509_s1 + $0x54c] ss:$16 sps:$4 sm:$0xff]  }
 0x1f6   : > { %v1248_v63 = vpop.f32.mrb[50].mxu1  ;;  %2549 = vmatprep.mubr.bf16.mxu0 %v9208_v3 }
 0x1f7   : > { %v10567_v30 = vadd.f32 %v7412_v2, %v1248_v63  ;;  %v1250_v43 = vpop.f32.mrb[51].mxu1 }
 0x1f8   : > { %v7413_v20 = vpop.f32.mrb[52].mxu0  ;;  %v9222_v43 = vld [vmem:[%s12509_s1 + $0x540] ss:$16 sps:$4 sm:$0xff]  }
 0x1f9   : > { %v7414_v53 = vpop.f32.mrb[53].mxu0  ;;  %2703 = vmatmul.mubr.bf16.gmra.mrb[156].mxu1 %v9207_v10 }
 0x1fa   : > { %v7415_v60 = vadd.f32 %v7414_v53, %v7413_v20  ;;  %v7416_v12 = vpop.f32.mrb[54].mxu0  ;;  %6938 = vmatprep.mubr.msk.bf16.mxu1 %vm901_vm0, %v9211_v14 }
 0x1fb   : > { %v7417_v41 = vpop.f32.mrb[55].mxu0 }
 0x1fc   : > { %v7418_v13 = vadd.f32 %v7417_v41, %v7416_v12  ;;  %v1253_v16 = vpop.f32.mrb[52].mxu1 }
 0x1fd   : > { %v10578_v27 = vadd.f32 %v7415_v60, %v1253_v16  ;;  %2550 = vmatmul.mubr.bf16.gmra.mrb[160].mxu0 %v9210_v21  ;;  %v1255_v19 = vpop.f32.mrb[53].mxu1  ;;  %v9226_v21 = vld [vmem:[%s12509_s1 + $0x564] ss:$16 sps:$4 sm:$0xff]   ;;  %v9225_v16 = vld [vmem:[%s12509_s1 + $0x548] ss:$16 sps:$4 sm:$0xff]  }
 0x1fe   : > { %v1256_v55 = vpop.f32.mrb[54].mxu1  ;;  %2557 = vmatprep.mubr.bf16.mxu0 %v9214_v9 }
 0x1ff   : > { %v10586_v32 = vadd.f32 %v7418_v13, %v1256_v55  ;;  %v1258_v7 = vpop.f32.mrb[55].mxu1 }
 0x200   : > { %v7419_v42 = vpop.f32.mrb[56].mxu0 }
 0x201   : > { %v7420_v24 = vpop.f32.mrb[57].mxu0  ;;  %2711 = vmatmul.mubr.bf16.gmra.mrb[160].mxu1 %v9213_v18  ;;  %v9229_v18 = vld [vmem:[%s12509_s1 + $0x56c] ss:$16 sps:$4 sm:$0xff]  }
 0x202   : > { %v7421_v61 = vadd.f32 %v7420_v24, %v7419_v42  ;;  %v7422_v57 = vpop.f32.mrb[58].mxu0  ;;  %6939 = vmatprep.mubr.msk.bf16.mxu1 %vm901_vm0, %v9217_v28  ;;  %v9228_v24 = vld [vmem:[%s12509_s1 + $0x560] ss:$16 sps:$4 sm:$0xff]  }
 0x203   : > { %v7423_v50 = vpop.f32.mrb[59].mxu0 }
 0x204   : > { %v7424_v59 = vadd.f32 %v7423_v50, %v7422_v57  ;;  %v1261_v45 = vpop.f32.mrb[56].mxu1  ;;  %v9232_v57 = vld [vmem:[%s12509_s1 + $0x584] ss:$16 sps:$4 sm:$0xff]  }
 0x205   : > { %v10595_v51 = vadd.f32 %v7421_v61, %v1261_v45  ;;  %2558 = vmatmul.mubr.bf16.gmra.mrb[164].mxu0 %v9216_v36  ;;  %v1263_v3 = vpop.f32.mrb[57].mxu1 }
 0x206   : > { %v1264_v2 = vpop.f32.mrb[58].mxu1  ;;  %2565 = vmatprep.mubr.bf16.mxu0 %v9220_v47 }
 0x207   : > { %v10603_v33 = vadd.f32 %v7424_v59, %v1264_v2  ;;  %v1266_v10 = vpop.f32.mrb[59].mxu1 }
 0x208   : > { %v7425_v63 = vpop.f32.mrb[60].mxu0 }
 0x209   : > { %v7426_v14 = vpop.f32.mrb[61].mxu0  ;;  %2719 = vmatmul.mubr.bf16.gmra.mrb[164].mxu1 %v9219_v5  ;;  %v9231_v5 = vld [vmem:[%s12509_s1 + $0x568] ss:$16 sps:$4 sm:$0xff]  }
 0x20a   : > { %v7427_v20 = vadd.f32 %v7426_v14, %v7425_v63  ;;  %v7428_v53 = vpop.f32.mrb[62].mxu0  ;;  %6940 = vmatprep.mubr.msk.bf16.mxu1 %vm901_vm0, %v9223_v54  ;;  %v9235_v63 = vld [vmem:[%s12509_s1 + $0x58c] ss:$16 sps:$4 sm:$0xff]   ;;  %v10641_v14 = vpop.permute.xlu0 %4066 }
 0x20b   : > { %v7429_v60 = vpop.f32.mrb[63].mxu0 }
 0x20c   : > { %v7430_v12 = vadd.f32 %v7429_v60, %v7428_v53  ;;  %v1269_v9 = vpop.f32.mrb[60].mxu1 }
 0x20d   : > { %v10612_v41 = vadd.f32 %v7427_v20, %v1269_v9  ;;  %2566 = vmatmul.mubr.bf16.gmra.mrb[168].mxu0 %v9222_v43  ;;  %v1271_v13 = vpop.f32.mrb[61].mxu1 }
 0x20e   : > { %v1272_v19 = vpop.f32.mrb[62].mxu1  ;;  %2573 = vmatprep.mubr.bf16.mxu0 %v9226_v21  ;;  %v9234_v21 = vld [vmem:[%s12509_s1 + $0x580] ss:$16 sps:$4 sm:$0xff]  }
 0x20f   : > { %v10620_v55 = vadd.f32 %v7430_v12, %v1272_v19  ;;  %v1274_v28 = vpop.f32.mrb[63].mxu1  ;;  %v9238_v12 = vld [vmem:[%s12509_s1 + $0x5a4] ss:$16 sps:$4 sm:$0xff]  }
 0x210   : > { %v7447_v7 = vpop.f32.mrb[64].mxu0 }
 0x211   : > { %v7448_v42 = vpop.f32.mrb[65].mxu0  ;;  %2727 = vmatmul.mubr.bf16.gmra.mrb[168].mxu1 %v9225_v16 }
 0x212   : > { %v7449_v36 = vadd.f32 %v7448_v42, %v7447_v7  ;;  %v7450_v61 = vpop.f32.mrb[66].mxu0  ;;  %6941 = vmatprep.mubr.msk.bf16.mxu1 %vm901_vm0, %v9229_v18  ;;  %v10653_v18 = vpop.permute.xlu0 %4048  ;;  %v9237_v7 = vld [vmem:[%s12509_s1 + $0x588] ss:$16 sps:$4 sm:$0xff]  }
 0x213   : > { %v7451_v47 = vpop.f32.mrb[67].mxu0 }
 0x214   : > { %v7452_v50 = vadd.f32 %v7451_v47, %v7450_v61  ;;  %v1666_v59 = vadd.f32 %v7449_v36, %v10257_v15  ;;  %v1826_v45 = vpop.f32.mrb[64].mxu1  ;;  %v9241_v61 = vld [vmem:[%s12509_s1 + $0x5ac] ss:$16 sps:$4 sm:$0xff]  }
 0x215   : > { %2574 = vmatmul.mubr.bf16.gmra.mrb[172].mxu0 %v9228_v24  ;;  %v1828_v3 = vpop.f32.mrb[65].mxu1 }
 0x216   : > { %v10635_v2 = vadd.f32 %v1826_v45, %v1666_v59  ;;  %v1669_v54 = vadd.f32 %v7452_v50, %v10271_v22  ;;  %v1829_v10 = vpop.f32.mrb[66].mxu1  ;;  %2581 = vmatprep.mubr.bf16.mxu0 %v9232_v57  ;;  %v9240_v45 = vld [vmem:[%s12509_s1 + $0x5a0] ss:$16 sps:$4 sm:$0xff]  }
 0x217   : > { %v1831_v15 = vpop.f32.mrb[67].mxu1 }
 0x218   : > { %v10643_v43 = vadd.f32 %v1829_v10, %v1669_v54  ;;  %v7453_v20 = vpop.f32.mrb[68].mxu0  ;;  %v10675_v54 = vpop.permute.xlu0 %4032 }
 0x219   : > { %v7454_v53 = vpop.f32.mrb[69].mxu0  ;;  %2735 = vmatmul.mubr.bf16.gmra.mrb[172].mxu1 %v9231_v5  ;;  %v9244_v5 = vld [vmem:[%s12509_s1 + $0x5c4] ss:$16 sps:$4 sm:$0xff]  }
 0x21a   : > { %v7455_v60 = vadd.f32 %v7454_v53, %v7453_v20  ;;  %v7456_v22 = vpop.f32.mrb[70].mxu0  ;;  %6942 = vmatprep.mubr.msk.bf16.mxu1 %vm901_vm0, %v9235_v63 }
 0x21b   : > { %v7457_v9 = vpop.f32.mrb[71].mxu0 }
 0x21c   : > { %v7458_v13 = vadd.f32 %v7457_v9, %v7456_v22  ;;  %v1674_v16 = vadd.f32 %v7455_v60, %v10286_v44  ;;  %v1834_v19 = vpop.f32.mrb[68].mxu1  ;;  %v10664_v44 = vpop.permute.xlu1 %4030  ;;  %v9243_v60 = vld [vmem:[%s12509_s1 + $0x5a8] ss:$16 sps:$4 sm:$0xff]  }
 0x21d   : > { %2582 = vmatmul.mubr.bf16.gmra.mrb[176].mxu0 %v9234_v21  ;;  %v1836_v28 = vpop.f32.mrb[69].mxu1 }
 0x21e   : > { %v10658_v42 = vadd.f32 %v1834_v19, %v1674_v16  ;;  %v1677_v24 = vadd.f32 %v7458_v13, %v10300_v6  ;;  %v1837_v36 = vpop.f32.mrb[70].mxu1  ;;  %2589 = vmatprep.mubr.bf16.mxu0 %v9238_v12  ;;  %v9247_v13 = vld [vmem:[%s12509_s1 + $0x5cc] ss:$16 sps:$4 sm:$0xff]   ;;  %v10691_v28 = vpop.permute.xlu0 %4070 }
 0x21f   : > { %v1839_v57 = vpop.f32.mrb[71].mxu1 }
 0x220   : > { %v10666_v47 = vadd.f32 %v1837_v36, %v1677_v24  ;;  %v7459_v50 = vpop.f32.mrb[72].mxu0  ;;  %v10678_v53 = vpop.permute.xlu1 %4068  ;;  %v9246_v24 = vld [vmem:[%s12509_s1 + $0x5c0] ss:$16 sps:$4 sm:$0xff]  }
 0x221   : > { %v7460_v59 = vpop.f32.mrb[73].mxu0  ;;  %2743 = vmatmul.mubr.bf16.gmra.mrb[176].mxu1 %v9237_v7 }
 0x222   : > { %v7461_v3 = vadd.f32 %v7460_v59, %v7459_v50  ;;  %v7462_v6 = vpop.f32.mrb[74].mxu0  ;;  %6943 = vmatprep.mubr.msk.bf16.mxu1 %vm901_vm0, %v9241_v61  ;;  %v9250_v61 = vld [vmem:[%s12509_s1 + $0x5e4] ss:$16 sps:$4 sm:$0xff]  }
 0x223   : > { %v7463_v10 = vpop.f32.mrb[75].mxu0 }
 0x224   : > { %v7464_v63 = vadd.f32 %v7463_v10, %v7462_v6  ;;  %v1682_v15 = vadd.f32 %v7461_v3, %v10317_v56  ;;  %v1842_v20 = vpop.f32.mrb[72].mxu1  ;;  %v10700_v57 = vpop.permute.xlu1 %4050 }
 0x225   : > { %2590 = vmatmul.mubr.bf16.gmra.mrb[180].mxu0 %v9240_v45  ;;  %v1844_v21 = vpop.f32.mrb[73].mxu1 }
 0x226   : > { %v10683_v22 = vadd.f32 %v1842_v20, %v1682_v15  ;;  %v1685_v12 = vadd.f32 %v7464_v63, %v10329_v8  ;;  %v1845_v9 = vpop.f32.mrb[74].mxu1  ;;  %2597 = vmatprep.mubr.bf16.mxu0 %v9244_v5  ;;  %v9249_v5 = vld [vmem:[%s12509_s1 + $0x5c8] ss:$16 sps:$4 sm:$0xff]   ;;  %v9253_v20 = vld [vmem:[%s12509_s1 + $0x5ec] ss:$16 sps:$4 sm:$0xff]   ;;  %v10712_v21 = vpop.permute.xlu0 %4052 }
 0x227   : > { %v1847_v56 = vpop.f32.mrb[75].mxu1 }
 0x228   : > { %v10689_v16 = vadd.f32 %v1845_v9, %v1685_v12  ;;  %v7465_v19 = vpop.f32.mrb[76].mxu0  ;;  %v10716_v9 = vpop.permute.xlu1 %4034 }
 0x229   : > { %v7466_v7 = vpop.f32.mrb[77].mxu0  ;;  %2751 = vmatmul.mubr.bf16.gmra.mrb[180].mxu1 %v9243_v60 }
 0x22a   : > { %v7467_v36 = vadd.f32 %v7466_v7, %v7465_v19  ;;  %v7468_v8 = vpop.f32.mrb[78].mxu0  ;;  %6944 = vmatprep.mubr.msk.bf16.mxu1 %vm901_vm0, %v9247_v13  ;;  %v9258_v7 = vld [vmem:[%s12509_s1 + $0x604] ss:$16 sps:$4 sm:$0xff]  }
 0x22b   : > { %v7469_v50 = vpop.f32.mrb[79].mxu0 }
 0x22c   : > { %v7470_v59 = vadd.f32 %v7469_v50, %v7468_v8  ;;  %v1690_v45 = vadd.f32 %v7467_v36, %v10346_v31  ;;  %v1850_v3 = vpop.f32.mrb[76].mxu1  ;;  %v10726_v50 = vpop.permute.xlu0 %4036 }
 0x22d   : > { %2598 = vmatmul.mubr.bf16.gmra.mrb[184].mxu0 %v9246_v24  ;;  %v1852_v6 = vpop.f32.mrb[77].mxu1 }
 0x22e   : > { %v10706_v10 = vadd.f32 %v1850_v3, %v1690_v45  ;;  %v1693_v63 = vadd.f32 %v7470_v59, %v10360_v35  ;;  %v1853_v15 = vpop.f32.mrb[78].mxu1  ;;  %2605 = vmatprep.mubr.bf16.mxu0 %v9250_v61  ;;  %v9252_v35 = vld [vmem:[%s12509_s1 + $0x5e0] ss:$16 sps:$4 sm:$0xff]   ;;  %v9255_v45 = vld [vmem:[%s12509_s1 + $0x5e8] ss:$16 sps:$4 sm:$0xff]  }
 0x22f   : > { %v1855_v31 = vpop.f32.mrb[79].mxu1 }
 0x230   : > { %v10714_v60 = vadd.f32 %v1853_v15, %v1693_v63  ;;  %v7471_v12 = vpop.f32.mrb[80].mxu0  ;;  %v10735_v63 = vpop.permute.xlu1 %4072 }
 0x231   : > { %v7472_v13 = vpop.f32.mrb[81].mxu0  ;;  %2759 = vmatmul.mubr.bf16.gmra.mrb[184].mxu1 %v9249_v5  ;;  %v9261_v5 = vld [vmem:[%s12509_s1 + $0x60c] ss:$16 sps:$4 sm:$0xff]  }
 0x232   : > { %v7473_v56 = vadd.f32 %v7472_v13, %v7471_v12  ;;  %v7474_v19 = vpop.f32.mrb[82].mxu0  ;;  %6945 = vmatprep.mubr.msk.bf16.mxu1 %vm901_vm0, %v9253_v20 }
 0x233   : > { %v7475_v24 = vpop.f32.mrb[83].mxu0 }
 0x234   : > { %v1698_v36 = vadd.f32 %v7473_v56, %v10377_v34  ;;  %v7476_v8 = vadd.f32 %v7475_v24, %v7474_v19  ;;  %v1858_v61 = vpop.f32.mrb[80].mxu1  ;;  %v9262_v56 = vld [vmem:[%s12509_s1 + $0x624] ss:$16 sps:$4 sm:$0xff]   ;;  %v10748_v19 = vpop.permute.xlu0 %4074 }
 0x235   : > { %2606 = vmatmul.mubr.bf16.gmra.mrb[188].mxu0 %v9252_v35  ;;  %v1860_v59 = vpop.f32.mrb[81].mxu1 }
 0x236   : > { %v1701_v3 = vadd.f32 %v7476_v8, %v10391_v40  ;;  %v1861_v6 = vpop.f32.mrb[82].mxu1  ;;  %3339 = vmatprep.mubr.bf16.mxu0 %v9258_v7  ;;  %v10737_v34 = vadd.f32 %v1858_v61, %v1698_v36  ;;  %v9256_v40 = vld [vmem:[%s12509_s1 + $0x600] ss:$16 sps:$4 sm:$0xff]   ;;  %v4055_v61 = vpop.permute.xlu1 %4054 }
 0x237   : > { %v1863_v15 = vpop.f32.mrb[83].mxu1 }
 0x238   : > { %v10739_v20 = vadd.f32 %v1861_v6, %v1701_v3  ;;  %v7477_v31 = vpop.f32.mrb[84].mxu0  ;;  %v9265_v15 = vld [vmem:[%s12509_s1 + $0x62c] ss:$16 sps:$4 sm:$0xff]  }
 0x239   : > { %v7478_v12 = vpop.f32.mrb[85].mxu0  ;;  %2767 = vmatmul.mubr.bf16.gmra.mrb[188].mxu1 %v9255_v45  ;;  %v9259_v45 = vld [vmem:[%s12509_s1 + $0x608] ss:$16 sps:$4 sm:$0xff]  }
 0x23a   : > { %v7479_v13 = vadd.f32 %v7478_v12, %v7477_v31  ;;  %v7480_v35 = vpop.f32.mrb[86].mxu0  ;;  %7074 = vmatprep.mubr.msk.bf16.mxu1 %vm901_vm0, %v9261_v5 }
 0x23b   : > { %v7481_v7 = vpop.f32.mrb[87].mxu0 }
 0x23c   : > { %v7482_v24 = vadd.f32 %v7481_v7, %v7480_v35  ;;  %v1706_v36 = vadd.f32 %v7479_v13, %v10406_v49  ;;  %v1866_v8 = vpop.f32.mrb[84].mxu1 }
 0x23d   : > { %3340 = vmatmul.mubr.bf16.vlgmr.msra.gmra.mrb[192].mxu0 %v9256_v40  ;;  %v1868_v59 = vpop.f32.mrb[85].mxu1  ;;  %v10764_v40 = vpop.permute.xlu0 %4056 }
 0x23e   : > { %v10754_v3 = vadd.f32 %v1866_v8, %v1706_v36  ;;  %v1709_v6 = vadd.f32 %v7482_v24, %v10417_v52  ;;  %v1869_v5 = vpop.f32.mrb[86].mxu1  ;;  %3347 = vmatprep.mubr.bf16.mxu0 %v9262_v56  ;;  %7768 = vmatpush3.bf16.msra.mxu0 %v10664_v44  ;;  %v9264_v52 = vld [vmem:[%s12509_s1 + $0x620] ss:$16 sps:$4 sm:$0xff]   ;;  %v9268_v44 = vld [vmem:[%s12509_s1 + $0x644] ss:$16 sps:$4 sm:$0xff]  }
 0x23f   : > { %v1871_v49 = vpop.f32.mrb[87].mxu1  ;;  %7769 = vmatprep.subr.bf16.mxu0 %v10653_v18  ;;  %v4039_v18 = vpop.permute.xlu1 %4038 }
 0x240   : > { %v10762_v31 = vadd.f32 %v1869_v5, %v1709_v6  ;;  %v7483_v12 = vpop.f32.mrb[88].mxu0 }
 0x241   : > { %v7484_v13 = vpop.f32.mrb[89].mxu0  ;;  %3501 = vmatmul.mubr.bf16.vlgmr.msra.gmra.mrb[192].mxu1 %v9259_v45  ;;  %v9267_v45 = vld [vmem:[%s12509_s1 + $0x628] ss:$16 sps:$4 sm:$0xff]  }
 0x242   : > { %v7485_v35 = vadd.f32 %v7484_v13, %v7483_v12  ;;  %v7486_v56 = vpop.f32.mrb[90].mxu0  ;;  %7075 = vmatprep.mubr.msk.bf16.mxu1 %vm901_vm0, %v9265_v15  ;;  %4323 = vmatpush1.bf16.msra.mxu1 %v10576_v4  ;;  %v9270_v13 = vld [vmem:[%s12509_s1 + $0x640] ss:$16 sps:$4 sm:$0xff]  }
 0x243   : > { %v7487_v7 = vpop.f32.mrb[91].mxu0  ;;  %4324 = vmatprep.subr.bf16.mxu1 %v9456_v0  ;;  %7770 = vmatpush3.bf16.msra.mxu0 %v10675_v54  ;;  %v9271_v54 = vld [vmem:[%s12509_s1 + $0x64c] ss:$16 sps:$4 sm:$0xff]  }
 0x244   : > { %v7488_v24 = vadd.f32 %v7487_v7, %v7486_v56  ;;  %v1714_v36 = vadd.f32 %v7485_v35, %v10431_v39  ;;  %v1874_v8 = vpop.f32.mrb[88].mxu1  ;;  %7771 = vmatprep.subr.bf16.mxu0 %v10700_v57  ;;  %v4041_v39 = vpop.permute.xlu0 %4040 }
 0x245   : > { %3348 = vmatmul.mubr.bf16.gmra.mrb[196].mxu0 %v9264_v52  ;;  %v1876_v59 = vpop.f32.mrb[89].mxu1 }
 0x246   : > { %v10781_v6 = vadd.f32 %v1874_v8, %v1714_v36  ;;  %v1717_v4 = vadd.f32 %v7488_v24, %v10440_v1  ;;  %v1877_v5 = vpop.f32.mrb[90].mxu1  ;;  %3355 = vmatprep.mubr.bf16.mxu0 %v9268_v44  ;;  %4325 = vmatpush1.bf16.msra.mxu1 %v10622_v48  ;;  %v10793_v1 = vpop.permute.xlu1 %4076  ;;  %v9273_v36 = vld [vmem:[%s12509_s1 + $0x648] ss:$16 sps:$4 sm:$0xff]  }
 0x247   : > { %v1879_v57 = vpop.f32.mrb[91].mxu1  ;;  %4326 = vmatprep.subr.bf16.mxu1 %v9456_v0  ;;  %7772 = vmatpush3.bf16.msra.mxu0 %v10716_v9  ;;  %v9274_v9 = vld [vmem:[%s12509_s1 + $0x664] ss:$16 sps:$4 sm:$0xff]  }
 0x248   : > { %v10790_v15 = vadd.f32 %v1877_v5, %v1717_v4  ;;  %v7489_v49 = vpop.f32.mrb[92].mxu0  ;;  %7773 = vmatprep.subr.bf16.mxu0 %v10712_v21  ;;  %v10806_v7 = vpop.permute.xlu0 %4078 }
 0x249   : > { %v7490_v12 = vpop.f32.mrb[93].mxu0  ;;  %3509 = vmatmul.mubr.bf16.gmra.mrb[196].mxu1 %v9267_v45 }
 0x24a   : > { %v7491_v48 = vadd.f32 %v7490_v12, %v7489_v49  ;;  %v7492_v52 = vpop.f32.mrb[94].mxu0  ;;  %7076 = vmatprep.mubr.msk.bf16.mxu1 %vm901_vm0, %v9271_v54  ;;  %4327 = vmatpush1.bf16.msra.mxu1 %v10641_v14 }
 0x24b   : > { %v7493_v35 = vpop.f32.mrb[95].mxu0  ;;  %4328 = vmatprep.subr.bf16.mxu1 %v9456_v0  ;;  %7774 = vmatpush3.bf16.msra.mxu0 %v10726_v50  ;;  %v4059_v50 = vpop.permute.xlu1 %4058 }
 0x24c   : > { %v7494_v21 = vadd.f32 %v7493_v35, %v7492_v52  ;;  %v1722_v56 = vadd.f32 %v7491_v48, %v10459_v62  ;;  %v1882_v44 = vpop.f32.mrb[92].mxu1  ;;  %7775 = vmatprep.subr.bf16.mxu0 %v4055_v61  ;;  %v9277_v62 = vld [vmem:[%s12509_s1 + $0x66c] ss:$16 sps:$4 sm:$0xff]  }
 0x24d   : > { %3356 = vmatmul.mubr.bf16.gmra.mrb[200].mxu0 %v9270_v13  ;;  %v1884_v24 = vpop.f32.mrb[93].mxu1 }
 0x24e   : > { %v10811_v8 = vadd.f32 %v1882_v44, %v1722_v56  ;;  %v1725_v14 = vadd.f32 %v7494_v21, %v10468_v11  ;;  %v1885_v59 = vpop.f32.mrb[94].mxu1  ;;  %3363 = vmatprep.mubr.bf16.mxu0 %v9274_v9  ;;  %4329 = vmatpush1.bf16.msra.mxu1 %v10678_v53  ;;  %v9276_v11 = vld [vmem:[%s12509_s1 + $0x660] ss:$16 sps:$4 sm:$0xff]   ;;  %v9280_v53 = vld [vmem:[%s12509_s1 + $0x684] ss:$16 sps:$4 sm:$0xff]  }
 0x24f   : > { %v1887_v61 = vpop.f32.mrb[95].mxu1  ;;  %4330 = vmatprep.subr.bf16.mxu1 %v9456_v0  ;;  %7776 = vmatpush3.bf16.msra.mxu0 %v4039_v18  ;;  %v4061_v18 = vpop.permute.xlu0 %4060  ;;  %v9279_v9 = vld [vmem:[%s12509_s1 + $0x668] ss:$16 sps:$4 sm:$0xff]  }
 0x250   : > { %v10819_v45 = vadd.f32 %v1885_v59, %v1725_v14  ;;  %v7495_v4 = vpop.f32.mrb[96].mxu0  ;;  %7777 = vmatprep.subr.bf16.mxu0 %v10764_v40  ;;  %v4043_v48 = vpop.permute.xlu1 %4042 }
 0x251   : > { %v7496_v5 = vpop.f32.mrb[97].mxu0  ;;  %3517 = vmatmul.mubr.bf16.gmra.mrb[200].mxu1 %v9273_v36 }
 0x252   : > { %v7497_v54 = vadd.f32 %v7496_v5, %v7495_v4  ;;  %v7498_v57 = vpop.f32.mrb[98].mxu0  ;;  %7077 = vmatprep.mubr.msk.bf16.mxu1 %vm901_vm0, %v9277_v62  ;;  %4331 = vmatpush1.bf16.msra.mxu1 %v10691_v28 }
 0x253   : > { %v7499_v49 = vpop.f32.mrb[99].mxu0  ;;  %4332 = vmatprep.subr.bf16.mxu1 %v9456_v0  ;;  %7778 = vmatpush3.bf16.msra.mxu0 %v4041_v39  ;;  %v9283_v39 = vld [vmem:[%s12509_s1 + $0x68c] ss:$16 sps:$4 sm:$0xff]   ;;  %v4045_v24 = vpop.permute.xlu0 %4044 }
 0x254   : > { %v7500_v40 = vadd.f32 %v7499_v49, %v7498_v57  ;;  %v1730_v12 = vadd.f32 %v7497_v54, %v10480_v25  ;;  %v1890_v13 = vpop.f32.mrb[96].mxu1  ;;  %7779 = vmatprep.subr.bf16.mxu0 %v4059_v50 }
 0x255   : > { %3364 = vmatmul.mubr.bf16.gmra.mrb[204].mxu0 %v9276_v11  ;;  %v1892_v52 = vpop.f32.mrb[97].mxu1  ;;  %v9285_v11 = vld [vmem:[%s12509_s1 + $0x688] ss:$16 sps:$4 sm:$0xff]  }
 0x256   : > { %v10835_v35 = vadd.f32 %v1890_v13, %v1730_v12  ;;  %v1733_v28 = vadd.f32 %v7500_v40, %v10489_v23  ;;  %v1893_v21 = vpop.f32.mrb[98].mxu1  ;;  %3371 = vmatprep.mubr.bf16.mxu0 %v9280_v53  ;;  %4333 = vmatpush1.bf16.msra.mxu1 %v10735_v63  ;;  %v9282_v23 = vld [vmem:[%s12509_s1 + $0x680] ss:$16 sps:$4 sm:$0xff]   ;;  %v9286_v63 = vld [vmem:[%s12509_s1 + $0x6a4] ss:$16 sps:$4 sm:$0xff]  }
 0x257   : > { %v1895_v25 = vpop.f32.mrb[99].mxu1  ;;  %4334 = vmatprep.subr.bf16.mxu1 %v9456_v0  ;;  %7780 = vmatpush3.bf16.msra.mxu0 %v4043_v48 }
 0x258   : > { %v10843_v56 = vadd.f32 %v1893_v21, %v1733_v28  ;;  %v7501_v44 = vpop.f32.mrb[100].mxu0  ;;  %7781 = vmatprep.subr.bf16.mxu0 %v4061_v18 }
 0x259   : > { %v7502_v36 = vpop.f32.mrb[101].mxu0  ;;  %3525 = vmatmul.mubr.bf16.gmra.mrb[204].mxu1 %v9279_v9 }
 0x25a   : > { %v7503_v14 = vadd.f32 %v7502_v36, %v7501_v44  ;;  %v7504_v59 = vpop.f32.mrb[102].mxu0  ;;  %7078 = vmatprep.mubr.msk.bf16.mxu1 %vm901_vm0, %v9283_v39  ;;  %4335 = vmatpush1.bf16.msra.mxu1 %v10748_v19  ;;  %v9289_v19 = vld [vmem:[%s12509_s1 + $0x6ac] ss:$16 sps:$4 sm:$0xff]   ;;  %v9291_v44 = vld [vmem:[%s12509_s1 + $0x6a8] ss:$16 sps:$4 sm:$0xff]  }
 0x25b   : > { %v7505_v62 = vpop.f32.mrb[103].mxu0  ;;  %4336 = vmatprep.subr.bf16.mxu1 %v9456_v0  ;;  %7782 = vmatpush3.bf16.msra.mxu0 %v4045_v24 }
 0x25c   : > { %v7506_v50 = vadd.f32 %v7505_v62, %v7504_v59  ;;  %v1738_v61 = vadd.f32 %v7503_v14, %v10501_v17  ;;  %v1898_v4 = vpop.f32.mrb[100].mxu1  ;;  %v4081_v17 = vpop.permute.xlu1 %4080 }
 0x25d   : > { %3372 = vmatmul.mubr.bf16.gmra.mrb[208].mxu0 %v9282_v23  ;;  %v1900_v5 = vpop.f32.mrb[101].mxu1 }
 0x25e   : > { %v10858_v54 = vadd.f32 %v1898_v4, %v1738_v61  ;;  %v1741_v57 = vadd.f32 %v7506_v50, %v10510_v37  ;;  %v1901_v53 = vpop.f32.mrb[102].mxu1  ;;  %3379 = vmatprep.mubr.bf16.mxu0 %v9286_v63  ;;  %4337 = vmatpush1.bf16.msra.mxu1 %v10793_v1  ;;  %v9288_v37 = vld [vmem:[%s12509_s1 + $0x6a0] ss:$16 sps:$4 sm:$0xff]   ;;  %v9292_v1 = vld [vmem:[%s12509_s1 + $0x6c4] ss:$16 sps:$4 sm:$0xff]  }
 0x25f   : > { %v1903_v18 = vpop.f32.mrb[103].mxu1  ;;  %4338 = vmatprep.subr.bf16.mxu1 %v9456_v0  ;;  %v9298_v4 = vld [vmem:[%s12509_s1 + $0x6e4] ss:$16 sps:$4 sm:$0xff]  }
 0x260   : > { %v10866_v49 = vadd.f32 %v1901_v53, %v1741_v57  ;;  %v7507_v40 = vpop.f32.mrb[104].mxu0  ;;  %v4083_v39 = vpop.permute.xlu1 %4082 }
 0x261   : > { %v7508_v12 = vpop.f32.mrb[105].mxu0  ;;  %3533 = vmatmul.mubr.bf16.gmra.mrb[208].mxu1 %v9285_v11  ;;  %v4159_v14 = vsel %vm950_vm1, %v4083_v39, 0 }
 0x262   : > { %v7509_v13 = vadd.f32 %v7508_v12, %v7507_v40  ;;  %v7510_v48 = vpop.f32.mrb[106].mxu0  ;;  %7079 = vmatprep.mubr.msk.bf16.mxu1 %vm901_vm0, %v9289_v19  ;;  %4339 = vmatpush1.bf16.msra.mxu1 %v10806_v7  ;;  %v9295_v7 = vld [vmem:[%s12509_s1 + $0x6cc] ss:$16 sps:$4 sm:$0xff]   ;;  %v9297_v19 = vld [vmem:[%s12509_s1 + $0x6c8] ss:$16 sps:$4 sm:$0xff]  }
 0x263   : > { %v7511_v52 = vpop.f32.mrb[107].mxu0  ;;  %4340 = vmatprep.subr.bf16.mxu1 %v9456_v0  ;;  %v9301_v12 = vld [vmem:[%s12509_s1 + $0x6ec] ss:$16 sps:$4 sm:$0xff]  }
 0x264   : > { %v7512_v9 = vadd.f32 %v7511_v52, %v7510_v48  ;;  %v1746_v28 = vadd.f32 %v7509_v13, %v10522_v46  ;;  %v1906_v21 = vpop.f32.mrb[104].mxu1 }
 0x265   : > { %3380 = vmatmul.mubr.bf16.gmra.mrb[212].mxu0 %v9288_v37  ;;  %v1908_v25 = vpop.f32.mrb[105].mxu1 }
 0x266   : > { %v10881_v24 = vadd.f32 %v1906_v21, %v1746_v28  ;;  %v1749_v36 = vadd.f32 %v7512_v9, %v10530_v26  ;;  %v1909_v23 = vpop.f32.mrb[106].mxu1  ;;  %3387 = vmatprep.mubr.bf16.mxu0 %v9292_v1  ;;  %4341 = vmatpush1.bf16.msra.mxu1 %v4081_v17  ;;  %v9294_v26 = vld [vmem:[%s12509_s1 + $0x6c0] ss:$16 sps:$4 sm:$0xff]  }
 0x267   : > { %v1911_v46 = vpop.f32.mrb[107].mxu1  ;;  %4342 = vmatprep.subr.bf16.mxu1 %v9456_v0  ;;  %v9300_v1 = vld [vmem:[%s12509_s1 + $0x6e0] ss:$16 sps:$4 sm:$0xff]  }
 0x268   : > { %v10889_v59 = vadd.f32 %v1909_v23, %v1749_v36  ;;  %v7513_v63 = vpop.f32.mrb[108].mxu0  ;;  %v9303_v36 = vld [vmem:[%s12509_s1 + $0x6e8] ss:$16 sps:$4 sm:$0xff]  }
 0x269   : > { %v7514_v62 = vpop.f32.mrb[109].mxu0  ;;  %3541 = vmatmul.mubr.bf16.gmra.mrb[212].mxu1 %v9291_v44 }
 0x26a   : > { %v7515_v50 = vadd.f32 %v7514_v62, %v7513_v63  ;;  %v7516_v61 = vpop.f32.mrb[110].mxu0  ;;  %7080 = vmatprep.mubr.msk.bf16.mxu1 %vm901_vm0, %v9295_v7  ;;  %4343 = vmatpush1.bf16.msra.mxu1 %v4159_v14  ;;  %v9307_v14 = vld [vmem:[%s12509_s1 + $0x70c] ss:$16 sps:$4 sm:$0xff]  }
 0x26b   : > { %v7517_v5 = vpop.f32.mrb[111].mxu0 }
 0x26c   : > { %v7518_v0 = vadd.f32 %v7517_v5, %v7516_v61  ;;  %v1754_v11 = vadd.f32 %v7515_v50, %v10542_v58  ;;  %v1914_v57 = vpop.f32.mrb[108].mxu1  ;;  %v9306_v50 = vld [vmem:[%s12509_s1 + $0x700] ss:$16 sps:$4 sm:$0xff]  }
 0x26d   : > { %3388 = vmatmul.mubr.bf16.gmra.mrb[216].mxu0 %v9294_v26  ;;  %v1916_v53 = vpop.f32.mrb[109].mxu1 }
 0x26e   : > { %v10902_v17 = vadd.f32 %v1914_v57, %v1754_v11  ;;  %v1757_v18 = vadd.f32 %v7518_v0, %v10550_v29  ;;  %v1917_v40 = vpop.f32.mrb[110].mxu1  ;;  %3395 = vmatprep.mubr.bf16.mxu0 %v9298_v4  ;;  %v9304_v29 = vld [vmem:[%s12509_s1 + $0x704] ss:$16 sps:$4 sm:$0xff]  }
 0x26f   : > { %v1919_v37 = vpop.f32.mrb[111].mxu1 }
 0x270   : > { %v10908_v13 = vadd.f32 %v1917_v40, %v1757_v18  ;;  %v7519_v58 = vpop.f32.mrb[112].mxu0  ;;  %v9313_v37 = vld [vmem:[%s12509_s1 + $0x72c] ss:$16 sps:$4 sm:$0xff]  }
 0x271   : > { %v7520_v48 = vpop.f32.mrb[113].mxu0  ;;  %3549 = vmatmul.mubr.bf16.gmra.mrb[216].mxu1 %v9297_v19  ;;  %v9309_v19 = vld [vmem:[%s12509_s1 + $0x708] ss:$16 sps:$4 sm:$0xff]  }
 0x272   : > { %v7521_v52 = vadd.f32 %v7520_v48, %v7519_v58  ;;  %v7522_v9 = vpop.f32.mrb[114].mxu0  ;;  %7081 = vmatprep.mubr.msk.bf16.mxu1 %vm901_vm0, %v9301_v12 }
 0x273   : > { %v7523_v28 = vpop.f32.mrb[115].mxu0 }
 0x274   : > { %v7524_v21 = vadd.f32 %v7523_v28, %v7522_v9  ;;  %v1762_v39 = vadd.f32 %v7521_v52, %v10559_v38  ;;  %v1922_v25 = vpop.f32.mrb[112].mxu1  ;;  %v9312_v52 = vld [vmem:[%s12509_s1 + $0x720] ss:$16 sps:$4 sm:$0xff]  }
 0x275   : > { %3396 = vmatmul.mubr.bf16.gmra.mrb[220].mxu0 %v9300_v1  ;;  %v1924_v44 = vpop.f32.mrb[113].mxu1 }
 0x276   : > { %v10921_v23 = vadd.f32 %v1922_v25, %v1762_v39  ;;  %v1765_v7 = vadd.f32 %v7524_v21, %v10567_v30  ;;  %v1925_v46 = vpop.f32.mrb[114].mxu1  ;;  %3403 = vmatprep.mubr.bf16.mxu0 %v9304_v29  ;;  %v9310_v30 = vld [vmem:[%s12509_s1 + $0x724] ss:$16 sps:$4 sm:$0xff]  }
 0x277   : > { %v1927_v63 = vpop.f32.mrb[115].mxu1 }
 0x278   : > { %v10927_v62 = vadd.f32 %v1925_v46, %v1765_v7  ;;  %v7525_v38 = vpop.f32.mrb[116].mxu0  ;;  %v9319_v63 = vld [vmem:[%s12509_s1 + $0x74c] ss:$16 sps:$4 sm:$0xff]  }
 0x279   : > { %v7526_v26 = vpop.f32.mrb[117].mxu0  ;;  %3557 = vmatmul.mubr.bf16.gmra.mrb[220].mxu1 %v9303_v36  ;;  %v9315_v36 = vld [vmem:[%s12509_s1 + $0x728] ss:$16 sps:$4 sm:$0xff]  }
 0x27a   : > { %v7527_v61 = vadd.f32 %v7526_v26, %v7525_v38  ;;  %v7528_v4 = vpop.f32.mrb[118].mxu0  ;;  %7082 = vmatprep.mubr.msk.bf16.mxu1 %vm901_vm0, %v9307_v14 }
 0x27b   : > { %v7529_v5 = vpop.f32.mrb[119].mxu0 }
 0x27c   : > { %v7530_v0 = vadd.f32 %v7529_v5, %v7528_v4  ;;  %v1770_v11 = vadd.f32 %v7527_v61, %v10578_v27  ;;  %v1930_v57 = vpop.f32.mrb[116].mxu1  ;;  %v9318_v61 = vld [vmem:[%s12509_s1 + $0x740] ss:$16 sps:$4 sm:$0xff]  }
 0x27d   : > { %3404 = vmatmul.mubr.bf16.gmra.mrb[224].mxu0 %v9306_v50  ;;  %v1932_v53 = vpop.f32.mrb[117].mxu1 }
 0x27e   : > { %v10940_v18 = vadd.f32 %v1930_v57, %v1770_v11  ;;  %v1773_v40 = vadd.f32 %v7530_v0, %v10586_v32  ;;  %v1933_v12 = vpop.f32.mrb[118].mxu1  ;;  %3411 = vmatprep.mubr.bf16.mxu0 %v9310_v30  ;;  %v9316_v32 = vld [vmem:[%s12509_s1 + $0x744] ss:$16 sps:$4 sm:$0xff]  }
 0x27f   : > { %v1935_v58 = vpop.f32.mrb[119].mxu1 }
 0x280   : > { %v10946_v48 = vadd.f32 %v1933_v12, %v1773_v40  ;;  %v7531_v27 = vpop.f32.mrb[120].mxu0  ;;  %v9325_v58 = vld [vmem:[%s12509_s1 + $0x76c] ss:$16 sps:$4 sm:$0xff]  }
 0x281   : > { %v7532_v1 = vpop.f32.mrb[121].mxu0  ;;  %3565 = vmatmul.mubr.bf16.gmra.mrb[224].mxu1 %v9309_v19  ;;  %v9321_v19 = vld [vmem:[%s12509_s1 + $0x748] ss:$16 sps:$4 sm:$0xff]  }
 0x282   : > { %v7533_v9 = vadd.f32 %v7532_v1, %v7531_v27  ;;  %v7534_v29 = vpop.f32.mrb[122].mxu0  ;;  %7083 = vmatprep.mubr.msk.bf16.mxu1 %vm901_vm0, %v9313_v37 }
 0x283   : > { %v7535_v28 = vpop.f32.mrb[123].mxu0 }
 0x284   : > { %v7536_v21 = vadd.f32 %v7535_v28, %v7534_v29  ;;  %v1778_v39 = vadd.f32 %v7533_v9, %v10595_v51  ;;  %v1938_v25 = vpop.f32.mrb[120].mxu1  ;;  %v9324_v9 = vld [vmem:[%s12509_s1 + $0x760] ss:$16 sps:$4 sm:$0xff]  }
 0x285   : > { %3412 = vmatmul.mubr.bf16.gmra.mrb[228].mxu0 %v9312_v52  ;;  %v1940_v44 = vpop.f32.mrb[121].mxu1 }
 0x286   : > { %v10959_v7 = vadd.f32 %v1938_v25, %v1778_v39  ;;  %v1781_v46 = vadd.f32 %v7536_v21, %v10603_v33  ;;  %v1941_v14 = vpop.f32.mrb[122].mxu1  ;;  %3419 = vmatprep.mubr.bf16.mxu0 %v9316_v32  ;;  %v9322_v33 = vld [vmem:[%s12509_s1 + $0x764] ss:$16 sps:$4 sm:$0xff]  }
 0x287   : > { %v1943_v38 = vpop.f32.mrb[123].mxu1 }
 0x288   : > { %v10965_v26 = vadd.f32 %v1941_v14, %v1781_v46  ;;  %v7537_v51 = vpop.f32.mrb[124].mxu0  ;;  %v4532_v46 = vld [vmem:[%s12510_s2 + $0x88] sm:$0xff] }
 0x289   : > { %v7538_v50 = vpop.f32.mrb[125].mxu0  ;;  %3573 = vmatmul.mubr.bf16.gmra.mrb[228].mxu1 %v9315_v36  ;;  %v9327_v36 = vld [vmem:[%s12509_s1 + $0x768] ss:$16 sps:$4 sm:$0xff]   ;;  %4634 = vperm.xlu1 %8567, %v4532_v46  }
 0x28a   : > { %v7539_v4 = vadd.f32 %v7538_v50, %v7537_v51  ;;  %v7540_v30 = vpop.f32.mrb[126].mxu0  ;;  %7084 = vmatprep.mubr.msk.bf16.mxu1 %vm901_vm0, %v9319_v63  ;;  %v9331_v63 = vld [vmem:[%s12509_s1 + $0x78c] ss:$16 sps:$4 sm:$0xff]  }
 0x28b   : > { %v7541_v5 = vpop.f32.mrb[127].mxu0 }
 0x28c   : > { %v7542_v0 = vadd.f32 %v7541_v5, %v7540_v30  ;;  %v1786_v11 = vadd.f32 %v7539_v4, %v10612_v41  ;;  %v1946_v57 = vpop.f32.mrb[124].mxu1  ;;  %v9330_v5 = vld [vmem:[%s12509_s1 + $0x780] ss:$16 sps:$4 sm:$0xff]  }
 0x28d   : > { %3420 = vmatmul.mubr.bf16.gmra.mrb[232].mxu0 %v9318_v61  ;;  %v1948_v53 = vpop.f32.mrb[125].mxu1  ;;  %v4531_v61 = vld [vmem:[%s12510_s2 + $0x80] sm:$0xff] }
 0x28e   : > { %v10978_v40 = vadd.f32 %v1946_v57, %v1786_v11  ;;  %v1789_v12 = vadd.f32 %v7542_v0, %v10620_v55  ;;  %v1949_v37 = vpop.f32.mrb[126].mxu1  ;;  %3427 = vmatprep.mubr.bf16.mxu0 %v9322_v33  ;;  %v9328_v55 = vld [vmem:[%s12509_s1 + $0x784] ss:$16 sps:$4 sm:$0xff]   ;;  %4629 = vperm.xlu0 %8566, %v4531_v61   ;;  %v4516_v53 = vld [vmem:[%s12510_s2 + $0x8] sm:$0xff] }
 0x28f   : > { %v1951_v27 = vpop.f32.mrb[127].mxu1  ;;  %v9334_v57 = vld [vmem:[%s12509_s1 + $0x7a4] ss:$16 sps:$4 sm:$0xff]  }
 0x290   : > { %v10984_v1 = vadd.f32 %v1949_v37, %v1789_v12  ;;  %v7559_v41 = vpop.f32.mrb[128].mxu0  ;;  %v9333_v27 = vld [vmem:[%s12509_s1 + $0x788] ss:$16 sps:$4 sm:$0xff]  }
 0x291   : > { %v7560_v52 = vpop.f32.mrb[129].mxu0  ;;  %3581 = vmatmul.mubr.bf16.gmra.mrb[232].mxu1 %v9321_v19 }
 0x292   : > { %v7561_v29 = vadd.f32 %v7560_v52, %v7559_v41  ;;  %v7562_v32 = vpop.f32.mrb[130].mxu0  ;;  %7085 = vmatprep.mubr.msk.bf16.mxu1 %vm901_vm0, %v9325_v58  ;;  %4554 = vperm.xlu0 %8566, %v4516_v53   ;;  %v4533_v41 = vld [vmem:[%s12510_s2 + $0x90] sm:$0xff]  ;;  %v4536_v53 = vld [vmem:[%s12510_s2 + $0xa8] sm:$0xff] }
 0x293   : > { %v7563_v28 = vpop.f32.mrb[131].mxu0 }
 0x294   : > { %v7564_v21 = vadd.f32 %v7563_v28, %v7562_v32  ;;  %v2648_v39 = vpop.f32.mrb[128].mxu1  ;;  %v4534_v28 = vld [vmem:[%s12510_s2 + $0x98] sm:$0xff] }
 0x295   : > { %v2649_v25 = vadd.f32 %v7561_v29, %v2648_v39  ;;  %3428 = vmatmul.mubr.bf16.gmra.mrb[236].mxu0 %v9324_v9  ;;  %v2650_v44 = vpop.f32.mrb[129].mxu1  ;;  %v9337_v9 = vld [vmem:[%s12509_s1 + $0x7ac] ss:$16 sps:$4 sm:$0xff]  }
 0x296   : > { %v2651_v14 = vpop.f32.mrb[130].mxu1  ;;  %3435 = vmatprep.mubr.bf16.mxu0 %v9328_v55  ;;  %4644 = vperm.xlu0 %8566, %v4534_v28   ;;  %v9336_v44 = vld [vmem:[%s12509_s1 + $0x7a0] ss:$16 sps:$4 sm:$0xff]  }
 0x297   : > { %v11003_v38 = vadd.f32 %v2649_v25, %v10635_v2  ;;  %v2652_v51 = vadd.f32 %v7564_v21, %v2651_v14  ;;  %v2653_v50 = vpop.f32.mrb[131].mxu1  ;;  %v4515_v2 = vld [vmem:[%s12510_s2] sm:$0xff] }
 0x298   : > { %v7565_v4 = vpop.f32.mrb[132].mxu0  ;;  %4549 = vperm.xlu1 %8567, %v4515_v2   ;;  %v9340_v14 = vld [vmem:[%s12509_s1 + $0x7c4] ss:$16 sps:$4 sm:$0xff]  }
 0x299   : > { %v11009_v30 = vadd.f32 %v2652_v51, %v10643_v43  ;;  %v7566_v33 = vpop.f32.mrb[133].mxu0  ;;  %3589 = vmatmul.mubr.bf16.gmra.mrb[236].mxu1 %v9327_v36 }
 0x29a   : > { %v7567_v0 = vadd.f32 %v7566_v33, %v7565_v4  ;;  %v7568_v11 = vpop.f32.mrb[134].mxu0  ;;  %7086 = vmatprep.mubr.msk.bf16.mxu1 %vm901_vm0, %v9331_v63  ;;  %v4518_v63 = vld [vmem:[%s12510_s2 + $0x18] sm:$0xff] }
 0x29b   : > { %v7569_v43 = vpop.f32.mrb[135].mxu0  ;;  %4564 = vperm.xlu0 %8566, %v4518_v63   ;;  %v9339_v33 = vld [vmem:[%s12509_s1 + $0x7a8] ss:$16 sps:$4 sm:$0xff]  }
 0x29c   : > { %v7570_v19 = vadd.f32 %v7569_v43, %v7568_v11  ;;  %v2656_v12 = vpop.f32.mrb[132].mxu1  ;;  %4639 = vperm.xlu1 %8567, %v4533_v41   ;;  %v4538_v63 = vld [vmem:[%s12510_s2 + $0xb8] sm:$0xff] }
 0x29d   : > { %v2657_v37 = vadd.f32 %v7567_v0, %v2656_v12  ;;  %3436 = vmatmul.mubr.bf16.gmra.mrb[240].mxu0 %v9330_v5  ;;  %v2658_v58 = vpop.f32.mrb[133].mxu1  ;;  %v4535_v5 = vld [vmem:[%s12510_s2 + $0xa0] sm:$0xff]  ;;  %v9343_v0 = vld [vmem:[%s12509_s1 + $0x7cc] ss:$16 sps:$4 sm:$0xff]  }
 0x29e   : > { %v2659_v52 = vpop.f32.mrb[134].mxu1  ;;  %3443 = vmatprep.mubr.bf16.mxu0 %v9334_v57  ;;  %v9342_v58 = vld [vmem:[%s12509_s1 + $0x7c0] ss:$16 sps:$4 sm:$0xff]  }
 0x29f   : > { %v11034_v29 = vadd.f32 %v2657_v37, %v10658_v42  ;;  %v2660_v32 = vadd.f32 %v7570_v19, %v2659_v52  ;;  %v2661_v55 = vpop.f32.mrb[135].mxu1  ;;  %v4517_v42 = vld [vmem:[%s12510_s2 + $0x10] sm:$0xff]  ;;  %4654 = vperm.xlu0 %8566, %v4536_v53  }
 0x2a0   : > { %v7571_v21 = vpop.f32.mrb[136].mxu0  ;;  %4559 = vperm.xlu1 %8567, %v4517_v42   ;;  %v9346_v52 = vld [vmem:[%s12509_s1 + $0x7e4] ss:$16 sps:$4 sm:$0xff]  }
 0x2a1   : > { %v11040_v39 = vadd.f32 %v2660_v32, %v10666_v47  ;;  %v7572_v25 = vpop.f32.mrb[137].mxu0  ;;  %3597 = vmatmul.mubr.bf16.gmra.mrb[240].mxu1 %v9333_v27 }
 0x2a2   : > { %v7573_v36 = vadd.f32 %v7572_v25, %v7571_v21  ;;  %v7574_v46 = vpop.f32.mrb[138].mxu0  ;;  %7087 = vmatprep.mubr.msk.bf16.mxu1 %vm901_vm0, %v9337_v9  ;;  %v4520_v9 = vld [vmem:[%s12510_s2 + $0x28] sm:$0xff] }
 0x2a3   : > { %v7575_v47 = vpop.f32.mrb[139].mxu0  ;;  %4574 = vperm.xlu0 %8566, %v4520_v9   ;;  %v9345_v25 = vld [vmem:[%s12509_s1 + $0x7c8] ss:$16 sps:$4 sm:$0xff]  }
 0x2a4   : > { %v7576_v51 = vadd.f32 %v7575_v47, %v7574_v46  ;;  %v2664_v50 = vpop.f32.mrb[136].mxu1  ;;  %4649 = vperm.xlu1 %8567, %v4535_v5   ;;  %v4540_v9 = vld [vmem:[%s12510_s2 + $0xc8] sm:$0xff] }
 0x2a5   : > { %v2665_v61 = vadd.f32 %v7573_v36, %v2664_v50  ;;  %3444 = vmatmul.mubr.bf16.gmra.mrb[244].mxu0 %v9336_v44  ;;  %v2666_v4 = vpop.f32.mrb[137].mxu1  ;;  %v4537_v44 = vld [vmem:[%s12510_s2 + $0xb0] sm:$0xff]  ;;  %v9349_v36 = vld [vmem:[%s12509_s1 + $0x7ec] ss:$16 sps:$4 sm:$0xff]  }
 0x2a6   : > { %v2667_v2 = vpop.f32.mrb[138].mxu1  ;;  %3451 = vmatprep.mubr.bf16.mxu0 %v9340_v14  ;;  %v9348_v4 = vld [vmem:[%s12509_s1 + $0x7e0] ss:$16 sps:$4 sm:$0xff]  }
 0x2a7   : > { %v11065_v11 = vadd.f32 %v2665_v61, %v10683_v22  ;;  %v2668_v57 = vadd.f32 %v7576_v51, %v2667_v2  ;;  %v2669_v43 = vpop.f32.mrb[139].mxu1  ;;  %v4519_v22 = vld [vmem:[%s12510_s2 + $0x20] sm:$0xff]  ;;  %4664 = vperm.xlu0 %8566, %v4538_v63  }
 0x2a8   : > { %v7577_v19 = vpop.f32.mrb[140].mxu0  ;;  %4569 = vperm.xlu1 %8567, %v4519_v22   ;;  %v9354_v2 = vld [vmem:[%s12509_s1 + $0x804] ss:$16 sps:$4 sm:$0xff]  }
 0x2a9   : > { %v11071_v12 = vadd.f32 %v2668_v57, %v10689_v16  ;;  %v7578_v37 = vpop.f32.mrb[141].mxu0  ;;  %3605 = vmatmul.mubr.bf16.gmra.mrb[244].mxu1 %v9339_v33 }
 0x2aa   : > { %v7579_v27 = vadd.f32 %v7578_v37, %v7577_v19  ;;  %v7580_v41 = vpop.f32.mrb[142].mxu0  ;;  %7088 = vmatprep.mubr.msk.bf16.mxu1 %vm901_vm0, %v9343_v0  ;;  %v4522_v0 = vld [vmem:[%s12510_s2 + $0x38] sm:$0xff] }
 0x2ab   : > { %v7581_v16 = vpop.f32.mrb[143].mxu0  ;;  %4584 = vperm.xlu0 %8566, %v4522_v0   ;;  %v9351_v37 = vld [vmem:[%s12509_s1 + $0x7e8] ss:$16 sps:$4 sm:$0xff]  }
 0x2ac   : > { %v7582_v32 = vadd.f32 %v7581_v16, %v7580_v41  ;;  %v2672_v55 = vpop.f32.mrb[140].mxu1  ;;  %4659 = vperm.xlu1 %8567, %v4537_v44   ;;  %v4542_v0 = vld [vmem:[%s12510_s2 + $0xd8] sm:$0xff] }
 0x2ad   : > { %v2673_v28 = vadd.f32 %v7579_v27, %v2672_v55  ;;  %3452 = vmatmul.mubr.bf16.gmra.mrb[248].mxu0 %v9342_v58  ;;  %v2674_v21 = vpop.f32.mrb[141].mxu1  ;;  %v4539_v58 = vld [vmem:[%s12510_s2 + $0xc0] sm:$0xff]  ;;  %v9357_v27 = vld [vmem:[%s12509_s1 + $0x80c] ss:$16 sps:$4 sm:$0xff]  }
 0x2ae   : > { %v2675_v42 = vpop.f32.mrb[142].mxu1  ;;  %3459 = vmatprep.mubr.bf16.mxu0 %v9346_v52  ;;  %v9352_v21 = vld [vmem:[%s12509_s1 + $0x800] ss:$16 sps:$4 sm:$0xff]  }
 0x2af   : > { %v11096_v46 = vadd.f32 %v2673_v28, %v10706_v10  ;;  %v2676_v14 = vadd.f32 %v7582_v32, %v2675_v42  ;;  %v2677_v47 = vpop.f32.mrb[143].mxu1  ;;  %v4521_v10 = vld [vmem:[%s12510_s2 + $0x30] sm:$0xff]  ;;  %4674 = vperm.xlu0 %8566, %v4540_v9  }
 0x2b0   : > { %v7583_v51 = vpop.f32.mrb[144].mxu0  ;;  %4579 = vperm.xlu1 %8567, %v4521_v10   ;;  %v9360_v42 = vld [vmem:[%s12509_s1 + $0x824] ss:$16 sps:$4 sm:$0xff]  }
 0x2b1   : > { %v11102_v50 = vadd.f32 %v2676_v14, %v10714_v60  ;;  %v7584_v61 = vpop.f32.mrb[145].mxu0  ;;  %3613 = vmatmul.mubr.bf16.gmra.mrb[248].mxu1 %v9345_v25 }
 0x2b2   : > { %v7585_v33 = vadd.f32 %v7584_v61, %v7583_v51  ;;  %v7586_v5 = vpop.f32.mrb[146].mxu0  ;;  %7089 = vmatprep.mubr.msk.bf16.mxu1 %vm901_vm0, %v9349_v36  ;;  %v4524_v36 = vld [vmem:[%s12510_s2 + $0x48] sm:$0xff] }
 0x2b3   : > { %v7587_v60 = vpop.f32.mrb[147].mxu0  ;;  %4594 = vperm.xlu0 %8566, %v4524_v36   ;;  %v9355_v61 = vld [vmem:[%s12509_s1 + $0x808] ss:$16 sps:$4 sm:$0xff]  }
 0x2b4   : > { %v7588_v57 = vadd.f32 %v7587_v60, %v7586_v5  ;;  %v2680_v43 = vpop.f32.mrb[144].mxu1  ;;  %4669 = vperm.xlu1 %8567, %v4539_v58   ;;  %v4544_v36 = vld [vmem:[%s12510_s2 + $0xe8] sm:$0xff] }
 0x2b5   : > { %v2681_v53 = vadd.f32 %v7585_v33, %v2680_v43  ;;  %3460 = vmatmul.mubr.bf16.gmra.mrb[252].mxu0 %v9348_v4  ;;  %v2682_v19 = vpop.f32.mrb[145].mxu1  ;;  %v4541_v4 = vld [vmem:[%s12510_s2 + $0xd0] sm:$0xff]  ;;  %v9363_v33 = vld [vmem:[%s12509_s1 + $0x82c] ss:$16 sps:$4 sm:$0xff]  }
 0x2b6   : > { %v2683_v22 = vpop.f32.mrb[146].mxu1  ;;  %4193 = vmatprep.mubr.bf16.mxu0 %v9354_v2  ;;  %v9358_v19 = vld [vmem:[%s12509_s1 + $0x820] ss:$16 sps:$4 sm:$0xff]  }
 0x2b7   : > { %v11127_v41 = vadd.f32 %v2681_v53, %v10737_v34  ;;  %v2684_v52 = vadd.f32 %v7588_v57, %v2683_v22  ;;  %v2685_v16 = vpop.f32.mrb[147].mxu1  ;;  %v4523_v34 = vld [vmem:[%s12510_s2 + $0x40] sm:$0xff]  ;;  %4684 = vperm.xlu0 %8566, %v4542_v0  }
 0x2b8   : > { %v7589_v32 = vpop.f32.mrb[148].mxu0  ;;  %4589 = vperm.xlu1 %8567, %v4523_v34   ;;  %v9366_v22 = vld [vmem:[%s12509_s1 + $0x844] ss:$16 sps:$4 sm:$0xff]  }
 0x2b9   : > { %v11133_v55 = vadd.f32 %v2684_v52, %v10739_v20  ;;  %v7590_v28 = vpop.f32.mrb[149].mxu0  ;;  %3621 = vmatmul.mubr.bf16.gmra.mrb[252].mxu1 %v9351_v37 }
 0x2ba   : > { %v7591_v25 = vadd.f32 %v7590_v28, %v7589_v32  ;;  %v7592_v44 = vpop.f32.mrb[150].mxu0  ;;  %7218 = vmatprep.mubr.msk.bf16.mxu1 %vm901_vm0, %v9357_v27  ;;  %v4526_v27 = vld [vmem:[%s12510_s2 + $0x58] sm:$0xff] }
 0x2bb   : > { %v7593_v20 = vpop.f32.mrb[151].mxu0  ;;  %4604 = vperm.xlu0 %8566, %v4526_v27   ;;  %v9361_v28 = vld [vmem:[%s12509_s1 + $0x828] ss:$16 sps:$4 sm:$0xff]  }
 0x2bc   : > { %v7594_v14 = vadd.f32 %v7593_v20, %v7592_v44  ;;  %v2688_v47 = vpop.f32.mrb[148].mxu1  ;;  %4679 = vperm.xlu1 %8567, %v4541_v4   ;;  %v4546_v27 = vld [vmem:[%s12510_s2 + $0xf8] sm:$0xff] }
 0x2bd   : > { %v2689_v63 = vadd.f32 %v7591_v25, %v2688_v47  ;;  %4194 = vmatmul.mubr.bf16.vlgmr.msra.gmra.mrb[0].mxu0 %v9352_v21  ;;  %v2690_v51 = vpop.f32.mrb[149].mxu1  ;;  %v4543_v21 = vld [vmem:[%s12510_s2 + $0xe0] sm:$0xff]  ;;  %v9369_v25 = vld [vmem:[%s12509_s1 + $0x84c] ss:$16 sps:$4 sm:$0xff]  }
 0x2be   : > { %v2691_v10 = vpop.f32.mrb[150].mxu1  ;;  %4201 = vmatprep.mubr.bf16.mxu0 %v9360_v42  ;;  %v9364_v51 = vld [vmem:[%s12509_s1 + $0x840] ss:$16 sps:$4 sm:$0xff]  }
 0x2bf   : > { %v11158_v5 = vadd.f32 %v2689_v63, %v10754_v3  ;;  %v2692_v2 = vadd.f32 %v7594_v14, %v2691_v10  ;;  %v2693_v60 = vpop.f32.mrb[151].mxu1  ;;  %v4525_v3 = vld [vmem:[%s12510_s2 + $0x50] sm:$0xff]  ;;  %4694 = vperm.xlu0 %8566, %v4544_v36  }
 0x2c0   : > { %v7595_v57 = vpop.f32.mrb[152].mxu0  ;;  %4599 = vperm.xlu1 %8567, %v4525_v3   ;;  %v9372_v10 = vld [vmem:[%s12509_s1 + $0x864] ss:$16 sps:$4 sm:$0xff]  }
 0x2c1   : > { %v11164_v43 = vadd.f32 %v2692_v2, %v10762_v31  ;;  %v7596_v53 = vpop.f32.mrb[153].mxu0  ;;  %4355 = vmatmul.mubr.bf16.vlgmr.msra.gmra.mrb[0].mxu1 %v9355_v61 }
 0x2c2   : > { %v7597_v37 = vadd.f32 %v7596_v53, %v7595_v57  ;;  %v7598_v58 = vpop.f32.mrb[154].mxu0  ;;  %7219 = vmatprep.mubr.msk.bf16.mxu1 %vm901_vm0, %v9363_v33  ;;  %v4528_v33 = vld [vmem:[%s12510_s2 + $0x68] sm:$0xff] }
 0x2c3   : > { %v7599_v31 = vpop.f32.mrb[155].mxu0  ;;  %4614 = vperm.xlu0 %8566, %v4528_v33   ;;  %v9367_v53 = vld [vmem:[%s12509_s1 + $0x848] ss:$16 sps:$4 sm:$0xff]  }
 0x2c4   : > { %v7600_v52 = vadd.f32 %v7599_v31, %v7598_v58  ;;  %v2696_v16 = vpop.f32.mrb[152].mxu1  ;;  %4689 = vperm.xlu1 %8567, %v4543_v21  }
 0x2c5   : > { %v2697_v9 = vadd.f32 %v7597_v37, %v2696_v16  ;;  %4202 = vmatmul.mubr.bf16.gmra.mrb[4].mxu0 %v9358_v19  ;;  %v2698_v32 = vpop.f32.mrb[153].mxu1  ;;  %v4545_v19 = vld [vmem:[%s12510_s2 + $0xf0] sm:$0xff]  ;;  %v9375_v37 = vld [vmem:[%s12509_s1 + $0x86c] ss:$16 sps:$4 sm:$0xff]  }
 0x2c6   : > { %v2699_v34 = vpop.f32.mrb[154].mxu1  ;;  %4209 = vmatprep.mubr.bf16.mxu0 %v9366_v22  ;;  %v9370_v32 = vld [vmem:[%s12509_s1 + $0x860] ss:$16 sps:$4 sm:$0xff]  }
 0x2c7   : > { %v11189_v44 = vadd.f32 %v2697_v9, %v10781_v6  ;;  %v2700_v42 = vadd.f32 %v7600_v52, %v2699_v34  ;;  %v2701_v20 = vpop.f32.mrb[155].mxu1  ;;  %v4527_v6 = vld [vmem:[%s12510_s2 + $0x60] sm:$0xff]  ;;  %4704 = vperm.xlu0 %8566, %v4546_v27   ;;  %v9387_v27 = vld [vmem:[%s12509_s1 + $0x8ac] ss:$16 sps:$4 sm:$0xff]  }
 0x2c8   : > { %v7601_v14 = vpop.f32.mrb[156].mxu0  ;;  %4609 = vperm.xlu1 %8567, %v4527_v6   ;;  %v9378_v34 = vld [vmem:[%s12509_s1 + $0x884] ss:$16 sps:$4 sm:$0xff]   ;;  %v9381_v6 = vld [vmem:[%s12509_s1 + $0x88c] ss:$16 sps:$4 sm:$0xff]  }
 0x2c9   : > { %v11195_v47 = vadd.f32 %v2700_v42, %v10790_v15  ;;  %v7602_v63 = vpop.f32.mrb[157].mxu0  ;;  %4363 = vmatmul.mubr.bf16.gmra.mrb[4].mxu1 %v9361_v28 }
 0x2ca   : > { %v7603_v61 = vadd.f32 %v7602_v63, %v7601_v14  ;;  %v7604_v4 = vpop.f32.mrb[158].mxu0  ;;  %7220 = vmatprep.mubr.msk.bf16.mxu1 %vm901_vm0, %v9369_v25  ;;  %v4530_v25 = vld [vmem:[%s12510_s2 + $0x78] sm:$0xff] }
 0x2cb   : > { %v7605_v15 = vpop.f32.mrb[159].mxu0  ;;  %4624 = vperm.xlu0 %8566, %v4530_v25   ;;  %v9373_v63 = vld [vmem:[%s12509_s1 + $0x868] ss:$16 sps:$4 sm:$0xff]  }
 0x2cc   : > { %v7606_v2 = vadd.f32 %v7605_v15, %v7604_v4  ;;  %v2704_v60 = vpop.f32.mrb[156].mxu1  ;;  %4699 = vperm.xlu1 %8567, %v4545_v19  }
 0x2cd   : > { %v2705_v0 = vadd.f32 %v7603_v61, %v2704_v60  ;;  %4210 = vmatmul.mubr.bf16.gmra.mrb[8].mxu0 %v9364_v51  ;;  %v2706_v57 = vpop.f32.mrb[157].mxu1  ;;  %v9376_v60 = vld [vmem:[%s12509_s1 + $0x880] ss:$16 sps:$4 sm:$0xff]  }
 0x2ce   : > { %v2707_v3 = vpop.f32.mrb[158].mxu1  ;;  %4217 = vmatprep.mubr.bf16.mxu0 %v9372_v10 }
 0x2cf   : > { %v11220_v58 = vadd.f32 %v2705_v0, %v10811_v8  ;;  %v2708_v22 = vadd.f32 %v7606_v2, %v2707_v3  ;;  %v2709_v31 = vpop.f32.mrb[159].mxu1  ;;  %v4529_v8 = vld [vmem:[%s12510_s2 + $0x70] sm:$0xff] }
 0x2d0   : > { %v7607_v52 = vpop.f32.mrb[160].mxu0  ;;  %4619 = vperm.xlu1 %8567, %v4529_v8  }
 0x2d1   : > { %v11226_v16 = vadd.f32 %v2708_v22, %v10819_v45  ;;  %v7608_v9 = vpop.f32.mrb[161].mxu0  ;;  %4371 = vmatmul.mubr.bf16.gmra.mrb[8].mxu1 %v9367_v53  ;;  %v9379_v22 = vld [vmem:[%s12509_s1 + $0x888] ss:$16 sps:$4 sm:$0xff]  }
 0x2d2   : > { %v7609_v28 = vadd.f32 %v7608_v9, %v7607_v52  ;;  %v7610_v21 = vpop.f32.mrb[162].mxu0  ;;  %7221 = vmatprep.mubr.msk.bf16.mxu1 %vm901_vm0, %v9375_v37 }
 0x2d3   : > { %v7611_v45 = vpop.f32.mrb[163].mxu0 }
 0x2d4   : > { %v7612_v42 = vadd.f32 %v7611_v45, %v7610_v21  ;;  %v2712_v20 = vpop.f32.mrb[160].mxu1 }
 0x2d5   : > { %v2713_v36 = vadd.f32 %v7609_v28, %v2712_v20  ;;  %4218 = vmatmul.mubr.bf16.gmra.mrb[12].mxu0 %v9370_v32  ;;  %v2714_v14 = vpop.f32.mrb[161].mxu1 }
 0x2d6   : > { %v2715_v51 = vpop.f32.mrb[162].mxu1  ;;  %4225 = vmatprep.mubr.bf16.mxu0 %v9378_v34  ;;  %v9382_v34 = vld [vmem:[%s12509_s1 + $0x8a0] ss:$16 sps:$4 sm:$0xff]  }
 0x2d7   : > { %v11248_v61 = vadd.f32 %v2713_v36, %v10835_v35  ;;  %v2716_v4 = vadd.f32 %v7612_v42, %v2715_v51  ;;  %v2717_v10 = vpop.f32.mrb[163].mxu1  ;;  %v9384_v35 = vld [vmem:[%s12509_s1 + $0x8a4] ss:$16 sps:$4 sm:$0xff]  }
 0x2d8   : > { %v7613_v15 = vpop.f32.mrb[164].mxu0 }
 0x2d9   : > { %v11251_v33 = vadd.f32 %v2716_v4, %v10843_v56  ;;  %v7614_v2 = vpop.f32.mrb[165].mxu0  ;;  %4379 = vmatmul.mubr.bf16.gmra.mrb[12].mxu1 %v9373_v63  ;;  %v9385_v63 = vld [vmem:[%s12509_s1 + $0x8a8] ss:$16 sps:$4 sm:$0xff]  }
 0x2da   : > { %v7615_v0 = vadd.f32 %v7614_v2, %v7613_v15  ;;  %v7616_v57 = vpop.f32.mrb[166].mxu0  ;;  %7222 = vmatprep.mubr.msk.bf16.mxu1 %vm901_vm0, %v9381_v6  ;;  %v9393_v6 = vld [vmem:[%s12509_s1 + $0x8cc] ss:$16 sps:$4 sm:$0xff]  }
 0x2db   : > { %v7617_v53 = vpop.f32.mrb[167].mxu0 }
 0x2dc   : > { %v7618_v19 = vadd.f32 %v7617_v53, %v7616_v57  ;;  %v2720_v3 = vpop.f32.mrb[164].mxu1  ;;  %v9388_v57 = vld [vmem:[%s12509_s1 + $0x8c0] ss:$16 sps:$4 sm:$0xff]  }
 0x2dd   : > { %v2721_v37 = vadd.f32 %v7615_v0, %v2720_v3  ;;  %4226 = vmatmul.mubr.bf16.gmra.mrb[16].mxu0 %v9376_v60  ;;  %v2722_v56 = vpop.f32.mrb[165].mxu1 }
 0x2de   : > { %v2723_v31 = vpop.f32.mrb[166].mxu1  ;;  %4233 = vmatprep.mubr.bf16.mxu0 %v9384_v35 }
 0x2df   : > { %v11267_v52 = vadd.f32 %v2721_v37, %v10858_v54  ;;  %v2724_v9 = vadd.f32 %v7618_v19, %v2723_v31  ;;  %v2725_v32 = vpop.f32.mrb[167].mxu1  ;;  %v9390_v54 = vld [vmem:[%s12509_s1 + $0x8c4] ss:$16 sps:$4 sm:$0xff]  }
 0x2e0   : > { %v7619_v8 = vpop.f32.mrb[168].mxu0 }
 0x2e1   : > { %v11270_v28 = vadd.f32 %v2724_v9, %v10866_v49  ;;  %v7620_v21 = vpop.f32.mrb[169].mxu0  ;;  %4387 = vmatmul.mubr.bf16.gmra.mrb[16].mxu1 %v9379_v22  ;;  %v9391_v22 = vld [vmem:[%s12509_s1 + $0x8c8] ss:$16 sps:$4 sm:$0xff]  }
 0x2e2   : > { %v7621_v45 = vadd.f32 %v7620_v21, %v7619_v8  ;;  %v7622_v25 = vpop.f32.mrb[170].mxu0  ;;  %7223 = vmatprep.mubr.msk.bf16.mxu1 %vm901_vm0, %v9387_v27  ;;  %v9399_v27 = vld [vmem:[%s12509_s1 + $0x8ec] ss:$16 sps:$4 sm:$0xff]  }
 0x2e3   : > { %v7623_v42 = vpop.f32.mrb[171].mxu0 }
 0x2e4   : > { %v7624_v20 = vadd.f32 %v7623_v42, %v7622_v25  ;;  %v2728_v36 = vpop.f32.mrb[168].mxu1  ;;  %v9394_v25 = vld [vmem:[%s12509_s1 + $0x8e0] ss:$16 sps:$4 sm:$0xff]  }
 0x2e5   : > { %v2729_v14 = vadd.f32 %v7621_v45, %v2728_v36  ;;  %4234 = vmatmul.mubr.bf16.gmra.mrb[20].mxu0 %v9382_v34  ;;  %v2730_v49 = vpop.f32.mrb[169].mxu1 }
 0x2e6   : > { %v2731_v51 = vpop.f32.mrb[170].mxu1  ;;  %4241 = vmatprep.mubr.bf16.mxu0 %v9390_v54 }
 0x2e7   : > { %v11286_v4 = vadd.f32 %v2729_v14, %v10881_v24  ;;  %v2732_v10 = vadd.f32 %v7624_v20, %v2731_v51  ;;  %v2733_v15 = vpop.f32.mrb[171].mxu1  ;;  %v9396_v24 = vld [vmem:[%s12509_s1 + $0x8e4] ss:$16 sps:$4 sm:$0xff]  }
 0x2e8   : > { %v7625_v2 = vpop.f32.mrb[172].mxu0 }
 0x2e9   : > { %v11289_v60 = vadd.f32 %v2732_v10, %v10889_v59  ;;  %v7626_v0 = vpop.f32.mrb[173].mxu0  ;;  %4395 = vmatmul.mubr.bf16.gmra.mrb[20].mxu1 %v9385_v63  ;;  %v9397_v63 = vld [vmem:[%s12509_s1 + $0x8e8] ss:$16 sps:$4 sm:$0xff]  }
 0x2ea   : > { %v7627_v35 = vadd.f32 %v7626_v0, %v7625_v2  ;;  %v7628_v53 = vpop.f32.mrb[174].mxu0  ;;  %7224 = vmatprep.mubr.msk.bf16.mxu1 %vm901_vm0, %v9393_v6  ;;  %v9405_v6 = vld [vmem:[%s12509_s1 + $0x90c] ss:$16 sps:$4 sm:$0xff]  }
 0x2eb   : > { %v7629_v19 = vpop.f32.mrb[175].mxu0 }
 0x2ec   : > { %v7630_v3 = vadd.f32 %v7629_v19, %v7628_v53  ;;  %v2736_v37 = vpop.f32.mrb[172].mxu1  ;;  %v9400_v53 = vld [vmem:[%s12509_s1 + $0x900] ss:$16 sps:$4 sm:$0xff]  }
 0x2ed   : > { %v2737_v56 = vadd.f32 %v7627_v35, %v2736_v37  ;;  %4242 = vmatmul.mubr.bf16.gmra.mrb[24].mxu0 %v9388_v57  ;;  %v2738_v59 = vpop.f32.mrb[173].mxu1 }
 0x2ee   : > { %v2739_v31 = vpop.f32.mrb[174].mxu1  ;;  %4249 = vmatprep.mubr.bf16.mxu0 %v9396_v24 }
 0x2ef   : > { %v11305_v9 = vadd.f32 %v2737_v56, %v10902_v17  ;;  %v2740_v32 = vadd.f32 %v7630_v3, %v2739_v31  ;;  %v2741_v8 = vpop.f32.mrb[175].mxu1  ;;  %v9402_v17 = vld [vmem:[%s12509_s1 + $0x904] ss:$16 sps:$4 sm:$0xff]  }
 0x2f0   : > { %v7631_v21 = vpop.f32.mrb[176].mxu0 }
 0x2f1   : > { %v11308_v34 = vadd.f32 %v2740_v32, %v10908_v13  ;;  %v7632_v45 = vpop.f32.mrb[177].mxu0  ;;  %4403 = vmatmul.mubr.bf16.gmra.mrb[24].mxu1 %v9391_v22  ;;  %v9403_v22 = vld [vmem:[%s12509_s1 + $0x908] ss:$16 sps:$4 sm:$0xff]  }
 0x2f2   : > { %v7633_v54 = vadd.f32 %v7632_v45, %v7631_v21  ;;  %v7634_v42 = vpop.f32.mrb[178].mxu0  ;;  %7225 = vmatprep.mubr.msk.bf16.mxu1 %vm901_vm0, %v9399_v27  ;;  %v9411_v27 = vld [vmem:[%s12509_s1 + $0x92c] ss:$16 sps:$4 sm:$0xff]  }
 0x2f3   : > { %v7635_v20 = vpop.f32.mrb[179].mxu0 }
 0x2f4   : > { %v7636_v36 = vadd.f32 %v7635_v20, %v7634_v42  ;;  %v2744_v14 = vpop.f32.mrb[176].mxu1  ;;  %v9406_v42 = vld [vmem:[%s12509_s1 + $0x920] ss:$16 sps:$4 sm:$0xff]  }
 0x2f5   : > { %v2745_v49 = vadd.f32 %v7633_v54, %v2744_v14  ;;  %4250 = vmatmul.mubr.bf16.gmra.mrb[28].mxu0 %v9394_v25  ;;  %v2746_v13 = vpop.f32.mrb[177].mxu1 }
 0x2f6   : > { %v2747_v51 = vpop.f32.mrb[178].mxu1  ;;  %4257 = vmatprep.mubr.bf16.mxu0 %v9402_v17 }
 0x2f7   : > { %v11324_v10 = vadd.f32 %v2745_v49, %v10921_v23  ;;  %v2748_v15 = vadd.f32 %v7636_v36, %v2747_v51  ;;  %v2749_v2 = vpop.f32.mrb[179].mxu1  ;;  %v9408_v23 = vld [vmem:[%s12509_s1 + $0x924] ss:$16 sps:$4 sm:$0xff]  }
 0x2f8   : > { %v7637_v0 = vpop.f32.mrb[180].mxu0 }
 0x2f9   : > { %v11327_v57 = vadd.f32 %v2748_v15, %v10927_v62  ;;  %v7638_v35 = vpop.f32.mrb[181].mxu0  ;;  %4411 = vmatmul.mubr.bf16.gmra.mrb[28].mxu1 %v9397_v63  ;;  %v9409_v63 = vld [vmem:[%s12509_s1 + $0x928] ss:$16 sps:$4 sm:$0xff]  }
 0x2fa   : > { %v7639_v24 = vadd.f32 %v7638_v35, %v7637_v0  ;;  %v7640_v19 = vpop.f32.mrb[182].mxu0  ;;  %7226 = vmatprep.mubr.msk.bf16.mxu1 %vm901_vm0, %v9405_v6  ;;  %v9417_v6 = vld [vmem:[%s12509_s1 + $0x94c] ss:$16 sps:$4 sm:$0xff]  }
 0x2fb   : > { %v7641_v3 = vpop.f32.mrb[183].mxu0 }
 0x2fc   : > { %v7642_v37 = vadd.f32 %v7641_v3, %v7640_v19  ;;  %v2752_v56 = vpop.f32.mrb[180].mxu1  ;;  %v9412_v19 = vld [vmem:[%s12509_s1 + $0x940] ss:$16 sps:$4 sm:$0xff]  }
 0x2fd   : > { %v2753_v59 = vadd.f32 %v7639_v24, %v2752_v56  ;;  %4258 = vmatmul.mubr.bf16.gmra.mrb[32].mxu0 %v9400_v53  ;;  %v2754_v62 = vpop.f32.mrb[181].mxu1 }
 0x2fe   : > { %v2755_v31 = vpop.f32.mrb[182].mxu1  ;;  %4265 = vmatprep.mubr.bf16.mxu0 %v9408_v23 }
 0x2ff   : > { %v11343_v32 = vadd.f32 %v2753_v59, %v10940_v18  ;;  %v2756_v8 = vadd.f32 %v7642_v37, %v2755_v31  ;;  %v2757_v21 = vpop.f32.mrb[183].mxu1  ;;  %v9414_v18 = vld [vmem:[%s12509_s1 + $0x944] ss:$16 sps:$4 sm:$0xff]  }
 0x300   : > { %v7643_v45 = vpop.f32.mrb[184].mxu0 }
 0x301   : > { %v11346_v25 = vadd.f32 %v2756_v8, %v10946_v48  ;;  %v7644_v54 = vpop.f32.mrb[185].mxu0  ;;  %4419 = vmatmul.mubr.bf16.gmra.mrb[32].mxu1 %v9403_v22  ;;  %v9415_v22 = vld [vmem:[%s12509_s1 + $0x948] ss:$16 sps:$4 sm:$0xff]  }
 0x302   : > { %v7645_v17 = vadd.f32 %v7644_v54, %v7643_v45  ;;  %v7646_v20 = vpop.f32.mrb[186].mxu0  ;;  %7227 = vmatprep.mubr.msk.bf16.mxu1 %vm901_vm0, %v9411_v27  ;;  %v9423_v27 = vld [vmem:[%s12509_s1 + $0x96c] ss:$16 sps:$4 sm:$0xff]  }
 0x303   : > { %v7647_v36 = vpop.f32.mrb[187].mxu0 }
 0x304   : > { %v7648_v14 = vadd.f32 %v7647_v36, %v7646_v20  ;;  %v2760_v49 = vpop.f32.mrb[184].mxu1  ;;  %v9418_v20 = vld [vmem:[%s12509_s1 + $0x960] ss:$16 sps:$4 sm:$0xff]  }
 0x305   : > { %v2761_v13 = vadd.f32 %v7645_v17, %v2760_v49  ;;  %v2762_v48 = vpop.f32.mrb[185].mxu1  ;;  %4266 = vmatmul.mubr.bf16.gmra.mrb[36].mxu0 %v9406_v42 }
 0x306   : > { %v2763_v51 = vpop.f32.mrb[186].mxu1  ;;  %4273 = vmatprep.mubr.bf16.mxu0 %v9414_v18 }
 0x307   : > { %v11362_v15 = vadd.f32 %v2761_v13, %v10959_v7  ;;  %v2764_v2 = vadd.f32 %v7648_v14, %v2763_v51  ;;  %v2765_v0 = vpop.f32.mrb[187].mxu1  ;;  %v9420_v7 = vld [vmem:[%s12509_s1 + $0x964] ss:$16 sps:$4 sm:$0xff]  }
 0x308   : > { %v7649_v35 = vpop.f32.mrb[188].mxu0 }
 0x309   : > { %v11365_v53 = vadd.f32 %v2764_v2, %v10965_v26  ;;  %v7650_v24 = vpop.f32.mrb[189].mxu0  ;;  %4427 = vmatmul.mubr.bf16.gmra.mrb[36].mxu1 %v9409_v63  ;;  %v9421_v63 = vld [vmem:[%s12509_s1 + $0x968] ss:$16 sps:$4 sm:$0xff]  }
 0x30a   : > { %v7651_v23 = vadd.f32 %v7650_v24, %v7649_v35  ;;  %v7652_v3 = vpop.f32.mrb[190].mxu0  ;;  %7228 = vmatprep.mubr.msk.bf16.mxu1 %vm901_vm0, %v9417_v6  ;;  %v9429_v6 = vld [vmem:[%s12509_s1 + $0x98c] ss:$16 sps:$4 sm:$0xff]  }
 0x30b   : > { %v7653_v37 = vpop.f32.mrb[191].mxu0 }
 0x30c   : > { %v7654_v56 = vadd.f32 %v7653_v37, %v7652_v3  ;;  %v2768_v59 = vpop.f32.mrb[188].mxu1  ;;  %v9424_v3 = vld [vmem:[%s12509_s1 + $0x980] ss:$16 sps:$4 sm:$0xff]  }
 0x30d   : > { %v2769_v62 = vadd.f32 %v7651_v23, %v2768_v59  ;;  %v2770_v26 = vpop.f32.mrb[189].mxu1  ;;  %4274 = vmatmul.mubr.bf16.gmra.mrb[40].mxu0 %v9412_v19 }
 0x30e   : > { %v2771_v31 = vpop.f32.mrb[190].mxu1  ;;  %4281 = vmatprep.mubr.bf16.mxu0 %v9420_v7 }
 0x30f   : > { %v11381_v8 = vadd.f32 %v2769_v62, %v10978_v40  ;;  %v2772_v21 = vadd.f32 %v7654_v56, %v2771_v31  ;;  %v2773_v45 = vpop.f32.mrb[191].mxu1  ;;  %v9426_v40 = vld [vmem:[%s12509_s1 + $0x984] ss:$16 sps:$4 sm:$0xff]  }
 0x310   : > { %v7671_v54 = vpop.f32.mrb[192].mxu0 }
 0x311   : > { %v11384_v42 = vadd.f32 %v2772_v21, %v10984_v1  ;;  %v7672_v17 = vpop.f32.mrb[193].mxu0  ;;  %4435 = vmatmul.mubr.bf16.gmra.mrb[40].mxu1 %v9415_v22  ;;  %v9427_v22 = vld [vmem:[%s12509_s1 + $0x988] ss:$16 sps:$4 sm:$0xff]  }
 0x312   : > { %v7673_v18 = vadd.f32 %v7672_v17, %v7671_v54  ;;  %v7674_v36 = vpop.f32.mrb[194].mxu0  ;;  %7229 = vmatprep.mubr.msk.bf16.mxu1 %vm901_vm0, %v9423_v27  ;;  %v9435_v27 = vld [vmem:[%s12509_s1 + $0x9ac] ss:$16 sps:$4 sm:$0xff]  }
 0x313   : > { %v7675_v14 = vpop.f32.mrb[195].mxu0 }
 0x314   : > { %v7676_v49 = vadd.f32 %v7675_v14, %v7674_v36  ;;  %v3502_v13 = vpop.f32.mrb[192].mxu1  ;;  %v9430_v36 = vld [vmem:[%s12509_s1 + $0x9a0] ss:$16 sps:$4 sm:$0xff]  }
 0x315   : > { %v3503_v48 = vadd.f32 %v7673_v18, %v3502_v13  ;;  %v3504_v1 = vpop.f32.mrb[193].mxu1  ;;  %4282 = vmatmul.mubr.bf16.gmra.mrb[44].mxu0 %v9418_v20 }
 0x316   : > { %v3505_v51 = vpop.f32.mrb[194].mxu1  ;;  %4289 = vmatprep.mubr.bf16.mxu0 %v9426_v40 }
 0x317   : > { %v11400_v2 = vadd.f32 %v3503_v48, %v11003_v38  ;;  %v3506_v0 = vadd.f32 %v7676_v49, %v3505_v51  ;;  %v3507_v35 = vpop.f32.mrb[195].mxu1  ;;  %v9432_v38 = vld [vmem:[%s12509_s1 + $0x9a4] ss:$16 sps:$4 sm:$0xff]  }
 0x318   : > { %v7677_v24 = vpop.f32.mrb[196].mxu0 }
 0x319   : > { %v11403_v19 = vadd.f32 %v3506_v0, %v11009_v30  ;;  %v7678_v23 = vpop.f32.mrb[197].mxu0  ;;  %4443 = vmatmul.mubr.bf16.gmra.mrb[44].mxu1 %v9421_v63  ;;  %v9433_v63 = vld [vmem:[%s12509_s1 + $0x9a8] ss:$16 sps:$4 sm:$0xff]  }
 0x31a   : > { %v7679_v7 = vadd.f32 %v7678_v23, %v7677_v24  ;;  %v7680_v37 = vpop.f32.mrb[198].mxu0  ;;  %7230 = vmatprep.mubr.msk.bf16.mxu1 %vm901_vm0, %v9429_v6  ;;  %v9441_v6 = vld [vmem:[%s12509_s1 + $0x9cc] ss:$16 sps:$4 sm:$0xff]  }
 0x31b   : > { %v7681_v56 = vpop.f32.mrb[199].mxu0 }
 0x31c   : > { %v7682_v59 = vadd.f32 %v7681_v56, %v7680_v37  ;;  %v3510_v62 = vpop.f32.mrb[196].mxu1  ;;  %v9436_v37 = vld [vmem:[%s12509_s1 + $0x9c0] ss:$16 sps:$4 sm:$0xff]  }
 0x31d   : > { %v3511_v26 = vadd.f32 %v7679_v7, %v3510_v62  ;;  %v3512_v30 = vpop.f32.mrb[197].mxu1  ;;  %4290 = vmatmul.mubr.bf16.gmra.mrb[48].mxu0 %v9424_v3 }
 0x31e   : > { %v3513_v31 = vpop.f32.mrb[198].mxu1  ;;  %4297 = vmatprep.mubr.bf16.mxu0 %v9432_v38 }
 0x31f   : > { %v11419_v21 = vadd.f32 %v3511_v26, %v11034_v29  ;;  %v3514_v45 = vadd.f32 %v7682_v59, %v3513_v31  ;;  %v3515_v54 = vpop.f32.mrb[199].mxu1  ;;  %v9438_v29 = vld [vmem:[%s12509_s1 + $0x9c4] ss:$16 sps:$4 sm:$0xff]  }
 0x320   : > { %v7683_v17 = vpop.f32.mrb[200].mxu0 }
 0x321   : > { %v11422_v20 = vadd.f32 %v3514_v45, %v11040_v39  ;;  %v7684_v18 = vpop.f32.mrb[201].mxu0  ;;  %4451 = vmatmul.mubr.bf16.gmra.mrb[48].mxu1 %v9427_v22  ;;  %v9439_v22 = vld [vmem:[%s12509_s1 + $0x9c8] ss:$16 sps:$4 sm:$0xff]  }
 0x322   : > { %v7685_v40 = vadd.f32 %v7684_v18, %v7683_v17  ;;  %v7686_v14 = vpop.f32.mrb[202].mxu0  ;;  %7231 = vmatprep.mubr.msk.bf16.mxu1 %vm901_vm0, %v9435_v27  ;;  %v9447_v27 = vld [vmem:[%s12509_s1 + $0x9ec] ss:$16 sps:$4 sm:$0xff]  }
 0x323   : > { %v7687_v49 = vpop.f32.mrb[203].mxu0 }
 0x324   : > { %v7688_v13 = vadd.f32 %v7687_v49, %v7686_v14  ;;  %v3518_v48 = vpop.f32.mrb[200].mxu1  ;;  %v9442_v14 = vld [vmem:[%s12509_s1 + $0x9e0] ss:$16 sps:$4 sm:$0xff]  }
 0x325   : > { %v3519_v1 = vadd.f32 %v7685_v40, %v3518_v48  ;;  %v3520_v39 = vpop.f32.mrb[201].mxu1  ;;  %4298 = vmatmul.mubr.bf16.gmra.mrb[52].mxu0 %v9430_v36 }
 0x326   : > { %v3521_v51 = vpop.f32.mrb[202].mxu1  ;;  %4305 = vmatprep.mubr.bf16.mxu0 %v9438_v29 }
 0x327   : > { %v11438_v0 = vadd.f32 %v3519_v1, %v11065_v11  ;;  %v3522_v35 = vadd.f32 %v7688_v13, %v3521_v51  ;;  %v3523_v24 = vpop.f32.mrb[203].mxu1  ;;  %v9444_v11 = vld [vmem:[%s12509_s1 + $0x9e4] ss:$16 sps:$4 sm:$0xff]  }
 0x328   : > { %v7689_v23 = vpop.f32.mrb[204].mxu0 }
 0x329   : > { %v11441_v3 = vadd.f32 %v3522_v35, %v11071_v12  ;;  %v7690_v7 = vpop.f32.mrb[205].mxu0  ;;  %4459 = vmatmul.mubr.bf16.gmra.mrb[52].mxu1 %v9433_v63 }
 0x32a   : > { %v7691_v38 = vadd.f32 %v7690_v7, %v7689_v23  ;;  %v7692_v56 = vpop.f32.mrb[206].mxu0  ;;  %7232 = vmatprep.mubr.msk.bf16.mxu1 %vm901_vm0, %v9441_v6 }
 0x32b   : > { %v7693_v59 = vpop.f32.mrb[207].mxu0 }
 0x32c   : > { %v7694_v62 = vadd.f32 %v7693_v59, %v7692_v56  ;;  %v3526_v26 = vpop.f32.mrb[204].mxu1 }
 0x32d   : > { %v3527_v30 = vadd.f32 %v7691_v38, %v3526_v26  ;;  %v3528_v12 = vpop.f32.mrb[205].mxu1  ;;  %4306 = vmatmul.mubr.bf16.gmra.mrb[56].mxu0 %v9436_v37 }
 0x32e   : > { %v3529_v31 = vpop.f32.mrb[206].mxu1  ;;  %4313 = vmatprep.mubr.bf16.mxu0 %v9444_v11 }
 0x32f   : > { %v11457_v45 = vadd.f32 %v3527_v30, %v11096_v46  ;;  %v3530_v54 = vadd.f32 %v7694_v62, %v3529_v31  ;;  %v3531_v17 = vpop.f32.mrb[207].mxu1 }
 0x330   : > { %v7695_v18 = vpop.f32.mrb[208].mxu0 }
 0x331   : > { %v11460_v36 = vadd.f32 %v3530_v54, %v11102_v50  ;;  %v7696_v40 = vpop.f32.mrb[209].mxu0  ;;  %4467 = vmatmul.mubr.bf16.gmra.mrb[56].mxu1 %v9439_v22  ;;  %v9445_v50 = vld [vmem:[%s12509_s1 + $0x9e8] ss:$16 sps:$4 sm:$0xff]  }
 0x332   : > { %v7697_v29 = vadd.f32 %v7696_v40, %v7695_v18  ;;  %v7698_v49 = vpop.f32.mrb[210].mxu0  ;;  %7233 = vmatprep.mubr.msk.bf16.mxu1 %vm901_vm0, %v9447_v27 }
 0x333   : > { %v7699_v13 = vpop.f32.mrb[211].mxu0 }
 0x334   : > { %v7700_v48 = vadd.f32 %v7699_v13, %v7698_v49  ;;  %v3534_v46 = vpop.f32.mrb[208].mxu1 }
 0x335   : > { %v3535_v1 = vadd.f32 %v7697_v29, %v3534_v46  ;;  %v3536_v39 = vpop.f32.mrb[209].mxu1  ;;  %4314 = vmatmul.mubr.bf16.gmra.mrb[60].mxu0 %v9442_v14 }
 0x336   : > { %v3537_v63 = vpop.f32.mrb[210].mxu1 }
 0x337   : > { %v11470_v51 = vadd.f32 %v3535_v1, %v11127_v41  ;;  %v3538_v6 = vadd.f32 %v7700_v48, %v3537_v63  ;;  %v3539_v35 = vpop.f32.mrb[211].mxu1 }
 0x338   : > { %v7701_v24 = vpop.f32.mrb[212].mxu0 }
 0x339   : > { %v11473_v23 = vadd.f32 %v3538_v6, %v11133_v55  ;;  %v7702_v7 = vpop.f32.mrb[213].mxu0  ;;  %4475 = vmatmul.mubr.bf16.gmra.mrb[60].mxu1 %v9445_v50 }
 0x33a   : > { %v7703_v37 = vadd.f32 %v7702_v7, %v7701_v24  ;;  %v7704_v38 = vpop.f32.mrb[214].mxu0 }
 0x33b   : > { %v7705_v56 = vpop.f32.mrb[215].mxu0 }
 0x33c   : > { %v7706_v11 = vadd.f32 %v7705_v56, %v7704_v38  ;;  %v3542_v59 = vpop.f32.mrb[212].mxu1 }
 0x33d   : > { %v3543_v62 = vadd.f32 %v7703_v37, %v3542_v59  ;;  %v3544_v26 = vpop.f32.mrb[213].mxu1 }
 0x33e   : > { %v3545_v30 = vpop.f32.mrb[214].mxu1 }
 0x33f   : > { %v11476_v12 = vadd.f32 %v3543_v62, %v11158_v5  ;;  %v3546_v41 = vadd.f32 %v7706_v11, %v3545_v30  ;;  %v3547_v22 = vpop.f32.mrb[215].mxu1 }
 0x340   : > { %v7707_v31 = vpop.f32.mrb[216].mxu0 }
 0x341   : > { %v11479_v27 = vadd.f32 %v3546_v41, %v11164_v43  ;;  %v7708_v55 = vpop.f32.mrb[217].mxu0 }
 0x342   : > { %v7709_v54 = vadd.f32 %v7708_v55, %v7707_v31  ;;  %v7710_v17 = vpop.f32.mrb[218].mxu0 }
 0x343   : > { %v7711_v18 = vpop.f32.mrb[219].mxu0 }
 0x344   : > { %v7712_v40 = vadd.f32 %v7711_v18, %v7710_v17  ;;  %v3550_v14 = vpop.f32.mrb[216].mxu1 }
 0x345   : > { %v3551_v29 = vadd.f32 %v7709_v54, %v3550_v14  ;;  %v3552_v49 = vpop.f32.mrb[217].mxu1 }
 0x346   : > { %v3553_v13 = vpop.f32.mrb[218].mxu1 }
 0x347   : > { %v11482_v48 = vadd.f32 %v3551_v29, %v11189_v44  ;;  %v3554_v5 = vadd.f32 %v7712_v40, %v3553_v13  ;;  %v3555_v46 = vpop.f32.mrb[219].mxu1 }
 0x348   : > { %v7713_v1 = vpop.f32.mrb[220].mxu0 }
 0x349   : > { %v11485_v39 = vadd.f32 %v3554_v5, %v11195_v47  ;;  %v7714_v43 = vpop.f32.mrb[221].mxu0 }
 0x34a   : > { %v7715_v50 = vadd.f32 %v7714_v43, %v7713_v1  ;;  %v7716_v63 = vpop.f32.mrb[222].mxu0 }
 0x34b   : > { %v7717_v6 = vpop.f32.mrb[223].mxu0 }
 0x34c   : > { %v7718_v35 = vadd.f32 %v7717_v6, %v7716_v63  ;;  %v3558_v24 = vpop.f32.mrb[220].mxu1 }
 0x34d   : > { %v3559_v7 = vadd.f32 %v7715_v50, %v3558_v24  ;;  %v3560_v37 = vpop.f32.mrb[221].mxu1 }
 0x34e   : > { %v3561_v38 = vpop.f32.mrb[222].mxu1 }
 0x34f   : > { %v11488_v56 = vadd.f32 %v3559_v7, %v11220_v58  ;;  %v3562_v44 = vadd.f32 %v7718_v35, %v3561_v38  ;;  %v3563_v11 = vpop.f32.mrb[223].mxu1 }
 0x350   : > { %v7719_v59 = vpop.f32.mrb[224].mxu0 }
 0x351   : > { %v11491_v62 = vadd.f32 %v3562_v44, %v11226_v16  ;;  %v7720_v47 = vpop.f32.mrb[225].mxu0 }
 0x352   : > { %v7721_v26 = vadd.f32 %v7720_v47, %v7719_v59  ;;  %v7722_v30 = vpop.f32.mrb[226].mxu0 }
 0x353   : > { %v7723_v41 = vpop.f32.mrb[227].mxu0 }
 0x354   : > { %v7724_v22 = vadd.f32 %v7723_v41, %v7722_v30  ;;  %v3566_v31 = vpop.f32.mrb[224].mxu1 }
 0x355   : > { %v3567_v55 = vadd.f32 %v7721_v26, %v3566_v31  ;;  %v3568_v54 = vpop.f32.mrb[225].mxu1 }
 0x356   : > { %v3569_v17 = vpop.f32.mrb[226].mxu1 }
 0x357   : > { %v11494_v18 = vadd.f32 %v3567_v55, %v11248_v61  ;;  %v3570_v58 = vadd.f32 %v7724_v22, %v3569_v17  ;;  %v3571_v40 = vpop.f32.mrb[227].mxu1 }
 0x358   : > { %v7725_v14 = vpop.f32.mrb[228].mxu0 }
 0x359   : > { %v11497_v29 = vadd.f32 %v3570_v58, %v11251_v33  ;;  %v7726_v16 = vpop.f32.mrb[229].mxu0 }
 0x35a   : > { %v7727_v49 = vadd.f32 %v7726_v16, %v7725_v14  ;;  %v7728_v13 = vpop.f32.mrb[230].mxu0 }
 0x35b   : > { %v7729_v5 = vpop.f32.mrb[231].mxu0 }
 0x35c   : > { %v7730_v46 = vadd.f32 %v7729_v5, %v7728_v13  ;;  %v3574_v1 = vpop.f32.mrb[228].mxu1 }
 0x35d   : > { %v3575_v43 = vadd.f32 %v7727_v49, %v3574_v1  ;;  %v3576_v50 = vpop.f32.mrb[229].mxu1 }
 0x35e   : > { %v3577_v63 = vpop.f32.mrb[230].mxu1 }
 0x35f   : > { %v11500_v6 = vadd.f32 %v3575_v43, %v11267_v52  ;;  %v3578_v61 = vadd.f32 %v7730_v46, %v3577_v63  ;;  %v3579_v35 = vpop.f32.mrb[231].mxu1 }
 0x360   : > { %v7731_v24 = vpop.f32.mrb[232].mxu0 }
 0x361   : > { %v11503_v7 = vadd.f32 %v3578_v61, %v11270_v28  ;;  %v7732_v33 = vpop.f32.mrb[233].mxu0 }
 0x362   : > { %v7733_v37 = vadd.f32 %v7732_v33, %v7731_v24  ;;  %v7734_v38 = vpop.f32.mrb[234].mxu0  ;;  %v11517_v33 = vpop.permute.xlu1 %4634 }
 0x363   : > { %v7735_v44 = vpop.f32.mrb[235].mxu0 }
 0x364   : > { %v7736_v11 = vadd.f32 %v7735_v44, %v7734_v38  ;;  %v3582_v59 = vpop.f32.mrb[232].mxu1 }
 0x365   : > { %v3583_v47 = vadd.f32 %v7733_v37, %v3582_v59  ;;  %v3584_v26 = vpop.f32.mrb[233].mxu1 }
 0x366   : > { %v3585_v30 = vpop.f32.mrb[234].mxu1 }
 0x367   : > { %v11506_v41 = vadd.f32 %v3583_v47, %v11286_v4  ;;  %v3586_v52 = vadd.f32 %v7736_v11, %v3585_v30  ;;  %v3587_v22 = vpop.f32.mrb[235].mxu1  ;;  %v11519_v11 = vpop.permute.xlu0 %4629 }
 0x368   : > { %v7737_v31 = vpop.f32.mrb[236].mxu0 }
 0x369   : > { %v11509_v55 = vadd.f32 %v3586_v52, %v11289_v60  ;;  %v7738_v28 = vpop.f32.mrb[237].mxu0 }
 0x36a   : > { %v7739_v54 = vadd.f32 %v7738_v28, %v7737_v31  ;;  %v7740_v17 = vpop.f32.mrb[238].mxu0  ;;  %v11527_v31 = vpop.permute.xlu1 %4549 }
 0x36b   : > { %v7741_v58 = vpop.f32.mrb[239].mxu0 }
 0x36c   : > { %v7742_v40 = vadd.f32 %v7741_v58, %v7740_v17  ;;  %v3590_v14 = vpop.f32.mrb[236].mxu1  ;;  %v11529_v58 = vpop.permute.xlu0 %4554 }
 0x36d   : > { %v3591_v16 = vadd.f32 %v7739_v54, %v3590_v14  ;;  %v3592_v49 = vpop.f32.mrb[237].mxu1 }
 0x36e   : > { %v3593_v13 = vpop.f32.mrb[238].mxu1 }
 0x36f   : > { %v11512_v5 = vadd.f32 %v3591_v16, %v11305_v9  ;;  %v3594_v4 = vadd.f32 %v7742_v40, %v3593_v13  ;;  %v3595_v46 = vpop.f32.mrb[239].mxu1 }
 0x370   : > { %v7743_v1 = vpop.f32.mrb[240].mxu0 }
 0x371   : > { %v11515_v43 = vadd.f32 %v3594_v4, %v11308_v34  ;;  %v7744_v60 = vpop.f32.mrb[241].mxu0  ;;  %v11534_v4 = vpop.permute.xlu1 %4639 }
 0x372   : > { %v7745_v50 = vadd.f32 %v7744_v60, %v7743_v1  ;;  %v7746_v63 = vpop.f32.mrb[242].mxu0 }
 0x373   : > { %v7747_v61 = vpop.f32.mrb[243].mxu0 }
 0x374   : > { %v7748_v35 = vadd.f32 %v7747_v61, %v7746_v63  ;;  %v3598_v24 = vpop.f32.mrb[240].mxu1  ;;  %v11539_v63 = vpop.permute.xlu0 %4644 }
 0x375   : > { %v3599_v37 = vadd.f32 %v7745_v50, %v3598_v24  ;;  %v3600_v38 = vpop.f32.mrb[241].mxu1 }
 0x376   : > { %v3601_v44 = vpop.f32.mrb[242].mxu1 }
 0x377   : > { %v11522_v9 = vadd.f32 %v3599_v37, %v11324_v10  ;;  %v3602_v59 = vadd.f32 %v7748_v35, %v3601_v44  ;;  %v3603_v47 = vpop.f32.mrb[243].mxu1  ;;  %v11541_v44 = vpop.permute.xlu1 %4559 }
 0x378   : > { %v7749_v34 = vpop.f32.mrb[244].mxu0 }
 0x379   : > { %v11525_v26 = vadd.f32 %v3602_v59, %v11327_v57  ;;  %v7750_v30 = vpop.f32.mrb[245].mxu0 }
 0x37a   : > { %v7751_v52 = vadd.f32 %v7750_v30, %v7749_v34  ;;  %v7752_v22 = vpop.f32.mrb[246].mxu0  ;;  %v11546_v30 = vpop.permute.xlu0 %4564 }
 0x37b   : > { %v7753_v28 = vpop.f32.mrb[247].mxu0 }
 0x37c   : > { %v7754_v54 = vadd.f32 %v7753_v28, %v7752_v22  ;;  %v3606_v17 = vpop.f32.mrb[244].mxu1 }
 0x37d   : > { %v3607_v40 = vadd.f32 %v7751_v52, %v3606_v17  ;;  %v3608_v14 = vpop.f32.mrb[245].mxu1 }
 0x37e   : > { %v3609_v10 = vpop.f32.mrb[246].mxu1 }
 0x37f   : > { %v11532_v16 = vadd.f32 %v3607_v40, %v11343_v32  ;;  %v3610_v49 = vadd.f32 %v7754_v54, %v3609_v10  ;;  %v3611_v13 = vpop.f32.mrb[247].mxu1  ;;  %v11551_v10 = vpop.permute.xlu1 %4649 }
 0x380   : > { %v7755_v57 = vpop.f32.mrb[248].mxu0 }
 0x381   : > { %v11537_v46 = vadd.f32 %v3610_v49, %v11346_v25  ;;  %v7756_v1 = vpop.f32.mrb[249].mxu0 }
 0x382   : > { %v7757_v60 = vadd.f32 %v7756_v1, %v7755_v57  ;;  %v7758_v50 = vpop.f32.mrb[250].mxu0  ;;  %v11553_v57 = vpop.permute.xlu0 %4654 }
 0x383   : > { %v7759_v61 = vpop.f32.mrb[251].mxu0 }
 0x384   : > { %v7760_v35 = vadd.f32 %v7759_v61, %v7758_v50  ;;  %v3614_v24 = vpop.f32.mrb[248].mxu1 }
 0x385   : > { %v3615_v37 = vadd.f32 %v7757_v60, %v3614_v24  ;;  %v3616_v38 = vpop.f32.mrb[249].mxu1 }
 0x386   : > { %v3617_v32 = vpop.f32.mrb[250].mxu1  ;;  %v11561_v38 = vpop.permute.xlu1 %4569 }
 0x387   : > { %v11544_v59 = vadd.f32 %v3615_v37, %v11362_v15  ;;  %v3618_v47 = vadd.f32 %v7760_v35, %v3617_v32  ;;  %v3619_v34 = vpop.f32.mrb[251].mxu1 }
 0x388   : > { %v7761_v25 = vpop.f32.mrb[252].mxu0 }
 0x389   : > { %v11549_v52 = vadd.f32 %v3618_v47, %v11365_v53  ;;  %v7762_v22 = vpop.f32.mrb[253].mxu0 }
 0x38a   : > { %v7763_v28 = vadd.f32 %v7762_v22, %v7761_v25  ;;  %v7764_v54 = vpop.f32.mrb[254].mxu0  ;;  %v11563_v25 = vpop.permute.xlu0 %4574 }
 0x38b   : > { %v7765_v17 = vpop.f32.mrb[255].mxu0 }
 0x38c   : > { %v7766_v40 = vadd.f32 %v7765_v17, %v7764_v54  ;;  %v3622_v14 = vpop.f32.mrb[252].mxu1 }
 0x38d   : > { %v3623_v49 = vadd.f32 %v7763_v28, %v3622_v14  ;;  %v3624_v13 = vpop.f32.mrb[253].mxu1 }
 0x38e   : > { %v3625_v15 = vpop.f32.mrb[254].mxu1 }
 0x38f   : > { %v11556_v1 = vadd.f32 %v3623_v49, %v11381_v8  ;;  %v3626_v60 = vadd.f32 %v7766_v40, %v3625_v15  ;;  %v3627_v50 = vpop.f32.mrb[255].mxu1 }
 0x390   : > { %v7783_v53 = vpop.f32.mrb[0].mxu0 }
 0x391   : > { %v11559_v61 = vadd.f32 %v3626_v60, %v11384_v42  ;;  %v7784_v35 = vpop.f32.mrb[1].mxu0  ;;  %v11566_v42 = vpop.permute.xlu1 %4659 }
 0x392   : > { %v7785_v24 = vadd.f32 %v7784_v35, %v7783_v53  ;;  %v7786_v37 = vpop.f32.mrb[2].mxu0  ;;  %v11570_v53 = vpop.permute.xlu0 %4664 }
 0x393   : > { %v7787_v32 = vpop.f32.mrb[3].mxu0 }
 0x394   : > { %v7788_v47 = vadd.f32 %v7787_v32, %v7786_v37  ;;  %v4356_v34 = vpop.f32.mrb[0].mxu1 }
 0x395   : > { %v4357_v22 = vadd.f32 %v7785_v24, %v4356_v34  ;;  %v4358_v28 = vpop.f32.mrb[1].mxu1 }
 0x396   : > { %v4359_v8 = vpop.f32.mrb[2].mxu1  ;;  %v4580_v28 = vpop.permute.xlu1 %4579 }
 0x397   : > { %v4483_v54 = vadd.f32 %v4357_v22, %v11400_v2  ;;  %v4360_v17 = vadd.f32 %v7788_v47, %v4359_v8  ;;  %v4361_v40 = vpop.f32.mrb[3].mxu1 }
 0x398   : > { %v7789_v14 = vpop.f32.mrb[4].mxu0  ;;  %v11576_v40 = vpop.permute.xlu0 %4584 }
 0x399   : > { %v4484_v49 = vadd.f32 %v4360_v17, %v11403_v19  ;;  %v4707_v13 = vadd.f32 %v11527_v31, %v4483_v54  ;;  %v7790_v15 = vpop.f32.mrb[5].mxu0 }
 0x39a   : > { %v7791_v60 = vadd.f32 %v7790_v15, %v7789_v14  ;;  %v7792_v50 = vpop.f32.mrb[6].mxu0 }
 0x39b   : > { %v4739_v35 = vmax.f32 %v4707_v13, 0.0  ;;  %v7793_v24 = vpop.f32.mrb[7].mxu0  ;;  %v4708_v37 = vadd.f32 %v11529_v58, %v4484_v49 }
 0x39c   : > { %v7794_v2 = vadd.f32 %v7793_v24, %v7792_v50  ;;  %v4364_v32 = vpop.f32.mrb[4].mxu1 }
 0x39d   : > { %4772 = vst.msk [vmem:[#allocation2] sm:$0xff] %vm4771_vm2, %v4739_v35  ;;  %v4740_v47 = vmax.f32 %v4708_v37, 0.0  ;;  %v4365_v34 = vadd.f32 %v7791_v60, %v4364_v32  ;;  %v4366_v22 = vpop.f32.mrb[5].mxu1  ;;  %v11581_v32 = vpop.permute.xlu1 %4669 }
 0x39e   : > { %v4367_v19 = vpop.f32.mrb[6].mxu1  ;;  %v11588_v22 = vpop.permute.xlu0 %4674 }
 0x39f   : > { %4773 = vst.msk [vmem:[#allocation2 + $0x8] sm:$0xff] %vm4771_vm2, %v4740_v47  ;;  %v4485_v31 = vadd.f32 %v4365_v34, %v11419_v21  ;;  %v4368_v8 = vadd.f32 %v7794_v2, %v4367_v19  ;;  %v4369_v54 = vpop.f32.mrb[7].mxu1 }
 0x3a0   : > { %v7795_v17 = vpop.f32.mrb[8].mxu0 }
 0x3a1   : > { %v4486_v58 = vadd.f32 %v4368_v8, %v11422_v20  ;;  %v4709_v14 = vadd.f32 %v11541_v44, %v4485_v31  ;;  %v7796_v49 = vpop.f32.mrb[9].mxu0 }
 0x3a2   : > { %v7797_v13 = vadd.f32 %v7796_v49, %v7795_v17  ;;  %v7798_v15 = vpop.f32.mrb[10].mxu0 }
 0x3a3   : > { %v4741_v60 = vmax.f32 %v4709_v14, 0.0  ;;  %v7799_v50 = vpop.f32.mrb[11].mxu0  ;;  %v4710_v35 = vadd.f32 %v11546_v30, %v4486_v58 }
 0x3a4   : > { %v7800_v24 = vadd.f32 %v7799_v50, %v7798_v15  ;;  %v4372_v37 = vpop.f32.mrb[8].mxu1  ;;  %v11584_v20 = vld [vmem:[#allocation2] sm:$0xff]  ;;  %v4590_v15 = vpop.permute.xlu1 %4589 }
 0x3a5   : > { %4774 = vst.msk [vmem:[#allocation2 + $0x10] sm:$0xff] %vm4771_vm2, %v4741_v60  ;;  %v4742_v21 = vmax.f32 %v4710_v35, 0.0  ;;  %v4373_v2 = vadd.f32 %v7797_v13, %v4372_v37  ;;  %v4374_v47 = vpop.f32.mrb[9].mxu1 }
 0x3a6   : > { %v4375_v34 = vpop.f32.mrb[10].mxu1  ;;  %v11586_v44 = vld [vmem:[#allocation2 + $0x8] sm:$0xff] }
 0x3a7   : > { %4775 = vst.msk [vmem:[#allocation2 + $0x18] sm:$0xff] %vm4771_vm2, %v4742_v21  ;;  %v4487_v30 = vadd.f32 %v4373_v2, %v11438_v0  ;;  %v4376_v19 = vadd.f32 %v7800_v24, %v4375_v34  ;;  %v4377_v31 = vpop.f32.mrb[11].mxu1  ;;  %v11594_v8 = vpack.i.bf16 %v11586_v44, %v11584_v20  ;;  %v4595_v21 = vpop.permute.xlu0 %4594 }
 0x3a8   : > { %v7801_v54 = vpop.f32.mrb[12].mxu0 }
 0x3a9   : > { %v4488_v58 = vadd.f32 %v4376_v19, %v11441_v3  ;;  %v4711_v14 = vadd.f32 %v11561_v38, %v4487_v30  ;;  %v7802_v49 = vpop.f32.mrb[13].mxu0  ;;  %8569 = vrot.lane.b32.xlu0 %v11594_v8, %s9457_s30 }
 0x3aa   : > { %v7803_v13 = vadd.f32 %v7802_v49, %v7801_v54  ;;  %v7804_v0 = vpop.f32.mrb[14].mxu0 }
 0x3ab   : > { %v4743_v60 = vmax.f32 %v4711_v14, 0.0  ;;  %v7805_v50 = vpop.f32.mrb[15].mxu0  ;;  %v4712_v35 = vadd.f32 %v11563_v25, %v4488_v58  ;;  %v11614_v14 = vpop.permute.xlu1 %4679 }
 0x3ac   : > { %v7806_v24 = vadd.f32 %v7805_v50, %v7804_v0  ;;  %v4380_v37 = vpop.f32.mrb[12].mxu1  ;;  %v11604_v34 = vld [vmem:[#allocation2 + $0x10] sm:$0xff] }
 0x3ad   : > { %4776 = vst.msk [vmem:[#allocation2 + $0x20] sm:$0xff] %vm4771_vm2, %v4743_v60  ;;  %v4744_v2 = vmax.f32 %v4712_v35, 0.0  ;;  %v4381_v3 = vadd.f32 %v7803_v13, %v4380_v37  ;;  %v4382_v47 = vpop.f32.mrb[13].mxu1  ;;  %v11621_v35 = vpop.permute.xlu0 %4684 }
 0x3ae   : > { %v4383_v38 = vpop.f32.mrb[14].mxu1  ;;  %v11606_v30 = vld [vmem:[#allocation2 + $0x18] sm:$0xff] }
 0x3af   : > { %4777 = vst.msk [vmem:[#allocation2 + $0x28] sm:$0xff] %vm4771_vm2, %v4744_v2  ;;  %v4489_v19 = vadd.f32 %v4381_v3, %v11457_v45  ;;  %v4384_v31 = vadd.f32 %v7806_v24, %v4383_v38  ;;  %v4385_v54 = vpop.f32.mrb[15].mxu1  ;;  %v11612_v25 = vpack.i.bf16 %v11606_v30, %v11604_v34 }
 0x3b0   : > { %v7807_v58 = vpop.f32.mrb[16].mxu0 }
 0x3b1   : > { %v4490_v13 = vadd.f32 %v4384_v31, %v11460_v36  ;;  %v4713_v0 = vadd.f32 %v4580_v28, %v4489_v19  ;;  %v7808_v60 = vpop.f32.mrb[17].mxu0  ;;  %8574 = vrot.lane.b32.xlu0 %v11612_v25, %s9457_s30 }
 0x3b2   : > { %v7809_v45 = vadd.f32 %v7808_v60, %v7807_v58  ;;  %v7810_v50 = vpop.f32.mrb[18].mxu0  ;;  %v4600_v58 = vpop.permute.xlu1 %4599 }
 0x3b3   : > { %v4745_v24 = vmax.f32 %v4713_v0, 0.0  ;;  %v7811_v37 = vpop.f32.mrb[19].mxu0  ;;  %v4714_v2 = vadd.f32 %v11576_v40, %v4490_v13 }
 0x3b4   : > { %v7812_v3 = vadd.f32 %v7811_v37, %v7810_v50  ;;  %v4388_v47 = vpop.f32.mrb[16].mxu1  ;;  %v11625_v19 = vld [vmem:[#allocation2 + $0x20] sm:$0xff]  ;;  %v4605_v50 = vpop.permute.xlu0 %4604 }
 0x3b5   : > { %4778 = vst.msk [vmem:[#allocation2 + $0x30] sm:$0xff] %vm4771_vm2, %v4745_v24  ;;  %v4746_v38 = vmax.f32 %v4714_v2, 0.0  ;;  %v4389_v54 = vadd.f32 %v7809_v45, %v4388_v47  ;;  %v4390_v36 = vpop.f32.mrb[17].mxu1  ;;  %12522 = vst [vmem:[#allocation4_spill] sm:$0xff] %v11625_v19 }
 0x3b6   : > { %v4391_v28 = vpop.f32.mrb[18].mxu1  ;;  %v11627_v31 = vld [vmem:[#allocation2 + $0x28] sm:$0xff] }
 0x3b7   : > { %12523 = vst [vmem:[#allocation5_spill] sm:$0xff] %v11627_v31  ;;  %4779 = vst.msk [vmem:[#allocation2 + $0x38] sm:$0xff] %vm4771_vm2, %v4746_v38  ;;  %v4491_v0 = vadd.f32 %v4389_v54, %v11470_v51  ;;  %v4392_v60 = vadd.f32 %v7812_v3, %v4391_v28  ;;  %v4393_v49 = vpop.f32.mrb[19].mxu1  ;;  %v11633_v40 = vpack.i.bf16 %v11627_v31, %v11625_v19  ;;  %v11640_v28 = vpop.permute.xlu1 %4689 }
 0x3b8   : > { %v7813_v13 = vpop.f32.mrb[20].mxu0 }
 0x3b9   : > { %v4492_v24 = vadd.f32 %v4392_v60, %v11473_v23  ;;  %v4715_v37 = vadd.f32 %v4590_v15, %v4491_v0  ;;  %v7814_v2 = vpop.f32.mrb[21].mxu0  ;;  %8579 = vrot.lane.b32.xlu0 %v11633_v40, %s9457_s30  ;;  %v11647_v60 = vpop.permute.xlu0 %4694 }
 0x3ba   : > { %v7815_v47 = vadd.f32 %v7814_v2, %v7813_v13  ;;  %v7816_v51 = vpop.f32.mrb[22].mxu0 }
 0x3bb   : > { %v4747_v3 = vmax.f32 %v4715_v37, 0.0  ;;  %v7817_v49 = vpop.f32.mrb[23].mxu0  ;;  %v4716_v38 = vadd.f32 %v4595_v21, %v4492_v24 }
 0x3bc   : > { %v7818_v54 = vadd.f32 %v7817_v49, %v7816_v51  ;;  %v4396_v36 = vpop.f32.mrb[20].mxu1  ;;  %v11643_v15 = vld [vmem:[#allocation2 + $0x30] sm:$0xff] }
 0x3bd   : > { %4780 = vst.msk [vmem:[#allocation2 + $0x40] sm:$0xff] %vm4771_vm2, %v4747_v3  ;;  %v4748_v17 = vmax.f32 %v4716_v38, 0.0  ;;  %v4397_v45 = vadd.f32 %v7815_v47, %v4396_v36  ;;  %v4398_v19 = vpop.f32.mrb[21].mxu1  ;;  %12524 = vst [vmem:[#allocation6_spill] sm:$0xff] %v11643_v15 }
 0x3be   : > { %v4399_v23 = vpop.f32.mrb[22].mxu1  ;;  %v11645_v0 = vld [vmem:[#allocation2 + $0x38] sm:$0xff] }
 0x3bf   : > { %12525 = vst [vmem:[#allocation7_spill] sm:$0xff] %v11645_v0  ;;  %4781 = vst.msk [vmem:[#allocation2 + $0x48] sm:$0xff] %vm4771_vm2, %v4748_v17  ;;  %v4493_v21 = vadd.f32 %v4397_v45, %v11476_v12  ;;  %v4400_v13 = vadd.f32 %v7818_v54, %v4399_v23  ;;  %v4401_v24 = vpop.f32.mrb[23].mxu1  ;;  %v11653_v37 = vpack.i.bf16 %v11645_v0, %v11643_v15  ;;  %v4610_v12 = vpop.permute.xlu1 %4609 }
 0x3c0   : > { %v7819_v2 = vpop.f32.mrb[24].mxu0  ;;  %v4615_v24 = vpop.permute.xlu0 %4614 }
 0x3c1   : > { %v4494_v47 = vadd.f32 %v4400_v13, %v11479_v27  ;;  %v4717_v51 = vadd.f32 %v4600_v58, %v4493_v21  ;;  %v7820_v3 = vpop.f32.mrb[25].mxu0  ;;  %8584 = vrot.lane.b32.xlu0 %v11653_v37, %s9457_s30 }
 0x3c2   : > { %v7821_v17 = vadd.f32 %v7820_v3, %v7819_v2  ;;  %v7822_v49 = vpop.f32.mrb[26].mxu0 }
 0x3c3   : > { %v4749_v45 = vmax.f32 %v4717_v51, 0.0  ;;  %v7823_v38 = vpop.f32.mrb[27].mxu0  ;;  %v4718_v54 = vadd.f32 %v4605_v50, %v4494_v47  ;;  %v11671_v3 = vpop.permute.xlu1 %4699 }
 0x3c4   : > { %v7824_v36 = vadd.f32 %v7823_v38, %v7822_v49  ;;  %v4404_v23 = vpop.f32.mrb[24].mxu1  ;;  %v11661_v58 = vld [vmem:[#allocation2 + $0x40] sm:$0xff] }
 0x3c5   : > { %4782 = vst.msk [vmem:[#allocation2 + $0x50] sm:$0xff] %vm4771_vm2, %v4749_v45  ;;  %v4750_v31 = vmax.f32 %v4718_v54, 0.0  ;;  %v4405_v19 = vadd.f32 %v7821_v17, %v4404_v23  ;;  %v4406_v15 = vpop.f32.mrb[25].mxu1  ;;  %12526 = vst [vmem:[#allocation8_spill] sm:$0xff] %v11661_v58 }
 0x3c6   : > { %v4407_v27 = vpop.f32.mrb[26].mxu1  ;;  %v11663_v21 = vld [vmem:[#allocation2 + $0x48] sm:$0xff] }
 0x3c7   : > { %12527 = vst [vmem:[#allocation9_spill] sm:$0xff] %v11663_v21  ;;  %4783 = vst.msk [vmem:[#allocation2 + $0x58] sm:$0xff] %vm4771_vm2, %v4750_v31  ;;  %v4408_v13 = vadd.f32 %v7824_v36, %v4407_v27  ;;  %v4409_v2 = vpop.f32.mrb[27].mxu1  ;;  %v4495_v51 = vadd.f32 %v4405_v19, %v11482_v48  ;;  %v11669_v50 = vpack.i.bf16 %v11663_v21, %v11661_v58  ;;  %v11678_v48 = vpop.permute.xlu0 %4704 }
 0x3c8   : > { %v7825_v47 = vpop.f32.mrb[28].mxu0  ;;  %v4620_v58 = vpop.permute.xlu1 %4619 }
 0x3c9   : > { %v4719_v17 = vadd.f32 %v4610_v12, %v4495_v51  ;;  %v7826_v49 = vpop.f32.mrb[29].mxu0  ;;  %8589 = vrot.lane.b32.xlu0 %v11669_v50, %s9457_s30  ;;  %v4496_v31 = vadd.f32 %v4408_v13, %v11485_v39 }
 0x3ca   : > { %v7827_v45 = vadd.f32 %v7826_v49, %v7825_v47  ;;  %v7828_v38 = vpop.f32.mrb[30].mxu0 }
 0x3cb   : > { %v4751_v19 = vmax.f32 %v4719_v17, 0.0  ;;  %v7829_v54 = vpop.f32.mrb[31].mxu0  ;;  %v4720_v36 = vadd.f32 %v4615_v24, %v4496_v31  ;;  %v4625_v49 = vpop.permute.xlu0 %4624 }
 0x3cc   : > { %v7830_v23 = vadd.f32 %v7829_v54, %v7828_v38  ;;  %v4412_v27 = vpop.f32.mrb[28].mxu1  ;;  %v11681_v21 = vld [vmem:[#allocation2 + $0x50] sm:$0xff] }
 0x3cd   : > { %4784 = vst.msk [vmem:[#allocation2 + $0x60] sm:$0xff] %vm4771_vm2, %v4751_v19  ;;  %v4752_v2 = vmax.f32 %v4720_v36, 0.0  ;;  %v4413_v15 = vadd.f32 %v7827_v45, %v4412_v27  ;;  %v4414_v12 = vpop.f32.mrb[29].mxu1 }
 0x3ce   : > { %v4415_v51 = vpop.f32.mrb[30].mxu1  ;;  %v11683_v0 = vld [vmem:[#allocation2 + $0x58] sm:$0xff] }
 0x3cf   : > { %4785 = vst.msk [vmem:[#allocation2 + $0x68] sm:$0xff] %vm4771_vm2, %v4752_v2  ;;  %v4416_v39 = vadd.f32 %v7830_v23, %v4415_v51  ;;  %v4417_v13 = vpop.f32.mrb[31].mxu1  ;;  %v4497_v47 = vadd.f32 %v4413_v15, %v11488_v56  ;;  %v11689_v24 = vpack.i.bf16 %v11683_v0, %v11681_v21 }
 0x3d0   : > { %v7831_v17 = vpop.f32.mrb[32].mxu0 }
 0x3d1   : > { %v4721_v45 = vadd.f32 %v4620_v58, %v4497_v47  ;;  %v7832_v38 = vpop.f32.mrb[33].mxu0  ;;  %8594 = vrot.lane.b32.xlu0 %v11689_v24, %s9457_s30  ;;  %v4498_v19 = vadd.f32 %v4416_v39, %v11491_v62 }
 0x3d2   : > { %v7833_v54 = vadd.f32 %v7832_v38, %v7831_v17  ;;  %v7834_v36 = vpop.f32.mrb[34].mxu0 }
 0x3d3   : > { %v4753_v23 = vmax.f32 %v4721_v45, 0.0  ;;  %v7835_v56 = vpop.f32.mrb[35].mxu0  ;;  %v4722_v15 = vadd.f32 %v4625_v49, %v4498_v19 }
 0x3d4   : > { %v7836_v27 = vadd.f32 %v7835_v56, %v7834_v36  ;;  %v4420_v2 = vpop.f32.mrb[32].mxu1  ;;  %v11697_v58 = vld [vmem:[#allocation2 + $0x60] sm:$0xff] }
 0x3d5   : > { %4786 = vst.msk [vmem:[#allocation2 + $0x70] sm:$0xff] %vm4771_vm2, %v4753_v23  ;;  %v4754_v12 = vmax.f32 %v4722_v15, 0.0  ;;  %v4421_v51 = vadd.f32 %v7833_v54, %v4420_v2  ;;  %v4422_v13 = vpop.f32.mrb[33].mxu1 }
 0x3d6   : > { %v4423_v31 = vpop.f32.mrb[34].mxu1  ;;  %v11699_v47 = vld [vmem:[#allocation2 + $0x68] sm:$0xff] }
 0x3d7   : > { %4787 = vst.msk [vmem:[#allocation2 + $0x78] sm:$0xff] %vm4771_vm2, %v4754_v12  ;;  %v4499_v62 = vadd.f32 %v4421_v51, %v11494_v18  ;;  %v4424_v39 = vadd.f32 %v7836_v27, %v4423_v31  ;;  %v4425_v17 = vpop.f32.mrb[35].mxu1  ;;  %v11705_v49 = vpack.i.bf16 %v11699_v47, %v11697_v58  ;;  %v8362_v38 = vpack.c.bf16 %v11699_v47, %v11697_v58 }
 0x3d8   : > { %v7837_v45 = vpop.f32.mrb[36].mxu0 }
 0x3d9   : > { %v4723_v19 = vadd.f32 %v11519_v11, %v4499_v62  ;;  %v4500_v54 = vadd.f32 %v4424_v39, %v11497_v29  ;;  %8599 = vrot.lane.b32.xlu0 %v11705_v49, %s9457_s30  ;;  %v7838_v36 = vpop.f32.mrb[37].mxu0 }
 0x3da   : > { %v7839_v23 = vadd.f32 %v7838_v36, %v7837_v45  ;;  %v7840_v18 = vpop.f32.mrb[38].mxu0 }
 0x3db   : > { %v4755_v31 = vmax.f32 %v4723_v19, 0.0  ;;  %v4724_v56 = vadd.f32 %v11517_v33, %v4500_v54  ;;  %v7841_v15 = vpop.f32.mrb[39].mxu0 }
 0x3dc   : > { %v7842_v27 = vadd.f32 %v7841_v15, %v7840_v18  ;;  %v4428_v2 = vpop.f32.mrb[36].mxu1  ;;  %v11715_v62 = vld [vmem:[#allocation2 + $0x70] sm:$0xff] }
 0x3dd   : > { %4788 = vst.msk [vmem:[#allocation2 + $0x80] sm:$0xff] %vm4771_vm2, %v4755_v31  ;;  %v4756_v12 = vmax.f32 %v4724_v56, 0.0  ;;  %v4429_v51 = vadd.f32 %v7839_v23, %v4428_v2  ;;  %v4430_v13 = vpop.f32.mrb[37].mxu1 }
 0x3de   : > { %v4431_v11 = vpop.f32.mrb[38].mxu1  ;;  %v11717_v29 = vld [vmem:[#allocation2 + $0x78] sm:$0xff] }
 0x3df   : > { %4789 = vst.msk [vmem:[#allocation2 + $0x88] sm:$0xff] %vm4771_vm2, %v4756_v12  ;;  %v4501_v39 = vadd.f32 %v4429_v51, %v11500_v6  ;;  %v4432_v17 = vadd.f32 %v7842_v27, %v4431_v11  ;;  %v11723_v33 = vpack.i.bf16 %v11717_v29, %v11715_v62  ;;  %v4433_v45 = vpop.f32.mrb[39].mxu1  ;;  %v8366_v54 = vpack.c.bf16 %v11717_v29, %v11715_v62 }
 0x3e0   : > { %v7843_v19 = vpop.f32.mrb[40].mxu0 }
 0x3e1   : > { %v4725_v36 = vadd.f32 %v11534_v4, %v4501_v39  ;;  %v4502_v23 = vadd.f32 %v4432_v17, %v11503_v7  ;;  %8604 = vrot.lane.b32.xlu0 %v11723_v33, %s9457_s30  ;;  %v7844_v18 = vpop.f32.mrb[41].mxu0 }
 0x3e2   : > { %v7845_v31 = vadd.f32 %v7844_v18, %v7843_v19  ;;  %v7846_v6 = vpop.f32.mrb[42].mxu0 }
 0x3e3   : > { %v4757_v56 = vmax.f32 %v4725_v36, 0.0  ;;  %v4726_v15 = vadd.f32 %v11539_v63, %v4502_v23  ;;  %v7847_v27 = vpop.f32.mrb[43].mxu0 }
 0x3e4   : > { %v7848_v2 = vadd.f32 %v7847_v27, %v7846_v6  ;;  %v4436_v12 = vpop.f32.mrb[40].mxu1  ;;  %v11735_v4 = vld [vmem:[#allocation2 + $0x80] sm:$0xff] }
 0x3e5   : > { %4790 = vst.msk [vmem:[#allocation2 + $0x90] sm:$0xff] %vm4771_vm2, %v4757_v56  ;;  %v4758_v51 = vmax.f32 %v4726_v15, 0.0  ;;  %v4437_v13 = vadd.f32 %v7845_v31, %v4436_v12  ;;  %v4438_v11 = vpop.f32.mrb[41].mxu1  ;;  %8654 = vrot.lane.b32.xlu0 %v11594_v8, %s9458_s12 }
 0x3e6   : > { %v4439_v7 = vpop.f32.mrb[42].mxu1  ;;  %v11737_v39 = vld [vmem:[#allocation2 + $0x88] sm:$0xff] }
 0x3e7   : > { %4791 = vst.msk [vmem:[#allocation2 + $0x98] sm:$0xff] %vm4771_vm2, %v4758_v51  ;;  %v4503_v63 = vadd.f32 %v4437_v13, %v11506_v41  ;;  %v4440_v17 = vadd.f32 %v7848_v2, %v4439_v7  ;;  %v11743_v45 = vpack.i.bf16 %v11737_v39, %v11735_v4  ;;  %v4441_v19 = vpop.f32.mrb[43].mxu1  ;;  %v8336_v23 = vpack.c.bf16 %v11737_v39, %v11735_v4  ;;  %v7239_v4 = vld [vmem:[%s12511_s3 + $0xa8] sm:$0xff] }
 0x3e8   : > { %v7849_v36 = vpop.f32.mrb[44].mxu0 }
 0x3e9   : > { %v4727_v18 = vadd.f32 %v11551_v10, %v4503_v63  ;;  %v4504_v31 = vadd.f32 %v4440_v17, %v11509_v55  ;;  %8609 = vrot.lane.b32.xlu1 %v11743_v45, %s9457_s30  ;;  %8664 = vrot.lane.b32.xlu0 %v11612_v25, %s9458_s12  ;;  %v7850_v41 = vpop.f32.mrb[45].mxu0 }
 0x3ea   : > { %v7851_v6 = vadd.f32 %v7850_v41, %v7849_v36  ;;  %v7852_v56 = vpop.f32.mrb[46].mxu0 }
 0x3eb   : > { %v4759_v15 = vmax.f32 %v4727_v18, 0.0  ;;  %v4728_v27 = vadd.f32 %v11553_v57, %v4504_v31  ;;  %v7853_v2 = vpop.f32.mrb[47].mxu0 }
 0x3ec   : > { %v7854_v12 = vadd.f32 %v7853_v2, %v7852_v56  ;;  %v4444_v51 = vpop.f32.mrb[44].mxu1  ;;  %v11757_v7 = vld [vmem:[#allocation2 + $0x90] sm:$0xff] }
 0x3ed   : > { %4792 = vst.msk [vmem:[#allocation2 + $0xa0] sm:$0xff] %vm4771_vm2, %v4759_v15  ;;  %v4760_v10 = vmax.f32 %v4728_v27, 0.0  ;;  %v4445_v13 = vadd.f32 %v7851_v6, %v4444_v51  ;;  %v4446_v55 = vpop.f32.mrb[45].mxu1  ;;  %8674 = vrot.lane.b32.xlu0 %v11633_v40, %s9458_s12 }
 0x3ee   : > { %v4447_v11 = vpop.f32.mrb[46].mxu1  ;;  %v11759_v63 = vld [vmem:[#allocation2 + $0x98] sm:$0xff] }
 0x3ef   : > { %4793 = vst.msk [vmem:[#allocation2 + $0xa8] sm:$0xff] %vm4771_vm2, %v4760_v10  ;;  %v4505_v57 = vadd.f32 %v4445_v13, %v11512_v5  ;;  %v4448_v17 = vadd.f32 %v7854_v12, %v4447_v11  ;;  %v11765_v19 = vpack.i.bf16 %v11759_v63, %v11757_v7  ;;  %v4449_v36 = vpop.f32.mrb[47].mxu1  ;;  %v8340_v31 = vpack.c.bf16 %v11759_v63, %v11757_v7 }
 0x3f0   : > { %v7855_v18 = vpop.f32.mrb[48].mxu0 }
 0x3f1   : > { %v4729_v41 = vadd.f32 %v11566_v42, %v4505_v57  ;;  %v4506_v6 = vadd.f32 %v4448_v17, %v11515_v43  ;;  %8614 = vrot.lane.b32.xlu1 %v11765_v19, %s9457_s30  ;;  %8684 = vrot.lane.b32.xlu0 %v11653_v37, %s9458_s12  ;;  %v7856_v5 = vpop.f32.mrb[49].mxu0 }
 0x3f2   : > { %v7857_v56 = vadd.f32 %v7856_v5, %v7855_v18  ;;  %v7858_v15 = vpop.f32.mrb[50].mxu0 }
 0x3f3   : > { %v4761_v27 = vmax.f32 %v4729_v41, 0.0  ;;  %v4730_v2 = vadd.f32 %v11570_v53, %v4506_v6  ;;  %v7859_v12 = vpop.f32.mrb[51].mxu0 }
 0x3f4   : > { %v7860_v51 = vadd.f32 %v7859_v12, %v7858_v15  ;;  %v4452_v10 = vpop.f32.mrb[48].mxu1  ;;  %v11779_v11 = vld [vmem:[#allocation2 + $0xa0] sm:$0xff] }
 0x3f5   : > { %4794 = vst.msk [vmem:[#allocation2 + $0xb0] sm:$0xff] %vm4771_vm2, %v4761_v27  ;;  %v4762_v42 = vmax.f32 %v4730_v2, 0.0  ;;  %v4453_v13 = vadd.f32 %v7857_v56, %v4452_v10  ;;  %v4454_v43 = vpop.f32.mrb[49].mxu1  ;;  %8694 = vrot.lane.b32.xlu0 %v11669_v50, %s9458_s12 }
 0x3f6   : > { %v4455_v55 = vpop.f32.mrb[50].mxu1  ;;  %v11781_v57 = vld [vmem:[#allocation2 + $0xa8] sm:$0xff] }
 0x3f7   : > { %4795 = vst.msk [vmem:[#allocation2 + $0xb8] sm:$0xff] %vm4771_vm2, %v4762_v42  ;;  %v4507_v53 = vadd.f32 %v4453_v13, %v11522_v9  ;;  %v4456_v17 = vadd.f32 %v7860_v51, %v4455_v55  ;;  %v11787_v36 = vpack.i.bf16 %v11781_v57, %v11779_v11  ;;  %v4457_v18 = vpop.f32.mrb[51].mxu1  ;;  %v8344_v6 = vpack.c.bf16 %v11781_v57, %v11779_v11  ;;  %v7243_v11 = vld [vmem:[%s12511_s3 + $0xc8] sm:$0xff] }
 0x3f8   : > { %v7861_v41 = vpop.f32.mrb[52].mxu0 }
 0x3f9   : > { %v4731_v5 = vadd.f32 %v11581_v32, %v4507_v53  ;;  %v4508_v56 = vadd.f32 %v4456_v17, %v11525_v26  ;;  %8619 = vrot.lane.b32.xlu1 %v11787_v36, %s9457_s30  ;;  %8704 = vrot.lane.b32.xlu0 %v11689_v24, %s9458_s12  ;;  %v7862_v9 = vpop.f32.mrb[53].mxu0 }
 0x3fa   : > { %v7863_v15 = vadd.f32 %v7862_v9, %v7861_v41  ;;  %v7864_v27 = vpop.f32.mrb[54].mxu0 }
 0x3fb   : > { %v4763_v2 = vmax.f32 %v4731_v5, 0.0  ;;  %v4732_v12 = vadd.f32 %v11588_v22, %v4508_v56  ;;  %v7865_v51 = vpop.f32.mrb[55].mxu0 }
 0x3fc   : > { %v7866_v10 = vadd.f32 %v7865_v51, %v7864_v27  ;;  %v4460_v42 = vpop.f32.mrb[52].mxu1  ;;  %v11801_v55 = vld [vmem:[#allocation2 + $0xb0] sm:$0xff] }
 0x3fd   : > { %4796 = vst.msk [vmem:[#allocation2 + $0xc0] sm:$0xff] %vm4771_vm2, %v4763_v2  ;;  %v4764_v32 = vmax.f32 %v4732_v12, 0.0  ;;  %v4461_v13 = vadd.f32 %v7863_v15, %v4460_v42  ;;  %v4462_v26 = vpop.f32.mrb[53].mxu1  ;;  %8714 = vrot.lane.b32.xlu0 %v11705_v49, %s9458_s12 }
 0x3fe   : > { %v4463_v43 = vpop.f32.mrb[54].mxu1  ;;  %v11803_v53 = vld [vmem:[#allocation2 + $0xb8] sm:$0xff] }
 0x3ff   : > { %4797 = vst.msk [vmem:[#allocation2 + $0xc8] sm:$0xff] %vm4771_vm2, %v4764_v32  ;;  %v4509_v22 = vadd.f32 %v4461_v13, %v11532_v16  ;;  %v4464_v17 = vadd.f32 %v7866_v10, %v4463_v43  ;;  %v11809_v18 = vpack.i.bf16 %v11803_v53, %v11801_v55  ;;  %v4465_v41 = vpop.f32.mrb[55].mxu1  ;;  %v8348_v56 = vpack.c.bf16 %v11803_v53, %v11801_v55  ;;  %v7245_v55 = vld [vmem:[%s12511_s3 + $0xd8] sm:$0xff] }
 0x400   : > { %v7867_v5 = vpop.f32.mrb[56].mxu0 }
 0x401   : > { %v4733_v9 = vadd.f32 %v11614_v14, %v4509_v22  ;;  %v4510_v15 = vadd.f32 %v4464_v17, %v11537_v46  ;;  %8624 = vrot.lane.b32.xlu1 %v11809_v18, %s9457_s30  ;;  %8719 = vrot.lane.b32.xlu0 %v11723_v33, %s9458_s12  ;;  %v7868_v16 = vpop.f32.mrb[57].mxu0 }
 0x402   : > { %v7869_v27 = vadd.f32 %v7868_v16, %v7867_v5  ;;  %v7870_v2 = vpop.f32.mrb[58].mxu0 }
 0x403   : > { %v4765_v12 = vmax.f32 %v4733_v9, 0.0  ;;  %v4734_v51 = vadd.f32 %v11621_v35, %v4510_v15  ;;  %v7871_v10 = vpop.f32.mrb[59].mxu0 }
 0x404   : > { %v7872_v42 = vadd.f32 %v7871_v10, %v7870_v2  ;;  %v4468_v32 = vpop.f32.mrb[56].mxu1  ;;  %v11823_v43 = vld [vmem:[#allocation2 + $0xc0] sm:$0xff] }
 0x405   : > { %4798 = vst.msk [vmem:[#allocation2 + $0xd0] sm:$0xff] %vm4771_vm2, %v4765_v12  ;;  %v4766_v14 = vmax.f32 %v4734_v51, 0.0  ;;  %v4469_v13 = vadd.f32 %v7869_v27, %v4468_v32  ;;  %v4470_v46 = vpop.f32.mrb[57].mxu1  ;;  %8729 = vrot.lane.b32.xlu0 %v11594_v8, %s9459_s17 }
 0x406   : > { %v4471_v26 = vpop.f32.mrb[58].mxu1  ;;  %v11825_v22 = vld [vmem:[#allocation2 + $0xc8] sm:$0xff] }
 0x407   : > { %4799 = vst.msk [vmem:[#allocation2 + $0xd8] sm:$0xff] %vm4771_vm2, %v4766_v14  ;;  %v4511_v35 = vadd.f32 %v4469_v13, %v11544_v59  ;;  %v4472_v17 = vadd.f32 %v7872_v42, %v4471_v26  ;;  %v11831_v41 = vpack.i.bf16 %v11825_v22, %v11823_v43  ;;  %v4473_v5 = vpop.f32.mrb[59].mxu1  ;;  %v8352_v15 = vpack.c.bf16 %v11825_v22, %v11823_v43  ;;  %v7247_v43 = vld [vmem:[%s12511_s3 + $0xe8] sm:$0xff] }
 0x408   : > { %v7873_v9 = vpop.f32.mrb[60].mxu0 }
 0x409   : > { %v4735_v16 = vadd.f32 %v11640_v28, %v4511_v35  ;;  %v4512_v27 = vadd.f32 %v4472_v17, %v11549_v52  ;;  %8629 = vrot.lane.b32.xlu1 %v11831_v41, %s9457_s30  ;;  %8739 = vrot.lane.b32.xlu0 %v11594_v8, %s9460_s22  ;;  %v7874_v59 = vpop.f32.mrb[61].mxu0 }
 0x40a   : > { %v7875_v2 = vadd.f32 %v7874_v59, %v7873_v9  ;;  %v7876_v12 = vpop.f32.mrb[62].mxu0 }
 0x40b   : > { %v4767_v51 = vmax.f32 %v4735_v16, 0.0  ;;  %v4736_v10 = vadd.f32 %v11647_v60, %v4512_v27  ;;  %v7877_v42 = vpop.f32.mrb[63].mxu0 }
 0x40c   : > { %v7878_v32 = vadd.f32 %v7877_v42, %v7876_v12  ;;  %v4476_v14 = vpop.f32.mrb[60].mxu1  ;;  %v11845_v26 = vld [vmem:[#allocation2 + $0xd0] sm:$0xff] }
 0x40d   : > { %4800 = vst.msk [vmem:[#allocation2 + $0xe0] sm:$0xff] %vm4771_vm2, %v4767_v51  ;;  %v4768_v28 = vmax.f32 %v4736_v10, 0.0  ;;  %v4477_v13 = vadd.f32 %v7875_v2, %v4476_v14  ;;  %v4478_v52 = vpop.f32.mrb[61].mxu1  ;;  %8749 = vrot.lane.b32.xlu0 %v11612_v25, %s9459_s17 }
 0x40e   : > { %v4479_v46 = vpop.f32.mrb[62].mxu1  ;;  %v11847_v8 = vld [vmem:[#allocation2 + $0xd8] sm:$0xff] }
 0x40f   : > { %4801 = vst.msk [vmem:[#allocation2 + $0xe8] sm:$0xff] %vm4771_vm2, %v4768_v28  ;;  %v4513_v60 = vadd.f32 %v4477_v13, %v11556_v1  ;;  %v4480_v35 = vadd.f32 %v7878_v32, %v4479_v46  ;;  %v11853_v17 = vpack.i.bf16 %v11847_v8, %v11845_v26  ;;  %v4481_v5 = vpop.f32.mrb[63].mxu1  ;;  %v8356_v9 = vpack.c.bf16 %v11847_v8, %v11845_v26  ;;  %v7249_v26 = vld [vmem:[%s12511_s3 + $0xf8] sm:$0xff] }
 0x411   : > { %v4737_v16 = vadd.f32 %v11671_v3, %v4513_v60  ;;  %v4514_v27 = vadd.f32 %v4480_v35, %v11559_v61  ;;  %8634 = vrot.lane.b32.xlu1 %v11853_v17, %s9457_s30  ;;  %8759 = vrot.lane.b32.xlu0 %v11612_v25, %s9460_s22 }
 0x413   : > { %v4769_v1 = vmax.f32 %v4737_v16, 0.0  ;;  %v4738_v59 = vadd.f32 %v11678_v48, %v4514_v27  ;;  %v7235_v48 = vld [vmem:[%s12511_s3 + $0x88] sm:$0xff] }
 0x414   : > { %v11867_v12 = vld [vmem:[#allocation2 + $0xe0] sm:$0xff]  ;;  %5061 = vmatprep.mubr.f32.mxu0 %v7235_v48 }
 0x415   : > { %4802 = vst.msk [vmem:[#allocation2 + $0xf0] sm:$0xff] %vm4771_vm2, %v4769_v1  ;;  %v4770_v2 = vmax.f32 %v4738_v59, 0.0  ;;  %8769 = vrot.lane.b32.xlu0 %v11633_v40, %s9459_s17 }
 0x416   : > { %v11869_v3 = vld [vmem:[#allocation2 + $0xe8] sm:$0xff] }
 0x417   : > { %4803 = vst.msk [vmem:[#allocation2 + $0xf8] sm:$0xff] %vm4771_vm2, %v4770_v2  ;;  %v11874_v61 = vpack.i.bf16 %v11869_v3, %v11867_v12  ;;  %v8360_v25 = vpack.c.bf16 %v11869_v3, %v11867_v12  ;;  %v7248_v12 = vld [vmem:[%s12511_s3 + $0xf0] sm:$0xff] }
 0x419   : > { %8639 = vrot.lane.b32.xlu1 %v11874_v61, %s9457_s30  ;;  %8779 = vrot.lane.b32.xlu0 %v11633_v40, %s9460_s22  ;;  %v5886_v40 = vld [vmem:[%s12512_s4 + $0x8] sm:$0xff] }
 0x41c   : > { %v11887_v51 = vld [vmem:[#allocation2 + $0xf0] sm:$0xff] }
 0x41d   : > { %8789 = vrot.lane.b32.xlu0 %v11653_v37, %s9459_s17 }
 0x41e   : > { %v11889_v10 = vld [vmem:[#allocation2 + $0xf8] sm:$0xff] }
 0x41f   : > { %v11893_v42 = vpack.i.bf16 %v11889_v10, %v11887_v51  ;;  %v8364_v32 = vpack.c.bf16 %v11889_v10, %v11887_v51  ;;  %v4804_v51 = vld [vmem:[%s12511_s3] sm:$0xff] }
 0x421   : > { %8644 = vrot.lane.b32.xlu1 %v11893_v42, %s9457_s30  ;;  %8799 = vrot.lane.b32.xlu0 %v11653_v37, %s9460_s22  ;;  %v8570_v37 = vpop.permute.xlu0 %8569 }
 0x422   : > { %v8571_v52 = vunpack.i.l.bf16 %v8570_v37 }
 0x425   : > { %8649 = vrot.lane.b32.xlu1 %v11743_v45, %s9458_s12  ;;  %8814 = vrot.lane.b32.xlu0 %v11669_v50, %s9459_s17 }
 0x429   : > { %8659 = vrot.lane.b32.xlu1 %v11765_v19, %s9458_s12  ;;  %8824 = vrot.lane.b32.xlu0 %v11669_v50, %s9460_s22  ;;  %v5888_v50 = vld [vmem:[%s12512_s4 + $0x18] sm:$0xff] }
 0x42d   : > { %8669 = vrot.lane.b32.xlu1 %v11787_v36, %s9458_s12  ;;  %8834 = vrot.lane.b32.xlu0 %v11689_v24, %s9459_s17 }
 0x431   : > { %8679 = vrot.lane.b32.xlu1 %v11809_v18, %s9458_s12  ;;  %8844 = vrot.lane.b32.xlu0 %v11689_v24, %s9460_s22  ;;  %v8575_v24 = vpop.permute.xlu0 %8574 }
 0x432   : > { %v8576_v59 = vunpack.i.l.bf16 %v8575_v24 }
 0x435   : > { %8689 = vrot.lane.b32.xlu1 %v11831_v41, %s9458_s12  ;;  %8854 = vrot.lane.b32.xlu0 %v11705_v49, %s9459_s17 }
 0x439   : > { %8699 = vrot.lane.b32.xlu1 %v11853_v17, %s9458_s12  ;;  %8864 = vrot.lane.b32.xlu0 %v11705_v49, %s9460_s22  ;;  %v5890_v49 = vld [vmem:[%s12512_s4 + $0x28] sm:$0xff] }
 0x43d   : > { %8709 = vrot.lane.b32.xlu1 %v11874_v61, %s9458_s12  ;;  %8869 = vrot.lane.b32.xlu0 %v11723_v33, %s9459_s17 }
 0x441   : > { %8724 = vrot.lane.b32.xlu1 %v11743_v45, %s9459_s17  ;;  %8884 = vrot.lane.b32.xlu0 %v11723_v33, %s9460_s22  ;;  %v8580_v33 = vpop.permute.xlu0 %8579 }
 0x445   : > { %8734 = vrot.lane.b32.xlu1 %v11743_v45, %s9460_s22  ;;  %5900 = vperm.xlu0 %8566, %v5886_v40   ;;  %v5892_v45 = vld [vmem:[%s12512_s4 + $0x38] sm:$0xff]  ;;  %v8585_v14 = vpop.permute.xlu0 %8584 }
 0x449   : > { %8744 = vrot.lane.b32.xlu1 %v11765_v19, %s9459_s17  ;;  %5910 = vperm.xlu0 %8566, %v5888_v50   ;;  %v11953_v28 = vpop.permute.xlu0 %8589 }
 0x44d   : > { %8754 = vrot.lane.b32.xlu1 %v11765_v19, %s9460_s22  ;;  %5920 = vperm.xlu0 %8566, %v5890_v49   ;;  %v11957_v13 = vpop.permute.xlu0 %8594  ;;  %v8572_v19 = vunpack.i.h.bf16 %v8570_v37  ;;  %v8582_v49 = vunpack.i.h.bf16 %v8580_v33 }
 0x44f   : > { %v8306_v27 = vpack.c.bf16 %v8572_v19, %v8571_v52 }
 0x451   : > { %8764 = vrot.lane.b32.xlu1 %v11787_v36, %s9459_s17  ;;  %5930 = vperm.xlu0 %8566, %v5892_v45   ;;  %v11961_v5 = vpop.permute.xlu0 %8599  ;;  %v8581_v45 = vunpack.i.l.bf16 %v8580_v33 }
 0x455   : > { %8774 = vrot.lane.b32.xlu1 %v11787_v36, %s9460_s22  ;;  %v11965_v1 = vpop.permute.xlu0 %8604  ;;  %v8577_v36 = vunpack.i.h.bf16 %v8575_v24 }
 0x457   : > { %v8310_v50 = vpack.c.bf16 %v8577_v36, %v8576_v59 }
 0x459   : > { %8784 = vrot.lane.b32.xlu1 %v11809_v18, %s9459_s17 }
 0x45b   : > { %v8610_v46 = vpop.permute.xlu1 %8609 }
 0x45c   : > { %v8612_v60 = vunpack.i.h.bf16 %v8610_v46  ;;  %v8611_v35 = vunpack.i.l.bf16 %v8610_v46 }
 0x45d   : > { %8794 = vrot.lane.b32.xlu1 %v11809_v18, %s9460_s22  ;;  %v11971_v18 = vpop.permute.xlu0 %8654 }
 0x45e   : > { %v8304_v16 = vpack.c.bf16 %v8612_v60, %v8611_v35  ;;  %v8314_v35 = vpack.c.bf16 %v8582_v49, %v8581_v45  ;;  %v8657_v3 = vunpack.i.h.bf16 %v11971_v18 }
 0x460   : > { %8305 = vmatprep.subr.bf16.mxu0 %v8304_v16  ;;  %v8587_v16 = vunpack.i.h.bf16 %v8585_v14 }
 0x461   : > { %8804 = vrot.lane.b32.xlu1 %v11893_v42, %s9458_s12  ;;  %8307 = vmatpush3.bf16.msra.mxu0 %v8306_v27  ;;  %v11975_v46 = vpop.permute.xlu0 %8664 }
 0x463   : > { %v8615_v2 = vpop.permute.xlu1 %8614 }
 0x464   : > { %v8617_v48 = vunpack.i.h.bf16 %v8615_v2  ;;  %v8616_v40 = vunpack.i.l.bf16 %v8615_v2 }
 0x465   : > { %8809 = vrot.lane.b32.xlu1 %v11831_v41, %s9459_s17  ;;  %v11981_v27 = vpop.permute.xlu0 %8674 }
 0x466   : > { %v8308_v37 = vpack.c.bf16 %v8617_v48, %v8616_v40  ;;  %v7267_v48 = vld [vmem:[%s12511_s3 + $0x188] sm:$0xff] }
 0x467   : > { %5610 = vmatprep.mubr.f32.mxu1 %v7267_v48  ;;  %v8601_v48 = vunpack.i.l.bf16 %v11961_v5 }
 0x468   : > { %8309 = vmatprep.subr.bf16.mxu0 %v8308_v37  ;;  %v8591_v37 = vunpack.i.l.bf16 %v11953_v28 }
 0x469   : > { %8819 = vrot.lane.b32.xlu1 %v11831_v41, %s9460_s22  ;;  %8311 = vmatpush3.bf16.msra.mxu0 %v8310_v50  ;;  %v8586_v41 = vunpack.i.l.bf16 %v8585_v14  ;;  %v8592_v14 = vunpack.i.h.bf16 %v11953_v28  ;;  %v8597_v28 = vunpack.i.h.bf16 %v11957_v13 }
 0x46b   : > { %v8620_v19 = vpop.permute.xlu1 %8619  ;;  %v8318_v40 = vpack.c.bf16 %v8587_v16, %v8586_v41 }
 0x46c   : > { %v8622_v52 = vunpack.i.h.bf16 %v8620_v19  ;;  %v8621_v24 = vunpack.i.l.bf16 %v8620_v19 }
 0x46d   : > { %8829 = vrot.lane.b32.xlu1 %v11853_v17, %s9459_s17 }
 0x46e   : > { %v8312_v60 = vpack.c.bf16 %v8622_v52, %v8621_v24  ;;  %v8322_v52 = vpack.c.bf16 %v8592_v14, %v8591_v37 }
 0x470   : > { %8313 = vmatprep.subr.bf16.mxu0 %v8312_v60  ;;  %v8596_v60 = vunpack.i.l.bf16 %v11957_v13  ;;  %v8602_v13 = vunpack.i.h.bf16 %v11961_v5  ;;  %v8606_v5 = vunpack.i.l.bf16 %v11965_v1 }
 0x471   : > { %8839 = vrot.lane.b32.xlu1 %v11853_v17, %s9460_s22  ;;  %8315 = vmatpush3.bf16.msra.mxu0 %v8314_v35  ;;  %v11988_v17 = vpop.permute.xlu0 %8684 }
 0x473   : > { %v8625_v33 = vpop.permute.xlu1 %8624 }
 0x474   : > { %v8627_v36 = vunpack.i.h.bf16 %v8625_v33  ;;  %v8626_v59 = vunpack.i.l.bf16 %v8625_v33 }
 0x475   : > { %8849 = vrot.lane.b32.xlu1 %v11874_v61, %s9459_s17  ;;  %v11996_v24 = vpop.permute.xlu0 %8694 }
 0x476   : > { %v8316_v2 = vpack.c.bf16 %v8627_v36, %v8626_v59  ;;  %v8326_v59 = vpack.c.bf16 %v8597_v28, %v8596_v60 }
 0x478   : > { %8317 = vmatprep.subr.bf16.mxu0 %v8316_v2  ;;  %v5889_v2 = vld [vmem:[%s12512_s4 + $0x20] sm:$0xff] }
 0x479   : > { %8859 = vrot.lane.b32.xlu1 %v11874_v61, %s9460_s22  ;;  %8319 = vmatpush3.bf16.msra.mxu0 %v8318_v40  ;;  %v5885_v61 = vld [vmem:[%s12512_s4] sm:$0xff]  ;;  %v12005_v33 = vpop.permute.xlu0 %8704 }
 0x47b   : > { %v8630_v50 = vpop.permute.xlu1 %8629 }
 0x47c   : > { %v8632_v49 = vunpack.i.h.bf16 %v8630_v50  ;;  %v8631_v45 = vunpack.i.l.bf16 %v8630_v50 }
 0x47d   : > { %8874 = vrot.lane.b32.xlu1 %v11893_v42, %s9459_s17  ;;  %v12015_v40 = vpop.permute.xlu0 %8714 }
 0x47e   : > { %v8320_v19 = vpack.c.bf16 %v8632_v49, %v8631_v45  ;;  %v5891_v45 = vld [vmem:[%s12512_s4 + $0x30] sm:$0xff] }
 0x480   : > { %8321 = vmatprep.subr.bf16.mxu0 %v8320_v19  ;;  %v8330_v19 = vpack.c.bf16 %v8602_v13, %v8601_v48  ;;  %v12528_v48 = vpack.c.bf16 %v11586_v44, %v11584_v20  ;;  %v12529_v20 = vpack.c.bf16 %v11606_v30, %v11604_v34  ;;  %v7238_v44 = vld [vmem:[%s12511_s3 + $0xa0] sm:$0xff]  ;;  %v12530_v34 = vld [vmem:[#allocation5_spill] sm:$0xff] }
 0x481   : > { %8879 = vrot.lane.b32.xlu1 %v11893_v42, %s9460_s22  ;;  %8323 = vmatpush3.bf16.msra.mxu0 %v8322_v52  ;;  %v5887_v42 = vld [vmem:[%s12512_s4 + $0x10] sm:$0xff]  ;;  %v12020_v52 = vpop.permute.xlu0 %8719  ;;  %v12531_v30 = vld [vmem:[#allocation4_spill] sm:$0xff] }
 0x483   : > { %v8635_v35 = vpop.permute.xlu1 %8634 }
 0x484   : > { %v8637_v16 = vunpack.i.h.bf16 %v8635_v35  ;;  %v8636_v41 = vunpack.i.l.bf16 %v8635_v35 }
 0x485   : > { %5895 = vperm.xlu1 %8567, %v5885_v61   ;;  %v8607_v61 = vunpack.i.h.bf16 %v11965_v1  ;;  %v7237_v1 = vld [vmem:[%s12511_s3 + $0x98] sm:$0xff] }
 0x486   : > { %v8324_v36 = vpack.c.bf16 %v8637_v16, %v8636_v41 }
 0x487   : > { %v8334_v41 = vpack.c.bf16 %v8607_v61, %v8606_v5  ;;  %v12537_v61 = vld [vmem:[#allocation8_spill] sm:$0xff] }
 0x488   : > { %8325 = vmatprep.subr.bf16.mxu0 %v8324_v36  ;;  %v12024_v36 = vpop.permute.xlu0 %8729 }
 0x489   : > { %5905 = vperm.xlu1 %8567, %v5887_v42   ;;  %8327 = vmatpush3.bf16.msra.mxu0 %v8326_v59  ;;  %v7234_v59 = vld [vmem:[%s12511_s3 + $0x80] sm:$0xff]  ;;  %v8732_v8 = vunpack.i.h.bf16 %v12024_v36 }
 0x48b   : > { %v8640_v14 = vpop.permute.xlu1 %8639 }
 0x48c   : > { %v8642_v37 = vunpack.i.h.bf16 %v8640_v14  ;;  %v8641_v50 = vunpack.i.l.bf16 %v8640_v14  ;;  %v12039_v13 = vpop.permute.xlu0 %8739  ;;  %v7236_v14 = vld [vmem:[%s12511_s3 + $0x90] sm:$0xff] }
 0x48d   : > { %5915 = vperm.xlu1 %8567, %v5889_v2  }
 0x48e   : > { %v8328_v49 = vpack.c.bf16 %v8642_v37, %v8641_v50  ;;  %v7240_v37 = vld [vmem:[%s12511_s3 + $0xb0] sm:$0xff]  ;;  %v12533_v50 = vld [vmem:[#allocation7_spill] sm:$0xff] }
 0x490   : > { %8329 = vmatprep.subr.bf16.mxu0 %v8328_v49  ;;  %v12067_v7 = vpop.permute.xlu0 %8749  ;;  %v12534_v49 = vld [vmem:[#allocation6_spill] sm:$0xff] }
 0x491   : > { %5925 = vperm.xlu1 %8567, %v5891_v45   ;;  %8331 = vmatpush3.bf16.msra.mxu0 %v8330_v19  ;;  %v12535_v45 = vpack.c.bf16 %v12533_v50, %v12534_v49  ;;  %v7242_v19 = vld [vmem:[%s12511_s3 + $0xc0] sm:$0xff]  ;;  %v8751_v62 = vunpack.i.l.bf16 %v12067_v7 }
 0x493   : > { %v8645_v28 = vpop.permute.xlu1 %8644 }
 0x494   : > { %v8647_v60 = vunpack.i.h.bf16 %v8645_v28  ;;  %v8646_v35 = vunpack.i.l.bf16 %v8645_v28  ;;  %v7244_v28 = vld [vmem:[%s12511_s3 + $0xd0] sm:$0xff] }
 0x496   : > { %v8332_v16 = vpack.c.bf16 %v8647_v60, %v8646_v35  ;;  %v12539_v60 = vpack.c.bf16 %v11683_v0, %v11681_v21  ;;  %v7246_v35 = vld [vmem:[%s12511_s3 + $0xe0] sm:$0xff] }
 0x497   : > { %v12026_v42 = vpop.permute.xlu1 %8649 }
 0x498   : > { %8333 = vmatprep.subr.bf16.mxu0 %v8332_v16  ;;  %v8652_v0 = vunpack.i.h.bf16 %v12026_v42  ;;  %v8651_v21 = vunpack.i.l.bf16 %v12026_v42 }
 0x499   : > { %8335 = vmatpush3.bf16.msra.mxu0 %v8334_v41 }
 0x49a   : > { %8337 = vmatprep.subr.bf16.mxu0 %v8336_v23  ;;  %v7241_v23 = vld [vmem:[%s12511_s3 + $0xb8] sm:$0xff] }
 0x49b   : > { %v12037_v2 = vpop.permute.xlu1 %8659 }
 0x49c   : > { %5062 = vmatmul.mubr.f32.vlgmr.msra.gmra.mrb[64].mxu0 %v7234_v59  ;;  %v8661_v58 = vunpack.i.l.bf16 %v12037_v2 }
 0x49d   : > { %8339 = vmatpush3.bf16.msra.mxu0 %v12528_v48  ;;  %5066 = vmatprep.mubr.f32.mxu0 %v7237_v1  ;;  %v8662_v48 = vunpack.i.h.bf16 %v12037_v2  ;;  %v8666_v2 = vunpack.i.l.bf16 %v11975_v46 }
 0x49e   : > { %8341 = vmatprep.subr.bf16.mxu0 %v8340_v31  ;;  %v12532_v31 = vpack.c.bf16 %v12530_v34, %v12531_v30 }
 0x49f   : > { %v12053_v39 = vpop.permute.xlu1 %8669 }
 0x4a0   : > { %5067 = vmatmul.mubr.f32.gmra.mrb[66].mxu0 %v7236_v14  ;;  %v8368_v14 = vpack.c.bf16 %v8652_v0, %v8651_v21  ;;  %v4810_v21 = vld [vmem:[%s12511_s3 + $0x30] sm:$0xff] }
 0x4a1   : > { %8343 = vmatpush3.bf16.msra.mxu0 %v12529_v20  ;;  %5071 = vmatprep.mubr.f32.mxu0 %v7239_v4  ;;  %v8752_v4 = vunpack.i.h.bf16 %v12067_v7  ;;  %v8676_v7 = vunpack.i.l.bf16 %v11981_v27 }
 0x4a2   : > { %8345 = vmatprep.subr.bf16.mxu0 %v8344_v6  ;;  %v12085_v6 = vpop.permute.xlu0 %8759 }
 0x4a3   : > { %v12069_v63 = vpop.permute.xlu1 %8679  ;;  %v8406_v50 = vpack.c.bf16 %v8752_v4, %v8751_v62 }
 0x4a4   : > { %5072 = vmatmul.mubr.f32.gmra.mrb[68].mxu0 %v7238_v44  ;;  %v8672_v44 = vunpack.i.h.bf16 %v12053_v39  ;;  %v8682_v49 = vunpack.i.h.bf16 %v12069_v63 }
 0x4a5   : > { %8347 = vmatpush3.bf16.msra.mxu0 %v12532_v31  ;;  %5076 = vmatprep.mubr.f32.mxu0 %v7241_v23  ;;  %v8671_v23 = vunpack.i.l.bf16 %v12053_v39  ;;  %v8677_v31 = vunpack.i.h.bf16 %v11981_v27  ;;  %v8681_v39 = vunpack.i.l.bf16 %v12069_v63  ;;  %v4808_v27 = vld [vmem:[%s12511_s3 + $0x20] sm:$0xff]  ;;  %v8687_v63 = vunpack.i.h.bf16 %v11988_v17 }
 0x4a6   : > { %8349 = vmatprep.subr.bf16.mxu0 %v8348_v56  ;;  %v12536_v56 = vld [vmem:[#allocation9_spill] sm:$0xff]  ;;  %v12113_v22 = vpop.permute.xlu0 %8769 }
 0x4a7   : > { %v12083_v57 = vpop.permute.xlu1 %8689  ;;  %v12538_v5 = vpack.c.bf16 %v12536_v56, %v12537_v61  ;;  %v8378_v61 = vpack.c.bf16 %v8677_v31, %v8676_v7  ;;  %v4816_v7 = vld [vmem:[%s12511_s3 + $0x60] sm:$0xff] }
 0x4a8   : > { %5077 = vmatmul.mubr.f32.gmra.mrb[70].mxu0 %v7240_v37 }
 0x4a9   : > { %8351 = vmatpush3.bf16.msra.mxu0 %v12535_v45  ;;  %5081 = vmatprep.mubr.f32.mxu0 %v7243_v11 }
 0x4aa   : > { %8353 = vmatprep.subr.bf16.mxu0 %v8352_v15  ;;  %v12133_v1 = vpop.permute.xlu0 %8779 }
 0x4ab   : > { %v12099_v53 = vpop.permute.xlu1 %8699 }
 0x4ac   : > { %5082 = vmatmul.mubr.f32.gmra.mrb[72].mxu0 %v7242_v19  ;;  %v4809_v19 = vld [vmem:[%s12511_s3 + $0x28] sm:$0xff] }
 0x4ad   : > { %8355 = vmatpush3.bf16.msra.mxu0 %v12538_v5  ;;  %5086 = vmatprep.mubr.f32.mxu0 %v7245_v55  ;;  %v8376_v55 = vpack.c.bf16 %v8672_v44, %v8671_v23  ;;  %v4811_v5 = vld [vmem:[%s12511_s3 + $0x38] sm:$0xff]  ;;  %v8717_v23 = vunpack.i.h.bf16 %v12015_v40 }
 0x4ae   : > { %8357 = vmatprep.subr.bf16.mxu0 %v8356_v9  ;;  %v8731_v9 = vunpack.i.l.bf16 %v12024_v36  ;;  %v12166_v29 = vpop.permute.xlu0 %8789 }
 0x4af   : > { %v12115_v15 = vpop.permute.xlu1 %8709 }
 0x4b0   : > { %5087 = vmatmul.mubr.f32.gmra.mrb[74].mxu0 %v7244_v28  ;;  %v8402_v42 = vpack.c.bf16 %v8732_v8, %v8731_v9  ;;  %v8686_v28 = vunpack.i.l.bf16 %v11988_v17  ;;  %v8692_v8 = vunpack.i.h.bf16 %v12083_v57  ;;  %v8691_v9 = vunpack.i.l.bf16 %v12083_v57 }
 0x4b1   : > { %8359 = vmatpush3.bf16.msra.mxu0 %v12539_v60  ;;  %5091 = vmatprep.mubr.f32.mxu0 %v7247_v43  ;;  %v8772_v43 = vunpack.i.h.bf16 %v12113_v22  ;;  %v8771_v60 = vunpack.i.l.bf16 %v12113_v22  ;;  %v8697_v17 = vunpack.i.h.bf16 %v11996_v24  ;;  %v8702_v57 = vunpack.i.h.bf16 %v12099_v53 }
 0x4b2   : > { %8361 = vmatprep.subr.bf16.mxu0 %v8360_v25  ;;  %v8656_v25 = vunpack.i.l.bf16 %v11971_v18  ;;  %v4807_v18 = vld [vmem:[%s12511_s3 + $0x18] sm:$0xff]  ;;  %v12182_v56 = vpop.permute.xlu0 %8799  ;;  %v8711_v4 = vunpack.i.l.bf16 %v12115_v15 }
 0x4b3   : > { %v8725_v16 = vpop.permute.xlu1 %8724 }
 0x4b4   : > { %v8727_v41 = vunpack.i.h.bf16 %v8725_v16  ;;  %v8726_v59 = vunpack.i.l.bf16 %v8725_v16  ;;  %5092 = vmatmul.mubr.f32.gmra.mrb[76].mxu0 %v7246_v35  ;;  %v8370_v10 = vpack.c.bf16 %v8657_v3, %v8656_v25  ;;  %v8380_v35 = vpack.c.bf16 %v8682_v49, %v8681_v39 }
 0x4b5   : > { %8363 = vmatpush3.bf16.msra.mxu0 %v8362_v38  ;;  %5096 = vmatprep.mubr.f32.mxu0 %v7249_v26  ;;  %v4805_v38 = vld [vmem:[%s12511_s3 + $0x8] sm:$0xff]  ;;  %v8701_v25 = vunpack.i.l.bf16 %v12099_v53  ;;  %v4815_v53 = vld [vmem:[%s12511_s3 + $0x58] sm:$0xff] }
 0x4b6   : > { %v8400_v36 = vpack.c.bf16 %v8727_v41, %v8726_v59  ;;  %8365 = vmatprep.subr.bf16.mxu0 %v8364_v32  ;;  %v8667_v32 = vunpack.i.h.bf16 %v11975_v46  ;;  %v4806_v46 = vld [vmem:[%s12511_s3 + $0x10] sm:$0xff]  ;;  %v8696_v41 = vunpack.i.l.bf16 %v11996_v24  ;;  %v8382_v59 = vpack.c.bf16 %v8687_v63, %v8686_v28  ;;  %v12201_v3 = vpop.permute.xlu0 %8814  ;;  %v4812_v24 = vld [vmem:[%s12511_s3 + $0x40] sm:$0xff] }
 0x4b7   : > { %v12148_v47 = vpop.permute.xlu1 %8734 }
 0x4b8   : > { %5097 = vmatmul.mubr.f32.gmra.mrb[78].mxu0 %v7248_v12  ;;  %8401 = vmatprep.subr.bf16.mxu1 %v8400_v36  ;;  %v8374_v11 = vpack.c.bf16 %v8667_v32, %v8666_v2  ;;  %v8410_v12 = vpack.c.bf16 %v8772_v43, %v8771_v60  ;;  %v8388_v32 = vpack.c.bf16 %v8702_v57, %v8701_v25  ;;  %v8712_v2 = vunpack.i.h.bf16 %v12115_v15  ;;  %v7251_v43 = vld [vmem:[%s12511_s3 + $0x108] sm:$0xff] }
 0x4b9   : > { %8367 = vmatpush3.bf16.msra.mxu0 %v8366_v54  ;;  %8403 = vmatpush3.bf16.msra.mxu1 %v8402_v42  ;;  %v8372_v54 = vpack.c.bf16 %v8662_v48, %v8661_v58  ;;  %v4813_v42 = vld [vmem:[%s12511_s3 + $0x48] sm:$0xff]  ;;  %v8384_v48 = vpack.c.bf16 %v8692_v8, %v8691_v9  ;;  %v8386_v58 = vpack.c.bf16 %v8697_v17, %v8696_v41  ;;  %v8737_v39 = vunpack.i.h.bf16 %v12148_v47 }
 0x4ba   : > { %8369 = vmatprep.subr.bf16.mxu0 %v8368_v14  ;;  %5166 = vmatprep.mubr.f32.mxu0 %v4805_v38  ;;  %v8707_v38 = vunpack.i.h.bf16 %v12005_v33  ;;  %v8706_v14 = vunpack.i.l.bf16 %v12005_v33  ;;  %v4814_v33 = vld [vmem:[%s12511_s3 + $0x50] sm:$0xff]  ;;  %v8392_v31 = vpack.c.bf16 %v8712_v2, %v8711_v4  ;;  %v8817_v60 = vunpack.i.h.bf16 %v12201_v3 }
 0x4bb   : > { %v8745_v20 = vpop.permute.xlu1 %8744  ;;  %v8762_v41 = vunpack.i.h.bf16 %v12085_v6 }
 0x4bc   : > { %v8747_v34 = vunpack.i.h.bf16 %v8745_v20  ;;  %v8746_v30 = vunpack.i.l.bf16 %v8745_v20  ;;  %5167 = vmatmul.mubr.f32.vlgmr.msra.gmra.mrb[80].mxu0 %v4804_v51  ;;  %v8792_v51 = vunpack.i.h.bf16 %v12166_v29  ;;  %v12222_v20 = vpop.permute.xlu0 %8824 }
 0x4bd   : > { %8371 = vmatpush3.bf16.msra.mxu0 %v8370_v10  ;;  %5171 = vmatprep.mubr.f32.mxu0 %v4807_v18  ;;  %v8791_v10 = vunpack.i.l.bf16 %v12166_v29  ;;  %v8390_v29 = vpack.c.bf16 %v8707_v38, %v8706_v14  ;;  %v8781_v38 = vunpack.i.l.bf16 %v12133_v1 }
 0x4be   : > { %v8404_v37 = vpack.c.bf16 %v8747_v34, %v8746_v30  ;;  %8373 = vmatprep.subr.bf16.mxu0 %v8372_v54  ;;  %v8716_v34 = vunpack.i.l.bf16 %v12015_v40  ;;  %v8721_v40 = vunpack.i.l.bf16 %v12020_v52 }
 0x4bf   : > { %v12177_v45 = vpop.permute.xlu1 %8754  ;;  %v8414_v30 = vpack.c.bf16 %v8792_v51, %v8791_v10 }
 0x4c0   : > { %5172 = vmatmul.mubr.f32.gmra.mrb[82].mxu0 %v4806_v46  ;;  %8405 = vmatprep.subr.bf16.mxu1 %v8404_v37  ;;  %v4817_v46 = vld [vmem:[%s12511_s3 + $0x68] sm:$0xff]  ;;  %v8722_v37 = vunpack.i.h.bf16 %v12020_v52  ;;  %v12242_v49 = vpop.permute.xlu0 %8834  ;;  %v4818_v52 = vld [vmem:[%s12511_s3 + $0x70] sm:$0xff]  ;;  %v8757_v9 = vunpack.i.h.bf16 %v12177_v45 }
 0x4c1   : > { %8375 = vmatpush3.bf16.msra.mxu0 %v8374_v11  ;;  %8407 = vmatpush3.bf16.msra.mxu1 %v8406_v50  ;;  %v4819_v11 = vld [vmem:[%s12511_s3 + $0x78] sm:$0xff]  ;;  %v8394_v50 = vpack.c.bf16 %v8717_v23, %v8716_v34  ;;  %v8836_v14 = vunpack.i.l.bf16 %v12242_v49 }
 0x4c2   : > { %8377 = vmatprep.subr.bf16.mxu0 %v8376_v55  ;;  %5176 = vmatprep.mubr.f32.mxu0 %v4809_v19  ;;  %v8736_v19 = vunpack.i.l.bf16 %v12148_v47  ;;  %v8398_v63 = vpack.c.bf16 %v8722_v37, %v8721_v40  ;;  %v8741_v47 = vunpack.i.l.bf16 %v12039_v13  ;;  %v8827_v40 = vunpack.i.h.bf16 %v12222_v20 }
 0x4c3   : > { %v8765_v26 = vpop.permute.xlu1 %8764 }
 0x4c4   : > { %v8767_v16 = vunpack.i.h.bf16 %v8765_v26  ;;  %v8766_v0 = vunpack.i.l.bf16 %v8765_v26  ;;  %5177 = vmatmul.mubr.f32.gmra.mrb[84].mxu0 %v4808_v27  ;;  %v8432_v26 = vpack.c.bf16 %v8737_v39, %v8736_v19  ;;  %v12258_v17 = vpop.permute.xlu0 %8844 }
 0x4c5   : > { %8379 = vmatpush3.bf16.msra.mxu0 %v8378_v61  ;;  %5181 = vmatprep.mubr.f32.mxu0 %v4811_v5  ;;  %v8742_v5 = vunpack.i.h.bf16 %v12039_v13  ;;  %v7250_v13 = vld [vmem:[%s12511_s3 + $0x100] sm:$0xff] }
 0x4c6   : > { %v8408_v22 = vpack.c.bf16 %v8767_v16, %v8766_v0  ;;  %8381 = vmatprep.subr.bf16.mxu0 %v8380_v35  ;;  %v8816_v35 = vunpack.i.l.bf16 %v12201_v3  ;;  %v8756_v16 = vunpack.i.l.bf16 %v12177_v45 }
 0x4c7   : > { %v12205_v36 = vpop.permute.xlu1 %8774 }
 0x4c8   : > { %5182 = vmatmul.mubr.f32.gmra.mrb[86].mxu0 %v4810_v21  ;;  %8409 = vmatprep.subr.bf16.mxu1 %v8408_v22  ;;  %v8761_v22 = vunpack.i.l.bf16 %v12085_v6  ;;  %v8418_v45 = vpack.c.bf16 %v8817_v60, %v8816_v35  ;;  %v8777_v3 = vunpack.i.h.bf16 %v12205_v36  ;;  %v8776_v57 = vunpack.i.l.bf16 %v12205_v36  ;;  %v7252_v6 = vld [vmem:[%s12511_s3 + $0x110] sm:$0xff]  ;;  %v7255_v36 = vld [vmem:[%s12511_s3 + $0x128] sm:$0xff]  ;;  %v8855_v51 = vpop.permute.xlu0 %8854 }
 0x4c9   : > { %8383 = vmatpush3.bf16.msra.mxu0 %v8382_v59  ;;  %8411 = vmatpush3.bf16.msra.mxu1 %v8410_v12  ;;  %v8434_v12 = vpack.c.bf16 %v8742_v5, %v8741_v47  ;;  %v8856_v39 = vunpack.i.l.bf16 %v8855_v51  ;;  %v7258_v5 = vld [vmem:[%s12511_s3 + $0x140] sm:$0xff] }
 0x4ca   : > { %8385 = vmatprep.subr.bf16.mxu0 %v8384_v48  ;;  %5186 = vmatprep.mubr.f32.mxu0 %v4813_v42  ;;  %v7253_v42 = vld [vmem:[%s12511_s3 + $0x118] sm:$0xff]  ;;  %v8436_v48 = vpack.c.bf16 %v8757_v9, %v8756_v16  ;;  %v8440_v10 = vpack.c.bf16 %v8777_v3, %v8776_v57 }
 0x4cb   : > { %v8785_v18 = vpop.permute.xlu1 %8784 }
 0x4cc   : > { %v8787_v62 = vunpack.i.h.bf16 %v8785_v18  ;;  %v8786_v54 = vunpack.i.l.bf16 %v8785_v18  ;;  %5187 = vmatmul.mubr.f32.gmra.mrb[88].mxu0 %v4812_v24  ;;  %v8438_v24 = vpack.c.bf16 %v8762_v41, %v8761_v22 }
 0x4cd   : > { %8387 = vmatpush3.bf16.msra.mxu0 %v8386_v58  ;;  %5191 = vmatprep.mubr.f32.mxu0 %v4815_v53  ;;  %v8782_v58 = vunpack.i.h.bf16 %v12133_v1  ;;  %v8837_v53 = vunpack.i.h.bf16 %v12242_v49  ;;  %v7254_v1 = vld [vmem:[%s12511_s3 + $0x120] sm:$0xff]  ;;  %v8857_v49 = vunpack.i.h.bf16 %v8855_v51 }
 0x4ce   : > { %v8412_v44 = vpack.c.bf16 %v8787_v62, %v8786_v54  ;;  %8389 = vmatprep.subr.bf16.mxu0 %v8388_v32  ;;  %v8802_v54 = vunpack.i.h.bf16 %v12182_v56 }
 0x4cf   : > { %v12229_v15 = vpop.permute.xlu1 %8794  ;;  %v8422_v23 = vpack.c.bf16 %v8837_v53, %v8836_v14  ;;  %v8426_v60 = vpack.c.bf16 %v8857_v49, %v8856_v39  ;;  %v7276_v49 = vld [vmem:[%s12511_s3 + $0x1d0] sm:$0xff]  ;;  %v7290_v39 = vld [vmem:[%s12511_s3 + $0x240] sm:$0xff] }
 0x4d0   : > { %5192 = vmatmul.mubr.f32.gmra.mrb[90].mxu0 %v4814_v33  ;;  %8413 = vmatprep.subr.bf16.mxu1 %v8412_v44  ;;  %v8797_v18 = vunpack.i.h.bf16 %v12229_v15  ;;  %v8796_v2 = vunpack.i.l.bf16 %v12229_v15  ;;  %v8801_v33 = vunpack.i.l.bf16 %v12182_v56  ;;  %v7256_v56 = vld [vmem:[%s12511_s3 + $0x130] sm:$0xff] }
 0x4d1   : > { %8391 = vmatpush3.bf16.msra.mxu0 %v8390_v29  ;;  %8415 = vmatpush3.bf16.msra.mxu1 %v8414_v30  ;;  %v8442_v29 = vpack.c.bf16 %v8782_v58, %v8781_v38  ;;  %v7265_v38 = vld [vmem:[%s12511_s3 + $0x178] sm:$0xff] }
 0x4d2   : > { %8393 = vmatprep.subr.bf16.mxu0 %v8392_v31  ;;  %5196 = vmatprep.mubr.f32.mxu0 %v4817_v46  ;;  %v7257_v46 = vld [vmem:[%s12511_s3 + $0x138] sm:$0xff]  ;;  %v8444_v31 = vpack.c.bf16 %v8797_v18, %v8796_v2  ;;  %v8446_v37 = vpack.c.bf16 %v8802_v54, %v8801_v33  ;;  %v7266_v18 = vld [vmem:[%s12511_s3 + $0x180] sm:$0xff]  ;;  %v7268_v54 = vld [vmem:[%s12511_s3 + $0x190] sm:$0xff] }
 0x4d3   : > { %v8805_v55 = vpop.permute.xlu1 %8804  ;;  %v7282_v33 = vld [vmem:[%s12511_s3 + $0x200] sm:$0xff] }
 0x4d4   : > { %v8807_v27 = vunpack.i.h.bf16 %v8805_v55  ;;  %v8806_v61 = vunpack.i.l.bf16 %v8805_v55  ;;  %5197 = vmatmul.mubr.f32.gmra.mrb[92].mxu0 %v4816_v7  ;;  %v8865_v7 = vpop.permute.xlu0 %8864 }
 0x4d5   : > { %8395 = vmatpush3.bf16.msra.mxu0 %v8394_v50  ;;  %5201 = vmatprep.mubr.f32.mxu0 %v4819_v11  ;;  %v7259_v11 = vld [vmem:[%s12511_s3 + $0x148] sm:$0xff]  ;;  %v8826_v50 = vunpack.i.l.bf16 %v12222_v20  ;;  %v8867_v41 = vunpack.i.h.bf16 %v8865_v7  ;;  %v8866_v22 = vunpack.i.l.bf16 %v8865_v7 }
 0x4d6   : > { %v8396_v28 = vpack.c.bf16 %v8807_v27, %v8806_v61  ;;  %v7275_v7 = vld [vmem:[%s12511_s3 + $0x1c8] sm:$0xff] }
 0x4d7   : > { %v8810_v8 = vpop.permute.xlu1 %8809  ;;  %v8450_v47 = vpack.c.bf16 %v8827_v40, %v8826_v50  ;;  %v7288_v40 = vld [vmem:[%s12511_s3 + $0x230] sm:$0xff]  ;;  %v7291_v50 = vld [vmem:[%s12511_s3 + $0x248] sm:$0xff] }
 0x4d8   : > { %v8812_v0 = vunpack.i.h.bf16 %v8810_v8  ;;  %v8811_v21 = vunpack.i.l.bf16 %v8810_v8  ;;  %5202 = vmatmul.mubr.f32.gmra.mrb[94].mxu0 %v4818_v52  ;;  %8397 = vmatprep.subr.bf16.mxu0 %v8396_v28  ;;  %v8847_v28 = vunpack.i.h.bf16 %v12258_v17  ;;  %v8870_v35 = vpop.permute.xlu0 %8869  ;;  %v7261_v8 = vld [vmem:[%s12511_s3 + $0x158] sm:$0xff] }
 0x4d9   : > { %8399 = vmatpush3.bf16.msra.mxu0 %v8398_v63  ;;  %5384 = vmatprep.mubr.f32.mxu0 %v7251_v43  ;;  %v8846_v43 = vunpack.i.l.bf16 %v12258_v17 }
 0x4da   : > { %v8416_v59 = vpack.c.bf16 %v8812_v0, %v8811_v21  ;;  %8433 = vmatprep.subr.bf16.mxu0 %v8432_v26  ;;  %v7260_v21 = vld [vmem:[%s12511_s3 + $0x150] sm:$0xff] }
 0x4db   : > { %v8820_v25 = vpop.permute.xlu1 %8819  ;;  %v8454_v17 = vpack.c.bf16 %v8847_v28, %v8846_v43  ;;  %v7294_v28 = vld [vmem:[%s12511_s3 + $0x260] sm:$0xff]  ;;  %v7297_v43 = vld [vmem:[%s12511_s3 + $0x278] sm:$0xff] }
 0x4dc   : > { %5385 = vmatmul.mubr.f32.vlgmr.msra.gmra.mrb[96].mxu0 %v7250_v13  ;;  %8417 = vmatprep.subr.bf16.mxu1 %v8416_v59  ;;  %v8822_v34 = vunpack.i.h.bf16 %v8820_v25  ;;  %v8821_v30 = vunpack.i.l.bf16 %v8820_v25  ;;  %v7263_v13 = vld [vmem:[%s12511_s3 + $0x168] sm:$0xff]  ;;  %v8872_v59 = vunpack.i.h.bf16 %v8870_v35 }
 0x4dd   : > { %8419 = vmatpush3.bf16.msra.mxu1 %v8418_v45  ;;  %8435 = vmatpush3.bf16.msra.mxu0 %v8434_v12  ;;  %v8871_v12 = vunpack.i.l.bf16 %v8870_v35 }
 0x4de   : > { %8437 = vmatprep.subr.bf16.mxu0 %v8436_v48  ;;  %5389 = vmatprep.mubr.f32.mxu0 %v7253_v42  ;;  %v8448_v19 = vpack.c.bf16 %v8822_v34, %v8821_v30  ;;  %v8885_v42 = vpop.permute.xlu0 %8884  ;;  %v7262_v48 = vld [vmem:[%s12511_s3 + $0x160] sm:$0xff]  ;;  %v7284_v34 = vld [vmem:[%s12511_s3 + $0x210] sm:$0xff]  ;;  %v7273_v30 = vld [vmem:[%s12511_s3 + $0x1b8] sm:$0xff] }
 0x4df   : > { %v8830_v32 = vpop.permute.xlu1 %8829  ;;  %v8430_v58 = vpack.c.bf16 %v8872_v59, %v8871_v12  ;;  %v8887_v53 = vunpack.i.h.bf16 %v8885_v42  ;;  %v8886_v14 = vunpack.i.l.bf16 %v8885_v42 }
 0x4e0   : > { %v8832_v4 = vunpack.i.h.bf16 %v8830_v32  ;;  %v8831_v62 = vunpack.i.l.bf16 %v8830_v32  ;;  %5390 = vmatmul.mubr.f32.gmra.mrb[98].mxu0 %v7252_v6  ;;  %v7264_v32 = vld [vmem:[%s12511_s3 + $0x170] sm:$0xff] }
 0x4e1   : > { %8439 = vmatpush3.bf16.msra.mxu0 %v8438_v24  ;;  %5394 = vmatprep.mubr.f32.mxu0 %v7255_v36  ;;  %v8458_v24 = vpack.c.bf16 %v8867_v41, %v8866_v22 }
 0x4e2   : > { %v8420_v44 = vpack.c.bf16 %v8832_v4, %v8831_v62  ;;  %8441 = vmatprep.subr.bf16.mxu0 %v8440_v10  ;;  %v7269_v4 = vld [vmem:[%s12511_s3 + $0x198] sm:$0xff]  ;;  %v7283_v62 = vld [vmem:[%s12511_s3 + $0x208] sm:$0xff] }
 0x4e3   : > { %v8840_v15 = vpop.permute.xlu1 %8839 }
 0x4e4   : > { %5395 = vmatmul.mubr.f32.gmra.mrb[100].mxu0 %v7254_v1  ;;  %8421 = vmatprep.subr.bf16.mxu1 %v8420_v44  ;;  %v8842_v27 = vunpack.i.h.bf16 %v8840_v15  ;;  %v8841_v61 = vunpack.i.l.bf16 %v8840_v15  ;;  %v8462_v1 = vpack.c.bf16 %v8887_v53, %v8886_v14  ;;  %v7271_v44 = vld [vmem:[%s12511_s3 + $0x1a8] sm:$0xff] }
 0x4e5   : > { %8423 = vmatpush3.bf16.msra.mxu1 %v8422_v23  ;;  %8443 = vmatpush3.bf16.msra.mxu0 %v8442_v29  ;;  %v7285_v29 = vld [vmem:[%s12511_s3 + $0x218] sm:$0xff]  ;;  %v7270_v23 = vld [vmem:[%s12511_s3 + $0x1a0] sm:$0xff]  ;;  %v7287_v15 = vld [vmem:[%s12511_s3 + $0x228] sm:$0xff] }
 0x4e6   : > { %8445 = vmatprep.subr.bf16.mxu0 %v8444_v31  ;;  %5399 = vmatprep.mubr.f32.mxu0 %v7257_v46  ;;  %v8452_v9 = vpack.c.bf16 %v8842_v27, %v8841_v61  ;;  %v7272_v46 = vld [vmem:[%s12511_s3 + $0x1b0] sm:$0xff]  ;;  %v7286_v31 = vld [vmem:[%s12511_s3 + $0x220] sm:$0xff] }
 0x4e7   : > { %v8850_v55 = vpop.permute.xlu1 %8849  ;;  %v7278_v27 = vld [vmem:[%s12511_s3 + $0x1e0] sm:$0xff]  ;;  %v7292_v61 = vld [vmem:[%s12511_s3 + $0x250] sm:$0xff] }
 0x4e8   : > { %v8852_v52 = vunpack.i.h.bf16 %v8850_v55  ;;  %v8851_v63 = vunpack.i.l.bf16 %v8850_v55  ;;  %5400 = vmatmul.mubr.f32.gmra.mrb[102].mxu0 %v7256_v56  ;;  %v7289_v56 = vld [vmem:[%s12511_s3 + $0x238] sm:$0xff] }
 0x4e9   : > { %8447 = vmatpush3.bf16.msra.mxu0 %v8446_v37  ;;  %5404 = vmatprep.mubr.f32.mxu0 %v7259_v11  ;;  %v7274_v37 = vld [vmem:[%s12511_s3 + $0x1c0] sm:$0xff]  ;;  %v7277_v11 = vld [vmem:[%s12511_s3 + $0x1d8] sm:$0xff] }
 0x4ea   : > { %v8424_v20 = vpack.c.bf16 %v8852_v52, %v8851_v63  ;;  %8449 = vmatprep.subr.bf16.mxu0 %v8448_v19  ;;  %v7279_v19 = vld [vmem:[%s12511_s3 + $0x1e8] sm:$0xff]  ;;  %v7293_v55 = vld [vmem:[%s12511_s3 + $0x258] sm:$0xff] }
 0x4eb   : > { %v8860_v26 = vpop.permute.xlu1 %8859  ;;  %v7281_v52 = vld [vmem:[%s12511_s3 + $0x1f8] sm:$0xff]  ;;  %v7295_v63 = vld [vmem:[%s12511_s3 + $0x268] sm:$0xff] }
 0x4ec   : > { %v8862_v16 = vunpack.i.h.bf16 %v8860_v26  ;;  %v8861_v0 = vunpack.i.l.bf16 %v8860_v26  ;;  %5405 = vmatmul.mubr.f32.gmra.mrb[104].mxu0 %v7258_v5  ;;  %8425 = vmatprep.subr.bf16.mxu1 %v8424_v20  ;;  %v7280_v5 = vld [vmem:[%s12511_s3 + $0x1f0] sm:$0xff] }
 0x4ed   : > { %8427 = vmatpush3.bf16.msra.mxu1 %v8426_v60  ;;  %8451 = vmatpush3.bf16.msra.mxu0 %v8450_v47  ;;  %v7296_v20 = vld [vmem:[%s12511_s3 + $0x270] sm:$0xff] }
 0x4ee   : > { %8453 = vmatprep.subr.bf16.mxu0 %v8452_v9  ;;  %5409 = vmatprep.mubr.f32.mxu0 %v7261_v8  ;;  %v8456_v3 = vpack.c.bf16 %v8862_v16, %v8861_v0 }
 0x4ef   : > { %v8875_v45 = vpop.permute.xlu1 %8874 }
 0x4f0   : > { %v8877_v57 = vunpack.i.h.bf16 %v8875_v45  ;;  %v8876_v25 = vunpack.i.l.bf16 %v8875_v45  ;;  %5410 = vmatmul.mubr.f32.gmra.mrb[106].mxu0 %v7260_v21 }
 0x4f1   : > { %8455 = vmatpush3.bf16.msra.mxu0 %v8454_v17  ;;  %5414 = vmatprep.mubr.f32.mxu0 %v7263_v13 }
 0x4f2   : > { %v8428_v6 = vpack.c.bf16 %v8877_v57, %v8876_v25  ;;  %8457 = vmatprep.subr.bf16.mxu0 %v8456_v3 }
 0x4f3   : > { %v8880_v36 = vpop.permute.xlu1 %8879 }
 0x4f4   : > { %v8882_v51 = vunpack.i.h.bf16 %v8880_v36  ;;  %v8881_v10 = vunpack.i.l.bf16 %v8880_v36  ;;  %5415 = vmatmul.mubr.f32.gmra.mrb[108].mxu0 %v7262_v48  ;;  %8429 = vmatprep.subr.bf16.mxu1 %v8428_v6 }
 0x4f5   : > { %8431 = vmatpush3.bf16.msra.mxu1 %v8430_v58  ;;  %8459 = vmatpush3.bf16.msra.mxu0 %v8458_v24 }
 0x4f6   : > { %v8460_v2 = vpack.c.bf16 %v8882_v51, %v8881_v10  ;;  %5419 = vmatprep.mubr.f32.mxu0 %v7265_v38 }
 0x4f8   : > { %5420 = vmatmul.mubr.f32.gmra.mrb[110].mxu0 %v7264_v32  ;;  %5611 = vmatmul.mubr.f32.vlgmr.msra.gmra.mrb[64].mxu1 %v7266_v18 }
 0x4f9   : > { %8461 = vmatprep.subr.bf16.mxu0 %v8460_v2  ;;  %5615 = vmatprep.mubr.f32.mxu1 %v7269_v4 }
 0x4fa   : > { %8463 = vmatpush3.bf16.msra.mxu0 %v8462_v1  ;;  %5836 = vmatprep.mubr.f32.mxu0 %v7283_v62 }
 0x4fc   : > { %5616 = vmatmul.mubr.f32.gmra.mrb[66].mxu1 %v7268_v54 }
 0x4fd   : > { %5837 = vmatmul.mubr.f32.vlgmr.msra.gmra.mrb[112].mxu0 %v7282_v33  ;;  %5620 = vmatprep.mubr.f32.mxu1 %v7271_v44 }
 0x4fe   : > { %5841 = vmatprep.mubr.f32.mxu0 %v7285_v29 }
 0x500   : > { %5621 = vmatmul.mubr.f32.gmra.mrb[68].mxu1 %v7270_v23 }
 0x501   : > { %5842 = vmatmul.mubr.f32.gmra.mrb[114].mxu0 %v7284_v34  ;;  %5625 = vmatprep.mubr.f32.mxu1 %v7273_v30 }
 0x502   : > { %5846 = vmatprep.mubr.f32.mxu0 %v7287_v15 }
 0x504   : > { %5626 = vmatmul.mubr.f32.gmra.mrb[70].mxu1 %v7272_v46 }
 0x505   : > { %5847 = vmatmul.mubr.f32.gmra.mrb[116].mxu0 %v7286_v31  ;;  %5630 = vmatprep.mubr.f32.mxu1 %v7275_v7 }
 0x506   : > { %5851 = vmatprep.mubr.f32.mxu0 %v7289_v56 }
 0x508   : > { %5631 = vmatmul.mubr.f32.gmra.mrb[72].mxu1 %v7274_v37 }
 0x509   : > { %5852 = vmatmul.mubr.f32.gmra.mrb[118].mxu0 %v7288_v40  ;;  %5635 = vmatprep.mubr.f32.mxu1 %v7277_v11 }
 0x50a   : > { %5856 = vmatprep.mubr.f32.mxu0 %v7291_v50 }
 0x50c   : > { %5636 = vmatmul.mubr.f32.gmra.mrb[74].mxu1 %v7276_v49 }
 0x50d   : > { %5857 = vmatmul.mubr.f32.gmra.mrb[120].mxu0 %v7290_v39  ;;  %5640 = vmatprep.mubr.f32.mxu1 %v7279_v19 }
 0x50e   : > { %5861 = vmatprep.mubr.f32.mxu0 %v7293_v55 }
 0x510   : > { %5641 = vmatmul.mubr.f32.gmra.mrb[76].mxu1 %v7278_v27 }
 0x511   : > { %5862 = vmatmul.mubr.f32.gmra.mrb[122].mxu0 %v7292_v61  ;;  %5645 = vmatprep.mubr.f32.mxu1 %v7281_v52 }
 0x512   : > { %5866 = vmatprep.mubr.f32.mxu0 %v7295_v63 }
 0x514   : > { %5646 = vmatmul.mubr.f32.gmra.mrb[78].mxu1 %v7280_v5 }
 0x515   : > { %5867 = vmatmul.mubr.f32.gmra.mrb[124].mxu0 %v7294_v28 }
 0x516   : > { %5871 = vmatprep.mubr.f32.mxu0 %v7297_v43 }
 0x519   : > { %5872 = vmatmul.mubr.f32.gmra.mrb[126].mxu0 %v7296_v20 }
 0x56f   : > { %v7911_v47 = vpop.f32.mrb[64].mxu0 }
 0x570   : > { %v7912_v60 = vpop.f32.mrb[65].mxu0 }
 0x571   : > { %v7913_v35 = vadd.f32 %v7912_v60, %v7911_v47 }
 0x573   : > { %v7914_v26 = vpop.f32.mrb[66].mxu0 }
 0x574   : > { %v7915_v8 = vpop.f32.mrb[67].mxu0 }
 0x575   : > { %v7916_v9 = vadd.f32 %v7915_v8, %v7914_v26 }
 0x577   : > { %v7917_v16 = vpop.f32.mrb[68].mxu0 }
 0x578   : > { %v7918_v0 = vpop.f32.mrb[69].mxu0 }
 0x579   : > { %v7919_v21 = vadd.f32 %v7918_v0, %v7917_v16 }
 0x57b   : > { %v7920_v17 = vpop.f32.mrb[70].mxu0 }
 0x57c   : > { %v7921_v13 = vpop.f32.mrb[71].mxu0 }
 0x57d   : > { %v7922_v41 = vadd.f32 %v7921_v13, %v7920_v17 }
 0x57f   : > { %v7923_v22 = vpop.f32.mrb[72].mxu0 }
 0x580   : > { %v7924_v59 = vpop.f32.mrb[73].mxu0 }
 0x581   : > { %v7925_v12 = vadd.f32 %v7924_v59, %v7923_v22 }
 0x583   : > { %v7926_v45 = vpop.f32.mrb[74].mxu0 }
 0x584   : > { %v7927_v3 = vpop.f32.mrb[75].mxu0 }
 0x585   : > { %v7928_v57 = vadd.f32 %v7927_v3, %v7926_v45 }
 0x587   : > { %v7929_v25 = vpop.f32.mrb[76].mxu0 }
 0x588   : > { %v7930_v42 = vpop.f32.mrb[77].mxu0 }
 0x589   : > { %v7931_v48 = vadd.f32 %v7930_v42, %v7929_v25 }
 0x58b   : > { %v7932_v6 = vpop.f32.mrb[78].mxu0 }
 0x58c   : > { %v7933_v24 = vpop.f32.mrb[79].mxu0 }
 0x58d   : > { %v7934_v58 = vadd.f32 %v7933_v24, %v7932_v6 }
 0x58f   : > { %v7967_v36 = vpop.f32.mrb[80].mxu0 }
 0x590   : > { %v7968_v38 = vpop.f32.mrb[81].mxu0 }
 0x591   : > { %v7969_v53 = vadd.f32 %v7968_v38, %v7967_v36 }
 0x593   : > { %v5169_v14 = vadd.f32 %v7969_v53, %v7913_v35  ;;  %v7970_v51 = vpop.f32.mrb[82].mxu0 }
 0x594   : > { %v7971_v10 = vpop.f32.mrb[83].mxu0 }
 0x595   : > { %v7972_v32 = vadd.f32 %v7971_v10, %v7970_v51 }
 0x597   : > { %v5174_v18 = vadd.f32 %v7972_v32, %v7916_v9  ;;  %v7973_v2 = vpop.f32.mrb[84].mxu0 }
 0x598   : > { %v7974_v4 = vpop.f32.mrb[85].mxu0 }
 0x599   : > { %v7975_v62 = vadd.f32 %v7974_v4, %v7973_v2 }
 0x59b   : > { %v5179_v1 = vadd.f32 %v7975_v62, %v7919_v21  ;;  %v7976_v54 = vpop.f32.mrb[86].mxu0 }
 0x59c   : > { %v7977_v33 = vpop.f32.mrb[87].mxu0 }
 0x59d   : > { %v7978_v44 = vadd.f32 %v7977_v33, %v7976_v54 }
 0x59f   : > { %v5184_v29 = vadd.f32 %v7978_v44, %v7922_v41  ;;  %v7979_v23 = vpop.f32.mrb[88].mxu0 }
 0x5a0   : > { %v7980_v34 = vpop.f32.mrb[89].mxu0 }
 0x5a1   : > { %v7981_v30 = vadd.f32 %v7980_v34, %v7979_v23 }
 0x5a3   : > { %v5189_v15 = vadd.f32 %v7981_v30, %v7925_v12  ;;  %v7982_v46 = vpop.f32.mrb[90].mxu0 }
 0x5a4   : > { %v7983_v31 = vpop.f32.mrb[91].mxu0 }
 0x5a5   : > { %v7984_v7 = vadd.f32 %v7983_v31, %v7982_v46 }
 0x5a7   : > { %v5194_v56 = vadd.f32 %v7984_v7, %v7928_v57  ;;  %v7985_v37 = vpop.f32.mrb[92].mxu0 }
 0x5a8   : > { %v7986_v40 = vpop.f32.mrb[93].mxu0 }
 0x5a9   : > { %v7987_v11 = vadd.f32 %v7986_v40, %v7985_v37 }
 0x5ab   : > { %v5199_v50 = vadd.f32 %v7987_v11, %v7931_v48  ;;  %v7988_v49 = vpop.f32.mrb[94].mxu0  ;;  %v5901_v11 = vpop.permute.xlu0 %5900 }
 0x5ac   : > { %v7989_v39 = vpop.f32.mrb[95].mxu0 }
 0x5ad   : > { %v7990_v19 = vadd.f32 %v7989_v39, %v7988_v49 }
 0x5af   : > { %v5204_v55 = vadd.f32 %v7990_v19, %v7934_v58  ;;  %v8023_v27 = vpop.f32.mrb[96].mxu0 }
 0x5b0   : > { %v8024_v61 = vpop.f32.mrb[97].mxu0 }
 0x5b1   : > { %v8025_v52 = vadd.f32 %v8024_v61, %v8023_v27 }
 0x5b3   : > { %v5425_v63 = vadd.f32 %v8025_v52, %v5169_v14  ;;  %v8026_v5 = vpop.f32.mrb[98].mxu0 }
 0x5b4   : > { %v8027_v28 = vpop.f32.mrb[99].mxu0 }
 0x5b5   : > { %v8028_v43 = vadd.f32 %v8027_v28, %v8026_v5 }
 0x5b7   : > { %v5426_v20 = vadd.f32 %v8028_v43, %v5174_v18  ;;  %v8029_v47 = vpop.f32.mrb[100].mxu0 }
 0x5b8   : > { %v8030_v60 = vpop.f32.mrb[101].mxu0 }
 0x5b9   : > { %v8031_v35 = vadd.f32 %v8030_v60, %v8029_v47 }
 0x5bb   : > { %v5427_v26 = vadd.f32 %v8031_v35, %v5179_v1  ;;  %v8032_v8 = vpop.f32.mrb[102].mxu0 }
 0x5bc   : > { %v8033_v9 = vpop.f32.mrb[103].mxu0 }
 0x5bd   : > { %v8034_v16 = vadd.f32 %v8033_v9, %v8032_v8 }
 0x5bf   : > { %v5428_v0 = vadd.f32 %v8034_v16, %v5184_v29  ;;  %v8035_v21 = vpop.f32.mrb[104].mxu0  ;;  %v5896_v29 = vpop.permute.xlu1 %5895 }
 0x5c0   : > { %v8036_v17 = vpop.f32.mrb[105].mxu0 }
 0x5c1   : > { %v8037_v13 = vadd.f32 %v8036_v17, %v8035_v21  ;;  %v5911_v17 = vpop.permute.xlu0 %5910 }
 0x5c3   : > { %v5429_v41 = vadd.f32 %v8037_v13, %v5189_v15  ;;  %v8038_v22 = vpop.f32.mrb[106].mxu0  ;;  %v5906_v28 = vpop.permute.xlu1 %5905 }
 0x5c4   : > { %v8039_v59 = vpop.f32.mrb[107].mxu0 }
 0x5c5   : > { %v8040_v12 = vadd.f32 %v8039_v59, %v8038_v22 }
 0x5c7   : > { %v12414_v45 = vadd.f32 %v8040_v12, %v5194_v56  ;;  %v8041_v3 = vpop.f32.mrb[108].mxu0 }
 0x5c8   : > { %v8042_v57 = vpop.f32.mrb[109].mxu0 }
 0x5c9   : > { %v8043_v25 = vadd.f32 %v8042_v57, %v8041_v3 }
 0x5cb   : > { %v12416_v42 = vadd.f32 %v8043_v25, %v5199_v50  ;;  %v8079_v48 = vpop.f32.mrb[64].mxu1  ;;  %v8044_v6 = vpop.f32.mrb[110].mxu0 }
 0x5cc   : > { %v8080_v24 = vpop.f32.mrb[65].mxu1  ;;  %v8045_v58 = vpop.f32.mrb[111].mxu0 }
 0x5cd   : > { %v8081_v36 = vadd.f32 %v8080_v24, %v8079_v48  ;;  %v8046_v38 = vadd.f32 %v8045_v58, %v8044_v6 }
 0x5cf   : > { %v5651_v53 = vadd.f32 %v8081_v36, %v5425_v63  ;;  %v12418_v14 = vadd.f32 %v8046_v38, %v5204_v55  ;;  %v8082_v51 = vpop.f32.mrb[66].mxu1 }
 0x5d0   : > { %v8135_v10 = vpop.f32.mrb[112].mxu0  ;;  %v8083_v32 = vpop.f32.mrb[67].mxu1 }
 0x5d1   : > { %v8084_v18 = vadd.f32 %v8083_v32, %v8082_v51  ;;  %v8136_v2 = vpop.f32.mrb[113].mxu0 }
 0x5d2   : > { %v8137_v4 = vadd.f32 %v8136_v2, %v8135_v10 }
 0x5d3   : > { %v5652_v62 = vadd.f32 %v8084_v18, %v5426_v20  ;;  %v8085_v1 = vpop.f32.mrb[68].mxu1 }
 0x5d4   : > { %v5877_v54 = vadd.f32 %v8137_v4, %v5651_v53  ;;  %v8138_v33 = vpop.f32.mrb[114].mxu0  ;;  %v8086_v44 = vpop.f32.mrb[69].mxu1 }
 0x5d5   : > { %v8087_v23 = vadd.f32 %v8086_v44, %v8085_v1  ;;  %v8139_v34 = vpop.f32.mrb[115].mxu0 }
 0x5d6   : > { %v5933_v30 = vadd.f32 %v5896_v29, %v5877_v54  ;;  %v8140_v15 = vadd.f32 %v8139_v34, %v8138_v33  ;;  %v5921_v54 = vpop.permute.xlu0 %5920 }
 0x5d7   : > { %v5653_v46 = vadd.f32 %v8087_v23, %v5427_v26  ;;  %v8088_v31 = vpop.f32.mrb[70].mxu1 }
 0x5d8   : > { %v5941_v7 = vmax.f32 %v5933_v30, 0.0  ;;  %v5878_v56 = vadd.f32 %v8140_v15, %v5652_v62  ;;  %v8141_v37 = vpop.f32.mrb[116].mxu0  ;;  %v8089_v40 = vpop.f32.mrb[71].mxu1 }
 0x5d9   : > { %v8090_v50 = vadd.f32 %v8089_v40, %v8088_v31  ;;  %v8142_v49 = vpop.f32.mrb[117].mxu0 }
 0x5da   : > { %5950 = vst.msk [vmem:[#allocation3] sm:$0xff] %vm5949_vm3, %v5941_v7  ;;  %v5934_v39 = vadd.f32 %v5901_v11, %v5878_v56  ;;  %v8143_v19 = vadd.f32 %v8142_v49, %v8141_v37 }
 0x5db   : > { %v5654_v55 = vadd.f32 %v8090_v50, %v5428_v0  ;;  %v8091_v27 = vpop.f32.mrb[72].mxu1 }
 0x5dc   : > { %v5942_v61 = vmax.f32 %v5934_v39, 0.0  ;;  %v5879_v52 = vadd.f32 %v8143_v19, %v5653_v46  ;;  %v8144_v63 = vpop.f32.mrb[118].mxu0  ;;  %v8092_v5 = vpop.f32.mrb[73].mxu1 }
 0x5dd   : > { %v8093_v43 = vadd.f32 %v8092_v5, %v8091_v27  ;;  %v8145_v20 = vpop.f32.mrb[119].mxu0  ;;  %v5931_v19 = vpop.permute.xlu0 %5930  ;;  %v7298_v5 = vld [vmem:[%s12513_s5 + $0x10] sm:$0xff] }
 0x5de   : > { %5951 = vst.msk [vmem:[#allocation3 + $0x8] sm:$0xff] %vm5949_vm3, %v5942_v61  ;;  %v5935_v47 = vadd.f32 %v5906_v28, %v5879_v52  ;;  %v8146_v60 = vadd.f32 %v8145_v20, %v8144_v63  ;;  %8225 = vmatprep.mubr.msk.f32.mxu1 %vm6003_vm4, %v7298_v5 }
 0x5df   : > { %v5655_v35 = vadd.f32 %v8093_v43, %v5429_v41  ;;  %v8094_v26 = vpop.f32.mrb[74].mxu1  ;;  %v5916_v41 = vpop.permute.xlu1 %5915 }
 0x5e0   : > { %v5943_v8 = vmax.f32 %v5935_v47, 0.0  ;;  %v5880_v9 = vadd.f32 %v8146_v60, %v5654_v55  ;;  %v8147_v16 = vpop.f32.mrb[120].mxu0  ;;  %v8095_v21 = vpop.f32.mrb[75].mxu1  ;;  %v6496_v60 = vld [vmem:[%s12514_s6] sm:$0xff] }
 0x5e1   : > { %v8096_v0 = vadd.f32 %v8095_v21, %v8094_v26  ;;  %v8148_v13 = vpop.f32.mrb[121].mxu0  ;;  %v5960_v36 = vld [vmem:[#allocation3] sm:$0xff] }
 0x5e2   : > { %5952 = vst.msk [vmem:[#allocation3 + $0x10] sm:$0xff] %vm5949_vm3, %v5943_v8  ;;  %v5936_v22 = vadd.f32 %v5911_v17, %v5880_v9  ;;  %v8149_v59 = vadd.f32 %v8148_v13, %v8147_v16 }
 0x5e3   : > { %v5656_v12 = vadd.f32 %v8096_v0, %v12414_v45  ;;  %v8097_v3 = vpop.f32.mrb[76].mxu1  ;;  %v5926_v46 = vpop.permute.xlu1 %5925 }
 0x5e4   : > { %v5944_v57 = vmax.f32 %v5936_v22, 0.0  ;;  %v5881_v25 = vadd.f32 %v8149_v59, %v5655_v35  ;;  %v8150_v48 = vpop.f32.mrb[122].mxu0  ;;  %v8098_v6 = vpop.f32.mrb[77].mxu1  ;;  %v6497_v35 = vld [vmem:[%s12514_s6 + $0x8] sm:$0xff] }
 0x5e5   : > { %v8099_v24 = vadd.f32 %v8098_v6, %v8097_v3  ;;  %v8151_v58 = vpop.f32.mrb[123].mxu0  ;;  %v5961_v38 = vld [vmem:[#allocation3 + $0x8] sm:$0xff] }
 0x5e6   : > { %5953 = vst.msk [vmem:[#allocation3 + $0x18] sm:$0xff] %vm5949_vm3, %v5944_v57  ;;  %v5937_v53 = vadd.f32 %v5916_v41, %v5881_v25  ;;  %v8152_v51 = vadd.f32 %v8151_v58, %v8150_v48  ;;  %v8888_v10 = vpack.i.bf16 %v5961_v38, %v5960_v36  ;;  %v12426_v2 = vpack.c.bf16 %v5961_v38, %v5960_v36  ;;  %v7299_v41 = vld [vmem:[%s12513_s5 + $0x18] sm:$0xff] }
 0x5e7   : > { %v5657_v32 = vadd.f32 %v8099_v24, %v12416_v42  ;;  %v8100_v18 = vpop.f32.mrb[78].mxu1  ;;  %v5958_v24 = vld [vmem:[%s12513_s5] sm:$0xff] }
 0x5e8   : > { %v5945_v45 = vmax.f32 %v5937_v53, 0.0  ;;  %v5882_v4 = vadd.f32 %v8152_v51, %v5656_v12  ;;  %v8153_v62 = vpop.f32.mrb[124].mxu0  ;;  %8889 = vrot.lane.b32.xlu1 %v8888_v10, %s9457_s30  ;;  %v8101_v1 = vpop.f32.mrb[79].mxu1 }
 0x5e9   : > { %v8102_v33 = vadd.f32 %v8101_v1, %v8100_v18  ;;  %v8154_v44 = vpop.f32.mrb[125].mxu0  ;;  %v5962_v7 = vld [vmem:[#allocation3 + $0x10] sm:$0xff] }
 0x5ea   : > { %5954 = vst.msk [vmem:[#allocation3 + $0x20] sm:$0xff] %vm5949_vm3, %v5945_v45  ;;  %v5938_v29 = vadd.f32 %v5921_v54, %v5882_v4  ;;  %v8155_v23 = vadd.f32 %v8154_v44, %v8153_v62  ;;  %v7304_v45 = vld [vmem:[%s12513_s5 + $0x20] sm:$0xff] }
 0x5eb   : > { %v5658_v34 = vadd.f32 %v8102_v33, %v12418_v14 }
 0x5ec   : > { %v5946_v30 = vmax.f32 %v5938_v29, 0.0  ;;  %v5883_v42 = vadd.f32 %v8155_v23, %v5657_v32  ;;  %v8156_v15 = vpop.f32.mrb[126].mxu0 }
 0x5ed   : > { %v8157_v31 = vpop.f32.mrb[127].mxu0  ;;  %v5963_v56 = vld [vmem:[#allocation3 + $0x18] sm:$0xff] }
 0x5ee   : > { %5955 = vst.msk [vmem:[#allocation3 + $0x28] sm:$0xff] %vm5949_vm3, %v5946_v30  ;;  %v5939_v37 = vadd.f32 %v5926_v46, %v5883_v42  ;;  %v8158_v40 = vadd.f32 %v8157_v31, %v8156_v15  ;;  %v8893_v11 = vpack.i.bf16 %v5963_v56, %v5962_v7  ;;  %v12432_v50 = vpack.c.bf16 %v5963_v56, %v5962_v7 }
 0x5f0   : > { %v5947_v49 = vmax.f32 %v5939_v37, 0.0  ;;  %v5884_v39 = vadd.f32 %v8158_v40, %v5658_v34  ;;  %8894 = vrot.lane.b32.xlu0 %v8893_v11, %s9457_s30  ;;  %v7305_v37 = vld [vmem:[%s12513_s5 + $0x28] sm:$0xff]  ;;  %v7308_v40 = vld [vmem:[%s12513_s5 + $0x30] sm:$0xff] }
 0x5f1   : > { %v5964_v27 = vld [vmem:[#allocation3 + $0x20] sm:$0xff] }
 0x5f2   : > { %5956 = vst.msk [vmem:[#allocation3 + $0x30] sm:$0xff] %vm5949_vm3, %v5947_v49  ;;  %v5940_v14 = vadd.f32 %v5931_v19, %v5884_v39 }
 0x5f4   : > { %v5948_v55 = vmax.f32 %v5940_v14, 0.0 }
 0x5f5   : > { %v5965_v61 = vld [vmem:[#allocation3 + $0x28] sm:$0xff] }
 0x5f6   : > { %5957 = vst.msk [vmem:[#allocation3 + $0x38] sm:$0xff] %vm5949_vm3, %v5948_v55  ;;  %v8898_v52 = vpack.i.bf16 %v5965_v61, %v5964_v27  ;;  %v8488_v63 = vpack.c.bf16 %v5965_v61, %v5964_v27 }
 0x5f8   : > { %8899 = vrot.lane.b32.xlu1 %v8898_v52, %s9457_s30 }
 0x5f9   : > { %v5966_v28 = vld [vmem:[#allocation3 + $0x30] sm:$0xff] }
 0x5fc   : > { %8909 = vrot.lane.b32.xlu1 %v8888_v10, %s9458_s12 }
 0x5fd   : > { %v5967_v43 = vld [vmem:[#allocation3 + $0x38] sm:$0xff] }
 0x5fe   : > { %v8903_v20 = vpack.i.bf16 %v5967_v43, %v5966_v28  ;;  %v8492_v47 = vpack.c.bf16 %v5967_v43, %v5966_v28 }
 0x600   : > { %8904 = vrot.lane.b32.xlu0 %v8903_v20, %s9457_s30  ;;  %8919 = vrot.lane.b32.xlu1 %v8898_v52, %s9458_s12  ;;  %s7318_s30 = sshll.u32 %s12541_s25, 4 }
 0x604   : > { %8914 = vrot.lane.b32.xlu0 %v8893_v11, %s9458_s12  ;;  %8929 = vrot.lane.b32.xlu1 %v8888_v10, %s9459_s17 }
 0x608   : > { %8924 = vrot.lane.b32.xlu0 %v8903_v20, %s9458_s12  ;;  %8939 = vrot.lane.b32.xlu1 %v8898_v52, %s9459_s17 }
 0x60c   : > { %8934 = vrot.lane.b32.xlu0 %v8893_v11, %s9459_s17  ;;  %8949 = vrot.lane.b32.xlu1 %v8888_v10, %s9460_s22 }
 0x610   : > { %8944 = vrot.lane.b32.xlu0 %v8903_v20, %s9459_s17  ;;  %8959 = vrot.lane.b32.xlu1 %v8898_v52, %s9460_s22  ;;  %s278_s17 = scalar_lea.vmem %s12515_s7, %s7318_s30 }
 0x614   : > { %8954 = vrot.lane.b32.xlu0 %v8893_v11, %s9460_s22  ;;  %6500 = vperm.xlu1 %8567, %v6496_v60   ;;  %v7309_v60 = vld [vmem:[%s12513_s5 + $0x38] sm:$0xff] }
 0x618   : > { %8964 = vrot.lane.b32.xlu0 %v8903_v20, %s9460_s22 }
 0x61c   : > { %6505 = vperm.xlu0 %8566, %v6497_v35   ;;  %v7312_v35 = vld [vmem:[%s12513_s5 + $0x40] sm:$0xff] }
 0x65a   : > { %v8890_v26 = vpop.permute.xlu1 %8889 }
 0x65b   : > { %v8892_v8 = vunpack.i.h.bf16 %v8890_v26  ;;  %v8891_v9 = vunpack.i.l.bf16 %v8890_v26 }
 0x65d   : > { %v8464_v16 = vpack.c.bf16 %v8892_v8, %v8891_v9 }
 0x65f   : > { %8465 = vmatprep.subr.bf16.mxu1 %v8464_v16 }
 0x660   : > { %8467 = vmatpush3.bf16.msra.mxu1 %v8464_v16 }
 0x662   : > { %v8895_v21 = vpop.permute.xlu0 %8894 }
 0x663   : > { %v8897_v17 = vunpack.i.h.bf16 %v8895_v21  ;;  %v8896_v0 = vunpack.i.l.bf16 %v8895_v21 }
 0x665   : > { %v8468_v13 = vpack.c.bf16 %v8897_v17, %v8896_v0 }
 0x667   : > { %8469 = vmatprep.subr.bf16.mxu1 %v8468_v13 }
 0x668   : > { %8471 = vmatpush3.bf16.msra.mxu1 %v8468_v13 }
 0x66a   : > { %v8900_v22 = vpop.permute.xlu1 %8899 }
 0x66b   : > { %v8902_v59 = vunpack.i.h.bf16 %v8900_v22  ;;  %v8901_v12 = vunpack.i.l.bf16 %v8900_v22  ;;  %v7313_v22 = vld [vmem:[%s12513_s5 + $0x48] sm:$0xff] }
 0x66d   : > { %v8472_v3 = vpack.c.bf16 %v8902_v59, %v8901_v12 }
 0x66e   : > { %v8910_v58 = vpop.permute.xlu1 %8909 }
 0x66f   : > { %8473 = vmatprep.subr.bf16.mxu1 %v8472_v3  ;;  %v8912_v36 = vunpack.i.h.bf16 %v8910_v58  ;;  %v8911_v38 = vunpack.i.l.bf16 %v8910_v58 }
 0x670   : > { %8475 = vmatpush3.bf16.msra.mxu1 %v8472_v3 }
 0x671   : > { %v8496_v51 = vpack.c.bf16 %v8912_v36, %v8911_v38 }
 0x672   : > { %v8905_v57 = vpop.permute.xlu0 %8904  ;;  %v8920_v18 = vpop.permute.xlu1 %8919 }
 0x673   : > { %v8907_v25 = vunpack.i.h.bf16 %v8905_v57  ;;  %v8906_v48 = vunpack.i.l.bf16 %v8905_v57  ;;  %v8922_v4 = vunpack.i.h.bf16 %v8920_v18  ;;  %v8921_v62 = vunpack.i.l.bf16 %v8920_v18 }
 0x675   : > { %v8476_v6 = vpack.c.bf16 %v8907_v25, %v8906_v48  ;;  %v8504_v33 = vpack.c.bf16 %v8922_v4, %v8921_v62 }
 0x676   : > { %v8915_v53 = vpop.permute.xlu0 %8914  ;;  %v8930_v23 = vpop.permute.xlu1 %8929 }
 0x677   : > { %8477 = vmatprep.subr.bf16.mxu1 %v8476_v6  ;;  %v8917_v10 = vunpack.i.h.bf16 %v8915_v53  ;;  %v8916_v32 = vunpack.i.l.bf16 %v8915_v53  ;;  %v8932_v34 = vunpack.i.h.bf16 %v8930_v23  ;;  %v8931_v30 = vunpack.i.l.bf16 %v8930_v23 }
 0x678   : > { %8479 = vmatpush3.bf16.msra.mxu1 %v8476_v6 }
 0x679   : > { %8481 = vmatprep.subr.bf16.mxu1 %v12426_v2  ;;  %v8500_v1 = vpack.c.bf16 %v8917_v10, %v8916_v32  ;;  %v8512_v46 = vpack.c.bf16 %v8932_v34, %v8931_v30 }
 0x67a   : > { %v8925_v54 = vpop.permute.xlu0 %8924  ;;  %v8940_v56 = vpop.permute.xlu1 %8939 }
 0x67b   : > { %8226 = vmatmul.mubr.msk.f32.vlgmr.msra.gmra.mrb[80].mxu1 %vm6003_vm4, %v7299_v41  ;;  %v8927_v44 = vunpack.i.h.bf16 %v8925_v54  ;;  %v8926_v29 = vunpack.i.l.bf16 %v8925_v54  ;;  %v8942_v11 = vunpack.i.h.bf16 %v8940_v56 }
 0x67c   : > { %8483 = vmatpush3.bf16.msra.mxu1 %v12426_v2  ;;  %8244 = vmatprep.mubr.msk.f32.mxu1 %vm6003_vm4, %v5958_v24  ;;  %v5959_v2 = vld [vmem:[%s12513_s5 + $0x8] sm:$0xff] }
 0x67d   : > { %8485 = vmatprep.subr.bf16.mxu1 %v12432_v50  ;;  %v8508_v42 = vpack.c.bf16 %v8927_v44, %v8926_v29 }
 0x67e   : > { %v8935_v15 = vpop.permute.xlu0 %8934  ;;  %v8950_v27 = vpop.permute.xlu1 %8949 }
 0x67f   : > { %v8937_v31 = vunpack.i.h.bf16 %v8935_v15  ;;  %v8936_v7 = vunpack.i.l.bf16 %v8935_v15  ;;  %v8952_v61 = vunpack.i.h.bf16 %v8950_v27  ;;  %v8951_v52 = vunpack.i.l.bf16 %v8950_v27 }
 0x680   : > { %8487 = vmatpush3.bf16.msra.mxu1 %v12432_v50  ;;  %v8941_v50 = vunpack.i.l.bf16 %v8940_v56 }
 0x681   : > { %8489 = vmatprep.subr.bf16.mxu1 %v8488_v63  ;;  %v8516_v49 = vpack.c.bf16 %v8937_v31, %v8936_v7  ;;  %v8528_v28 = vpack.c.bf16 %v8952_v61, %v8951_v52 }
 0x682   : > { %v8945_v39 = vpop.permute.xlu0 %8944  ;;  %v8520_v19 = vpack.c.bf16 %v8942_v11, %v8941_v50 }
 0x683   : > { %v8947_v14 = vunpack.i.h.bf16 %v8945_v39  ;;  %v8946_v55 = vunpack.i.l.bf16 %v8945_v39 }
 0x684   : > { %8491 = vmatpush3.bf16.msra.mxu1 %v8488_v63 }
 0x685   : > { %8493 = vmatprep.subr.bf16.mxu1 %v8492_v47  ;;  %v8524_v63 = vpack.c.bf16 %v8947_v14, %v8946_v55 }
 0x686   : > { %v8955_v5 = vpop.permute.xlu0 %8954 }
 0x687   : > { %v8957_v43 = vunpack.i.h.bf16 %v8955_v5  ;;  %v8956_v20 = vunpack.i.l.bf16 %v8955_v5 }
 0x688   : > { %8495 = vmatpush3.bf16.msra.mxu1 %v8492_v47  ;;  %v8960_v47 = vpop.permute.xlu1 %8959 }
 0x689   : > { %8497 = vmatprep.subr.bf16.mxu1 %v8496_v51  ;;  %v8962_v26 = vunpack.i.h.bf16 %v8960_v47  ;;  %v8961_v8 = vunpack.i.l.bf16 %v8960_v47  ;;  %v8532_v9 = vpack.c.bf16 %v8957_v43, %v8956_v20 }
 0x68a   : > { %v8965_v16 = vpop.permute.xlu0 %8964 }
 0x68b   : > { %8245 = vmatmul.mubr.msk.f32.vlgmr.msra.gmra.mrb[80].mxu1 %vm6003_vm4, %v5959_v2  ;;  %v8536_v21 = vpack.c.bf16 %v8962_v26, %v8961_v8  ;;  %v8967_v17 = vunpack.i.h.bf16 %v8965_v16  ;;  %v8966_v0 = vunpack.i.l.bf16 %v8965_v16 }
 0x68c   : > { %8499 = vmatpush3.bf16.msra.mxu1 %v8496_v51  ;;  %8263 = vmatprep.mubr.msk.f32.mxu1 %vm6003_vm4, %v7304_v45 }
 0x68d   : > { %8501 = vmatprep.subr.bf16.mxu1 %v8500_v1  ;;  %v8540_v13 = vpack.c.bf16 %v8967_v17, %v8966_v0 }
 0x690   : > { %8503 = vmatpush3.bf16.msra.mxu1 %v8500_v1 }
 0x691   : > { %8505 = vmatprep.subr.bf16.mxu1 %v8504_v33 }
 0x693   : > { %v6501_v3 = vpop.permute.xlu1 %6500 }
 0x694   : > { %8507 = vmatpush3.bf16.msra.mxu1 %v8504_v33 }
 0x695   : > { %8509 = vmatprep.subr.bf16.mxu1 %v8508_v42 }
 0x698   : > { %8511 = vmatpush3.bf16.msra.mxu1 %v8508_v42 }
 0x699   : > { %8513 = vmatprep.subr.bf16.mxu1 %v8512_v46 }
 0x69b   : > { %8264 = vmatmul.mubr.msk.f32.vlgmr.msra.gmra.mrb[80].mxu1 %vm6003_vm4, %v7305_v37  ;;  %v6506_v59 = vpop.permute.xlu0 %6505 }
 0x69c   : > { %8515 = vmatpush3.bf16.msra.mxu1 %v8512_v46  ;;  %8282 = vmatprep.mubr.msk.f32.mxu1 %vm6003_vm4, %v7308_v40 }
 0x69d   : > { %8517 = vmatprep.subr.bf16.mxu1 %v8516_v49 }
 0x6a0   : > { %8519 = vmatpush3.bf16.msra.mxu1 %v8516_v49 }
 0x6a1   : > { %8521 = vmatprep.subr.bf16.mxu1 %v8520_v19 }
 0x6a4   : > { %8523 = vmatpush3.bf16.msra.mxu1 %v8520_v19 }
 0x6a5   : > { %8525 = vmatprep.subr.bf16.mxu1 %v8524_v63 }
 0x6a8   : > { %8527 = vmatpush3.bf16.msra.mxu1 %v8524_v63 }
 0x6a9   : > { %8529 = vmatprep.subr.bf16.mxu1 %v8528_v28 }
 0x6ab   : > { %8283 = vmatmul.mubr.msk.f32.vlgmr.msra.gmra.mrb[80].mxu1 %vm6003_vm4, %v7309_v60 }
 0x6ac   : > { %8531 = vmatpush3.bf16.msra.mxu1 %v8528_v28  ;;  %8301 = vmatprep.mubr.msk.f32.mxu1 %vm6003_vm4, %v7312_v35 }
 0x6ad   : > { %8533 = vmatprep.subr.bf16.mxu1 %v8532_v9 }
 0x6b0   : > { %8535 = vmatpush3.bf16.msra.mxu1 %v8532_v9 }
 0x6b1   : > { %8537 = vmatprep.subr.bf16.mxu1 %v8536_v21 }
 0x6b4   : > { %8539 = vmatpush3.bf16.msra.mxu1 %v8536_v21 }
 0x6b5   : > { %8541 = vmatprep.subr.bf16.mxu1 %v8540_v13 }
 0x6b8   : > { %8543 = vmatpush3.bf16.msra.mxu1 %v8540_v13 }
 0x6bb   : > { %8302 = vmatmul.mubr.msk.f32.vlgmr.msra.gmra.mrb[80].mxu1 %vm6003_vm4, %v7313_v22 }
 0x78e   : > { %v8303_v12 = vpop.f32.mrb[80].mxu1 }
 0x78f   : > { %v6509_v57 = vadd.f32 %v8303_v12, %v6506_v59  ;;  %v6485_v25 = vpop.f32.mrb[81].mxu1 }
 0x790   : > { %v6508_v48 = vadd.f32 %v6501_v3, %v6485_v25 }
 0x791   : > { %v6511_v6 = vmax.f32 %v6509_v57, 0.0 }
 0x792   : > { %v6510_v41 = vmax.f32 %v6508_v48, 0.0 }
 0x793   : > { %6514 = vst.msk [vmem:[%s278_s17 + $0x8] sm:$0xff] %vm6512_vm5, %v6511_v6 }
 0x794   : > { %6513 = vst.msk [vmem:[%s278_s17] sm:$0xff] %vm6512_vm5, %v6510_v41 }
 0x795 PF: > { %s17_s24 = sadd.s32 1, %s9454_s24  }
 0x796   : > { %p14_p4 = scmp.ge.s32.totalorder %s17_s24, 4  }
 0x798   :  { %16 = sbr.rel (!%p14_p4) target bundleno = 1 (0x1), region = 90 }

</bundles_post_ra>
